<compile_context>
chip_gen: v7x
topology: tpu7x:2x2x1
jax: 0.10.0
libtpu: 0.0.40
codegen_flags: <defaults>
</compile_context>

<pallas_src>
import jax
import jax.numpy as jnp
import numpy as np
from jax.experimental import pallas as pl
from jax.experimental.pallas import tpu as pltpu

# ---- problem sizes (consistent with the module) ------------------------------
N = 2                 # batch (small; reference script used 16)
C_IN = 480
H = W = 6
C_OUT = 24
KH = KW = 3
STRIDE = 2
PAD = 1
OH = (H - 1) * STRIDE - 2 * PAD + KH   # 11
OW = (W - 1) * STRIDE - 2 * PAD + KW   # 11

HID1 = 345            # linear1 out_features (as in __init__)
HID_PAD = 384         # padded to 3 x 128 lanes
OUT2 = 2              # linear2 out_features (as in __init__)
FLAT = N * C_OUT * OH * OW             # 5808
FLAT_PAD = 5824                        # rows padded so int8 tiles are 32-aligned
KT = 2                                 # w1 row tiles (pipelined)
TK = FLAT_PAD // KT                    # 2912 = 91 * 32

TAP_STRIDE = 32                        # lanes reserved per tap (24 used)
TAP_PAD = KH * KW * TAP_STRIDE         # 288


# ---- kernels ------------------------------------------------------------------
def conv_subpixel_kernel(x_ref, taps_ref, ee_ref, eo_ref, oe_ref, oo_ref):
    """ConvTranspose2d(480->24, k=3, s=2, p=1) via sub-pixel decomposition.

    One wide MXU matmul computes all 9 taps at once; parity sub-outputs are
    assembled with cheap VPU adds of 24-lane slices.  Bias folded into b1.
      x_ref   : (N, H, W, C_IN) f32 NHWC
      taps_ref: (C_IN, TAP_PAD) f32, tap (kh,kw) lives at lanes 32*(kh*3+kw)+[0,24)
      ee_ref  : (N, 6, 6, C_OUT) f32 -> out[n, :, 2m,   2p  ]
      eo_ref  : (N, 6, 5, C_OUT) f32 -> out[n, :, 2m,   2p+1]
      oe_ref  : (N, 5, 6, C_OUT) f32 -> out[n, :, 2m+1, 2p  ]
      oo_ref  : (N, 5, 5, C_OUT) f32 -> out[n, :, 2m+1, 2p+1]
    """
    t = jnp.einsum("nhwc,cd->nhwd", x_ref[...], taps_ref[...],
                   preferred_element_type=jnp.float32)        # (N, 6, 6, 288)

    def tap(kh, kw):
        o = (kh * KW + kw) * TAP_STRIDE
        return t[..., o:o + C_OUT]

    ee_ref[...] = tap(1, 1)
    eo_ref[...] = tap(1, 0)[:, :, 1:, :] + tap(1, 2)[:, :, :-1, :]
    oe_ref[...] = tap(0, 1)[:, 1:, :, :] + tap(2, 1)[:, :-1, :, :]
    oo_ref[...] = (tap(0, 0)[:, 1:, 1:, :] + tap(0, 2)[:, 1:, :-1, :]
                   + tap(2, 0)[:, :-1, 1:, :] + tap(2, 2)[:, :-1, :-1, :])


def mlp_kernel(flat_ref, w1_ref, scale_ref, b1_ref, w2t_ref, b2_ref,
               o_ref, acc_ref):
    """Pipelined int8-weight GEMV (bf16 MXU, f32 acc) + ReLU + VPU second layer.

      flat_ref : (1, 1, TK) bf16   activation row tile k (pre-cast by XLA)
      w1_ref   : (TK, HID_PAD) int8  row tile k of permuted / padded w1
      scale_ref: (1, HID_PAD) f32  per-column dequant scales
      b1_ref   : (1, HID_PAD) f32  (conv bias folded in)
      w2t_ref  : (OUT2, HID_PAD) f32  lane-dense transposed w2
      b2_ref   : (OUT2, 1) f32
      o_ref    : (OUT2, 1) f32
      acc_ref  : (1, HID_PAD) f32 scratch accumulator
    """
    k = pl.program_id(0)

    @pl.when(k == 0)
    def _():
        acc_ref[...] = jnp.zeros_like(acc_ref)

    # int8 -> bf16 is exact; per-column scale factors out of the K-sum.
    acc_ref[...] += jnp.dot(flat_ref[0], w1_ref[...].astype(jnp.bfloat16),
                            preferred_element_type=jnp.float32)

    @pl.when(k == KT - 1)
    def _():
        h = jnp.maximum(acc_ref[...] * scale_ref[...] + b1_ref[...], 0.0)
        # second linear: (1,384) x (2,384) broadcast mul + lane reduce (VPU/XLU)
        o_ref[...] = jnp.sum(h * w2t_ref[...], axis=1, keepdims=True) + b2_ref[...]


# ---- wrappers -------------------------------------------------------------------
def conv_pallas(x_nhwc, taps):
    vmem = pl.BlockSpec(memory_space=pltpu.MemorySpace.VMEM)
    out_shapes = (
        jax.ShapeDtypeStruct((N, 6, 6, C_OUT), jnp.float32),
        jax.ShapeDtypeStruct((N, 6, 5, C_OUT), jnp.float32),
        jax.ShapeDtypeStruct((N, 5, 6, C_OUT), jnp.float32),
        jax.ShapeDtypeStruct((N, 5, 5, C_OUT), jnp.float32),
    )
    return pl.pallas_call(
        conv_subpixel_kernel,
        out_shape=out_shapes,
        in_specs=[vmem, vmem],
        out_specs=(vmem, vmem, vmem, vmem),
    )(x_nhwc, taps)


def mlp_pallas(flat, kp):
    grid_spec = pltpu.PrefetchScalarGridSpec(
        num_scalar_prefetch=0,
        grid=(KT,),
        in_specs=[
            pl.BlockSpec((1, 1, TK), lambda k: (k, 0, 0)),        # activation tile
            pl.BlockSpec((TK, HID_PAD), lambda k: (k, 0)),        # w1 int8 tile
            pl.BlockSpec((1, HID_PAD), lambda k: (0, 0)),         # scale
            pl.BlockSpec((1, HID_PAD), lambda k: (0, 0)),         # b1
            pl.BlockSpec((OUT2, HID_PAD), lambda k: (0, 0)),      # w2^T
            pl.BlockSpec((OUT2, 1), lambda k: (0, 0)),            # b2
        ],
        out_specs=pl.BlockSpec((OUT2, 1), lambda k: (0, 0)),
        scratch_shapes=[pltpu.VMEM((1, HID_PAD), jnp.float32)],
    )
    out = pl.pallas_call(
        mlp_kernel,
        out_shape=jax.ShapeDtypeStruct((OUT2, 1), jnp.float32),
        grid_spec=grid_spec,
        compiler_params=pltpu.CompilerParams(
            dimension_semantics=("arbitrary",)),
    )(flat, kp["w1"], kp["scale"], kp["b1"], kp["w2t"], kp["b2"])
    return out.reshape(OUT2)


@jax.jit
def model_forward(x_nchw, kp):
    x_nhwc = jnp.transpose(x_nchw, (0, 2, 3, 1))                 # NCHW -> NHWC
    ee, eo, oe, oo = conv_pallas(x_nhwc, kp["taps"])
    flat = jnp.concatenate([ee.reshape(-1), eo.reshape(-1),
                            oe.reshape(-1), oo.reshape(-1)])
    flat = jnp.pad(flat, (0, FLAT_PAD - FLAT)).astype(jnp.bfloat16)
    flat = flat.reshape(KT, 1, TK)
    return mlp_pallas(flat, kp)                                  # (2,)


# ---- one-time host-side parameter preprocessing ---------------------------------
def prepare_params(params):
    wt = np.asarray(params["wt"], np.float32)                    # (Cin, Cout, 3, 3)
    # taps laid out (Cin, 9*32) with tap (kh,kw) at lanes 32*(kh*3+kw)+[0,24)
    taps = np.zeros((C_IN, TAP_PAD), np.float32)
    wt_kkc = np.transpose(wt, (0, 2, 3, 1))                      # (Cin, KH, KW, Cout)
    for kh in range(KH):
        for kw in range(KW):
            o = (kh * KW + kw) * TAP_STRIDE
            taps[:, o:o + C_OUT] = wt_kkc[:, kh, kw, :]

    w1 = np.asarray(params["w1"], np.float32)                    # (FLAT, HID1)

    # permutation: kernel flat position i holds torch.flatten(NCHW) element perm[i]
    torch_idx = np.arange(FLAT).reshape(N, C_OUT, OH, OW)
    idx_nhwc = np.transpose(torch_idx, (0, 2, 3, 1))             # (N, OH, OW, Cout)
    perm = np.concatenate([
        idx_nhwc[:, 0::2, 0::2, :].ravel(),                      # ee order
        idx_nhwc[:, 0::2, 1::2, :].ravel(),                      # eo order
        idx_nhwc[:, 1::2, 0::2, :].ravel(),                      # oe order
        idx_nhwc[:, 1::2, 1::2, :].ravel()])                     # oo order
    w1_perm = w1[perm, :]                                        # (FLAT, HID1)

    # pad rows FLAT -> FLAT_PAD and cols 345 -> 384, then int8 per-column quant
    w1_pad = np.zeros((FLAT_PAD, HID_PAD), np.float32)
    w1_pad[:FLAT, :HID1] = w1_perm
    col_max = np.abs(w1_pad).max(axis=0)
    scale = np.where(col_max > 0, col_max / 127.0, 1.0).astype(np.float32)
    w1_i8 = np.clip(np.round(w1_pad / scale[None, :]), -127, 127).astype(np.int8)
    w1_deq_pad = w1_i8.astype(np.float32) * scale[None, :]

    # dequantized matrix in torch row order (used by the reference + bias fold)
    w1_deq_torch = np.zeros((FLAT, HID1), np.float32)
    w1_deq_torch[perm, :] = w1_deq_pad[:FLAT, :HID1]

    # fold the conv bias into b1:  b1_eff = b1 + flatten(bias broadcast) @ w1_deq
    ch = (np.arange(FLAT) // (OH * OW)) % C_OUT
    bias_flat = np.asarray(params["bt"], np.float32)[ch]         # (FLAT,)
    b1_eff = (np.asarray(params["b1"], np.float32).reshape(1, HID1)
              + bias_flat[None, :] @ w1_deq_torch)

    b1_pad = np.zeros((1, HID_PAD), np.float32)
    b1_pad[:, :HID1] = b1_eff
    w2t = np.zeros((OUT2, HID_PAD), np.float32)                  # lane-dense w2^T
    w2t[:, :HID1] = np.asarray(params["w2"], np.float32).T

    kernel_params = {
        "taps": jnp.asarray(taps, jnp.float32),
        "w1": jnp.asarray(w1_i8),                                # int8 (FLAT_PAD, 384)
        "scale": jnp.asarray(scale.reshape(1, HID_PAD), jnp.float32),
        "b1": jnp.asarray(b1_pad, jnp.float32),
        "w2t": jnp.asarray(w2t, jnp.float32),
        "b2": jnp.asarray(params["b2"], np.float32).reshape(OUT2, 1),
    }
    return kernel_params, w1_deq_torch


# ---- numpy reference (direct ConvTranspose2d definition) -------------------------
def reference_forward(x, p, w1_deq):
    x_np = np.asarray(x, np.float32)
    wt = np.asarray(p["wt"], np.float32)                         # (Cin, Cout, 3, 3)
    y_full = np.zeros((N, C_OUT, OH + 2 * PAD, OW + 2 * PAD), np.float32)
    for kh in range(KH):
        for kw in range(KW):
            contrib = np.einsum("ncij,cd->ndij", x_np, wt[:, :, kh, kw])
            y_full[:, :, kh:kh + STRIDE * (H - 1) + 1:STRIDE,
                         kw:kw + STRIDE * (W - 1) + 1:STRIDE] += contrib
    x2 = y_full[:, :, PAD:PAD + OH, PAD:PAD + OW] \
        + np.asarray(p["bt"], np.float32).reshape(1, C_OUT, 1, 1)
    flat = x2.reshape(-1)
    h = np.maximum(flat @ w1_deq + np.asarray(p["b1"], np.float32).reshape(-1), 0.0)
    return h @ np.asarray(p["w2"], np.float32) + np.asarray(p["b2"], np.float32).reshape(-1)


if __name__ == "__main__":
    key = jax.random.PRNGKey(0)
    kx, kwt, kbt, kw1, kb1, kw2, kb2 = jax.random.split(key, 7)

    x = jax.random.normal(kx, (N, C_IN, H, W), jnp.float32)      # NCHW like PyTorch

    params = {
        # ConvTranspose2d weight has PyTorch layout (in, out, kh, kw)
        "wt": 0.02 * jax.random.normal(kwt, (C_IN, C_OUT, KH, KW), jnp.float32),
        "bt": 0.02 * jax.random.normal(kbt, (C_OUT,), jnp.float32),
        # Linear weights stored as (in, out) for x @ W
        "w1": 0.02 * jax.random.normal(kw1, (FLAT, HID1), jnp.float32),
        "b1": 0.02 * jax.random.normal(kb1, (1, HID1), jnp.float32),
        "w2": 0.02 * jax.random.normal(kw2, (HID1, OUT2), jnp.float32),
        "b2": 0.02 * jax.random.normal(kb2, (1, OUT2), jnp.float32),
    }

    kp, w1_deq = prepare_params(params)
    out = jax.block_until_ready(model_forward(x, kp))
    ref = reference_forward(x, params, w1_deq)
    np.testing.assert_allclose(np.asarray(out), ref, rtol=2e-2, atol=2e-2)
    print("KERNEL_OK")
</pallas_src>

<mosaic_0001>
module attributes {stable_mosaic.version = 11 : i64} {
  func.func @conv_subpixel_kernel(%arg0: memref<2x6x6x480xf32, #tpu.memory_space<vmem>>, %arg1: memref<480x288xf32, #tpu.memory_space<vmem>>, %arg2: memref<2x6x6x24xf32, #tpu.memory_space<vmem>>, %arg3: memref<2x6x5x24xf32, #tpu.memory_space<vmem>>, %arg4: memref<2x5x6x24xf32, #tpu.memory_space<vmem>>, %arg5: memref<2x5x5x24xf32, #tpu.memory_space<vmem>>) attributes {dimension_semantics = [], scalar_prefetch = 0 : i64, scratch_operands = 0 : i64, tpu.core_type = #tpu.core_type<tc>} {
    %c0 = arith.constant 0 : index
    %c0_0 = arith.constant 0 : index
    %c0_1 = arith.constant 0 : index
    %c0_2 = arith.constant 0 : index
    %0 = vector.load %arg0[%c0, %c0_0, %c0_1, %c0_2] : memref<2x6x6x480xf32, #tpu.memory_space<vmem>>, vector<2x6x6x480xf32>
    %c0_3 = arith.constant 0 : index
    %c0_4 = arith.constant 0 : index
    %1 = vector.load %arg1[%c0_3, %c0_4] : memref<480x288xf32, #tpu.memory_space<vmem>>, vector<480x288xf32>
    "tpu.trace_start"() <{level = 10 : i32, message = "nhwc,cd->nhwd"}> : () -> ()
    %cst = arith.constant dense<0.000000e+00> : vector<2x6x6x288xf32>
    %2 = tpu.matmul %0, %1, %cst {dimension_numbers = #tpu.dot_dimension_numbers<[3], [0], [0, 1, 2], [1], [0, 0, 0, 1, 0, 2, 1, 1], [], []>} : vector<2x6x6x480xf32>, vector<480x288xf32>, vector<2x6x6x288xf32> -> vector<2x6x6x288xf32>
    "tpu.trace_stop"() : () -> ()
    %3 = vector.extract_strided_slice %2 {offsets = [0, 0, 0, 128], sizes = [2, 6, 6, 24], strides = [1, 1, 1, 1]} : vector<2x6x6x288xf32> to vector<2x6x6x24xf32>
    %c0_5 = arith.constant 0 : index
    %c0_6 = arith.constant 0 : index
    %c0_7 = arith.constant 0 : index
    %c0_8 = arith.constant 0 : index
    %4 = vector.load %arg2[%c0_5, %c0_6, %c0_7, %c0_8] : memref<2x6x6x24xf32, #tpu.memory_space<vmem>>, vector<2x6x6x24xf32>
    tpu.vector_store %arg2[%c0_5, %c0_6, %c0_7, %c0_8], %3 {strides = array<i32>} : memref<2x6x6x24xf32, #tpu.memory_space<vmem>>, vector<2x6x6x24xf32>,
    %5 = vector.extract_strided_slice %2 {offsets = [0, 0, 0, 96], sizes = [2, 6, 6, 24], strides = [1, 1, 1, 1]} : vector<2x6x6x288xf32> to vector<2x6x6x24xf32>
    %6 = vector.extract_strided_slice %5 {offsets = [0, 0, 1, 0], sizes = [2, 6, 5, 24], strides = [1, 1, 1, 1]} : vector<2x6x6x24xf32> to vector<2x6x5x24xf32>
    %7 = vector.extract_strided_slice %2 {offsets = [0, 0, 0, 160], sizes = [2, 6, 6, 24], strides = [1, 1, 1, 1]} : vector<2x6x6x288xf32> to vector<2x6x6x24xf32>
    %8 = vector.extract_strided_slice %7 {offsets = [0, 0, 0, 0], sizes = [2, 6, 5, 24], strides = [1, 1, 1, 1]} : vector<2x6x6x24xf32> to vector<2x6x5x24xf32>
    %9 = arith.addf %6, %8 : vector<2x6x5x24xf32>
    %c0_9 = arith.constant 0 : index
    %c0_10 = arith.constant 0 : index
    %c0_11 = arith.constant 0 : index
    %c0_12 = arith.constant 0 : index
    %10 = vector.load %arg3[%c0_9, %c0_10, %c0_11, %c0_12] : memref<2x6x5x24xf32, #tpu.memory_space<vmem>>, vector<2x6x5x24xf32>
    tpu.vector_store %arg3[%c0_9, %c0_10, %c0_11, %c0_12], %9 {strides = array<i32>} : memref<2x6x5x24xf32, #tpu.memory_space<vmem>>, vector<2x6x5x24xf32>,
    %11 = vector.extract_strided_slice %2 {offsets = [0, 0, 0, 32], sizes = [2, 6, 6, 24], strides = [1, 1, 1, 1]} : vector<2x6x6x288xf32> to vector<2x6x6x24xf32>
    %12 = vector.extract_strided_slice %11 {offsets = [0, 1, 0, 0], sizes = [2, 5, 6, 24], strides = [1, 1, 1, 1]} : vector<2x6x6x24xf32> to vector<2x5x6x24xf32>
    %13 = vector.extract_strided_slice %2 {offsets = [0, 0, 0, 224], sizes = [2, 6, 6, 24], strides = [1, 1, 1, 1]} : vector<2x6x6x288xf32> to vector<2x6x6x24xf32>
    %14 = vector.extract_strided_slice %13 {offsets = [0, 0, 0, 0], sizes = [2, 5, 6, 24], strides = [1, 1, 1, 1]} : vector<2x6x6x24xf32> to vector<2x5x6x24xf32>
    %15 = arith.addf %12, %14 : vector<2x5x6x24xf32>
    %c0_13 = arith.constant 0 : index
    %c0_14 = arith.constant 0 : index
    %c0_15 = arith.constant 0 : index
    %c0_16 = arith.constant 0 : index
    %16 = vector.load %arg4[%c0_13, %c0_14, %c0_15, %c0_16] : memref<2x5x6x24xf32, #tpu.memory_space<vmem>>, vector<2x5x6x24xf32>
    tpu.vector_store %arg4[%c0_13, %c0_14, %c0_15, %c0_16], %15 {strides = array<i32>} : memref<2x5x6x24xf32, #tpu.memory_space<vmem>>, vector<2x5x6x24xf32>,
    %17 = vector.extract_strided_slice %2 {offsets = [0, 0, 0, 0], sizes = [2, 6, 6, 24], strides = [1, 1, 1, 1]} : vector<2x6x6x288xf32> to vector<2x6x6x24xf32>
    %18 = vector.extract_strided_slice %17 {offsets = [0, 1, 1, 0], sizes = [2, 5, 5, 24], strides = [1, 1, 1, 1]} : vector<2x6x6x24xf32> to vector<2x5x5x24xf32>
    %19 = vector.extract_strided_slice %2 {offsets = [0, 0, 0, 64], sizes = [2, 6, 6, 24], strides = [1, 1, 1, 1]} : vector<2x6x6x288xf32> to vector<2x6x6x24xf32>
    %20 = vector.extract_strided_slice %19 {offsets = [0, 1, 0, 0], sizes = [2, 5, 5, 24], strides = [1, 1, 1, 1]} : vector<2x6x6x24xf32> to vector<2x5x5x24xf32>
    %21 = arith.addf %18, %20 : vector<2x5x5x24xf32>
    %22 = vector.extract_strided_slice %2 {offsets = [0, 0, 0, 192], sizes = [2, 6, 6, 24], strides = [1, 1, 1, 1]} : vector<2x6x6x288xf32> to vector<2x6x6x24xf32>
    %23 = vector.extract_strided_slice %22 {offsets = [0, 0, 1, 0], sizes = [2, 5, 5, 24], strides = [1, 1, 1, 1]} : vector<2x6x6x24xf32> to vector<2x5x5x24xf32>
    %24 = arith.addf %21, %23 : vector<2x5x5x24xf32>
    %25 = vector.extract_strided_slice %2 {offsets = [0, 0, 0, 256], sizes = [2, 6, 6, 24], strides = [1, 1, 1, 1]} : vector<2x6x6x288xf32> to vector<2x6x6x24xf32>
    %26 = vector.extract_strided_slice %25 {offsets = [0, 0, 0, 0], sizes = [2, 5, 5, 24], strides = [1, 1, 1, 1]} : vector<2x6x6x24xf32> to vector<2x5x5x24xf32>
    %27 = arith.addf %24, %26 : vector<2x5x5x24xf32>
    %c0_17 = arith.constant 0 : index
    %c0_18 = arith.constant 0 : index
    %c0_19 = arith.constant 0 : index
    %c0_20 = arith.constant 0 : index
    %28 = vector.load %arg5[%c0_17, %c0_18, %c0_19, %c0_20] : memref<2x5x5x24xf32, #tpu.memory_space<vmem>>, vector<2x5x5x24xf32>
    tpu.vector_store %arg5[%c0_17, %c0_18, %c0_19, %c0_20], %27 {strides = array<i32>} : memref<2x5x5x24xf32, #tpu.memory_space<vmem>>, vector<2x5x5x24xf32>,
    return
  }
}

module attributes {stable_mosaic.version = 11 : i64} {
  func.func @mlp_kernel(%arg0: i32, %arg1: memref<1x1x2912xbf16, #tpu.memory_space<vmem>>, %arg2: memref<2912x384xi8, #tpu.memory_space<vmem>>, %arg3: memref<1x384xf32, #tpu.memory_space<vmem>>, %arg4: memref<1x384xf32, #tpu.memory_space<vmem>>, %arg5: memref<2x384xf32, #tpu.memory_space<vmem>>, %arg6: memref<2x1xf32, #tpu.memory_space<vmem>>, %arg7: memref<2x1xf32, #tpu.memory_space<vmem>>, %arg8: memref<1x384xf32, #tpu.memory_space<vmem>>) attributes {dimension_semantics = [#tpu.dimension_semantics<arbitrary>], iteration_bounds = array<i64: 2>, scalar_prefetch = 0 : i64, scratch_operands = 1 : i64, tpu.core_type = #tpu.core_type<tc>, window_params = [{transform_indices = @transform_0, window_bounds = array<i64: 1, 1, 2912>}, {transform_indices = @transform_1, window_bounds = array<i64: 2912, 384>}, {pipeline_mode = #tpu.pipeline_mode<synchronous>, transform_indices = @transform_2, window_bounds = array<i64: 1, 384>}, {pipeline_mode = #tpu.pipeline_mode<synchronous>, transform_indices = @transform_3, window_bounds = array<i64: 1, 384>}, {pipeline_mode = #tpu.pipeline_mode<synchronous>, transform_indices = @transform_4, window_bounds = array<i64: 2, 384>}, {pipeline_mode = #tpu.pipeline_mode<synchronous>, transform_indices = @transform_5, window_bounds = array<i64: 2, 1>}, {pipeline_mode = #tpu.pipeline_mode<synchronous>, transform_indices = @transform_6, window_bounds = array<i64: 2, 1>}]} {
    %c0_i32 = arith.constant 0 : i32
    %0 = arith.cmpi eq, %arg0, %c0_i32 : i32
    %1 = arith.extui %0 : i1 to i32
    %c0_i32_0 = arith.constant 0 : i32
    %2 = arith.cmpi ne, %1, %c0_i32_0 : i32
    scf.if %2 {
      %cst_10 = arith.constant 0.000000e+00 : f32
      %14 = vector.broadcast %cst_10 : f32 to vector<1x384xf32>
      %c0_11 = arith.constant 0 : index
      %c0_12 = arith.constant 0 : index
      %15 = vector.load %arg8[%c0_11, %c0_12] : memref<1x384xf32, #tpu.memory_space<vmem>>, vector<1x384xf32>
      tpu.vector_store %arg8[%c0_11, %c0_12], %14 {strides = array<i32>} : memref<1x384xf32, #tpu.memory_space<vmem>>, vector<1x384xf32>,
    } else {
    }
    %c0 = arith.constant 0 : index
    %c0_1 = arith.constant 0 : index
    %3 = vector.load %arg8[%c0, %c0_1] : memref<1x384xf32, #tpu.memory_space<vmem>>, vector<1x384xf32>
    %c0_2 = arith.constant 0 : index
    %c0_3 = arith.constant 0 : index
    %c0_4 = arith.constant 0 : index
    %4 = vector.load %arg1[%c0_2, %c0_3, %c0_4] : memref<1x1x2912xbf16, #tpu.memory_space<vmem>>, vector<1x1x2912xbf16>
    %5 = vector.shape_cast %4 : vector<1x1x2912xbf16> to vector<1x2912xbf16>
    %c0_5 = arith.constant 0 : index
    %c0_6 = arith.constant 0 : index
    %6 = vector.load %arg2[%c0_5, %c0_6] : memref<2912x384xi8, #tpu.memory_space<vmem>>, vector<2912x384xi8>
    %7 = arith.sitofp %6 : vector<2912x384xi8> to vector<2912x384xbf16>
    %cst = arith.constant dense<0.000000e+00> : vector<1x384xf32>
    %8 = tpu.matmul %5, %7, %cst {dimension_numbers = #tpu.dot_dimension_numbers<[1], [0], [0], [1], [0, 0, 1, 1], [], []>} : vector<1x2912xbf16>, vector<2912x384xbf16>, vector<1x384xf32> -> vector<1x384xf32>
    %9 = arith.addf %3, %8 : vector<1x384xf32>
    %c0_7 = arith.constant 0 : index
    %c0_8 = arith.constant 0 : index
    %10 = vector.load %arg8[%c0_7, %c0_8] : memref<1x384xf32, #tpu.memory_space<vmem>>, vector<1x384xf32>
    tpu.vector_store %arg8[%c0_7, %c0_8], %9 {strides = array<i32>} : memref<1x384xf32, #tpu.memory_space<vmem>>, vector<1x384xf32>,
    %c1_i32 = arith.constant 1 : i32
    %11 = arith.cmpi eq, %arg0, %c1_i32 : i32
    %12 = arith.extui %11 : i1 to i32
    %c0_i32_9 = arith.constant 0 : i32
    %13 = arith.cmpi ne, %12, %c0_i32_9 : i32
    scf.if %13 {
      %c0_10 = arith.constant 0 : index
      %c0_11 = arith.constant 0 : index
      %14 = vector.load %arg8[%c0_10, %c0_11] : memref<1x384xf32, #tpu.memory_space<vmem>>, vector<1x384xf32>
      %c0_12 = arith.constant 0 : index
      %c0_13 = arith.constant 0 : index
      %15 = vector.load %arg3[%c0_12, %c0_13] : memref<1x384xf32, #tpu.memory_space<vmem>>, vector<1x384xf32>
      %16 = arith.mulf %14, %15 : vector<1x384xf32>
      %c0_14 = arith.constant 0 : index
      %c0_15 = arith.constant 0 : index
      %17 = vector.load %arg4[%c0_14, %c0_15] : memref<1x384xf32, #tpu.memory_space<vmem>>, vector<1x384xf32>
      %18 = arith.addf %16, %17 : vector<1x384xf32>
      %cst_16 = arith.constant 0.000000e+00 : f32
      %19 = vector.broadcast %cst_16 : f32 to vector<1x384xf32>
      %20 = arith.maximumf %18, %19 : vector<1x384xf32>
      %c0_17 = arith.constant 0 : index
      %c0_18 = arith.constant 0 : index
      %21 = vector.load %arg5[%c0_17, %c0_18] : memref<2x384xf32, #tpu.memory_space<vmem>>, vector<2x384xf32>
      %22 = vector.broadcast %20 : vector<1x384xf32> to vector<2x384xf32>
      %23 = arith.mulf %22, %21 : vector<2x384xf32>
      %cst_19 = arith.constant dense<0.000000e+00> : vector<2xf32>
      %24 = vector.multi_reduction <add>, %23, %cst_19 [1] : vector<2x384xf32> to vector<2xf32>
      %25 = vector.shape_cast %24 : vector<2xf32> to vector<2x1xf32>
      %c0_20 = arith.constant 0 : index
      %c0_21 = arith.constant 0 : index
      %26 = vector.load %arg6[%c0_20, %c0_21] : memref<2x1xf32, #tpu.memory_space<vmem>>, vector<2x1xf32>
      %27 = arith.addf %25, %26 : vector<2x1xf32>
      %c0_22 = arith.constant 0 : index
      %c0_23 = arith.constant 0 : index
      %28 = vector.load %arg7[%c0_22, %c0_23] : memref<2x1xf32, #tpu.memory_space<vmem>>, vector<2x1xf32>
      tpu.vector_store %arg7[%c0_22, %c0_23], %27 {strides = array<i32>} : memref<2x1xf32, #tpu.memory_space<vmem>>, vector<2x1xf32>,
    } else {
    }
    return
  }
  func.func @transform_0(%arg0: i32) -> (i32, i32, i32) {
    %c0_i32 = arith.constant 0 : i32
    %c0_i32_0 = arith.constant 0 : i32
    %c0_i32_1 = arith.constant 0 : i32
    return %arg0, %c0_i32, %c0_i32_0 : i32, i32, i32
  }
  func.func @transform_1(%arg0: i32) -> (i32, i32) {
    %c0_i32 = arith.constant 0 : i32
    %c0_i32_0 = arith.constant 0 : i32
    return %arg0, %c0_i32 : i32, i32
  }
  func.func @transform_2(%arg0: i32) -> (i32, i32) {
    %c0_i32 = arith.constant 0 : i32
    %c0_i32_0 = arith.constant 0 : i32
    %c0_i32_1 = arith.constant 0 : i32
    return %c0_i32, %c0_i32_0 : i32, i32
  }
  func.func @transform_3(%arg0: i32) -> (i32, i32) {
    %c0_i32 = arith.constant 0 : i32
    %c0_i32_0 = arith.constant 0 : i32
    %c0_i32_1 = arith.constant 0 : i32
    return %c0_i32, %c0_i32_0 : i32, i32
  }
  func.func @transform_4(%arg0: i32) -> (i32, i32) {
    %c0_i32 = arith.constant 0 : i32
    %c0_i32_0 = arith.constant 0 : i32
    %c0_i32_1 = arith.constant 0 : i32
    return %c0_i32, %c0_i32_0 : i32, i32
  }
  func.func @transform_5(%arg0: i32) -> (i32, i32) {
    %c0_i32 = arith.constant 0 : i32
    %c0_i32_0 = arith.constant 0 : i32
    %c0_i32_1 = arith.constant 0 : i32
    return %c0_i32, %c0_i32_0 : i32, i32
  }
  func.func @transform_6(%arg0: i32) -> (i32, i32) {
    %c0_i32 = arith.constant 0 : i32
    %c0_i32_0 = arith.constant 0 : i32
    %c0_i32_1 = arith.constant 0 : i32
    return %c0_i32, %c0_i32_0 : i32, i32
  }
}

</mosaic_0001>

<bundles_post_ra>
// kernel: model_forward.2
= control target key start
LH: loop header
LB: loop body
LE: loop exit
PB: predicated region body
PF: predicated region fallthrough
CT: control target
= control target key end

     0   :  { %v3901_v60 = vmov 1983009808   ;;  %v298_v62 = vlaneseq  ;;  %vm1062_vm0 = vcmask 785408   ;;  %vm2121_vm1 = vcmask 193536   ;;  %s3905_s21 = smov 32   ;;  %s6103_s1 = inlined_call_operand.vmem [shape: f32[480,288], index: 1, kind: input, shape index: {}]   ;;  %s6104_s0 = inlined_call_operand.vmem [shape: f32[2,6,6,480], index: 0, kind: input, shape index: {}]   ;;  %s6105_s2 = inlined_call_operand.vmem [shape: f32[2,6,6,24], index: 2, kind: output, shape index: {0}]   ;;  %s6106_s5 = inlined_call_operand.vmem [shape: f32[2,5,5,24], index: 5, kind: output, shape index: {3}]   ;;  %s6107_s4 = inlined_call_operand.vmem [shape: f32[2,5,6,24], index: 4, kind: output, shape index: {2}]   ;;  %s6108_s3 = inlined_call_operand.vmem [shape: f32[2,6,5,24], index: 3, kind: output, shape index: {1}]  }
   0x1   :  { %v64_v0 = vld [vmem:[%s6103_s1 + $0x8] sm:$0xff]  ;;  %v67_v1 = vld [vmem:[%s6103_s1 + $0x20] sm:$0xff]  ;;  %v113_v2 = vld [vmem:[%s6103_s1 + $0x190] sm:$0xff]  ;;  %v296_v61 = vunpack.c.l.s4 %v3901_v60  ;;  %vm2134_vm2 = vcmask 1040384   ;;  %vm2135_vm3 = vcmask 1042434   ;;  %vm2137_vm4 = vcmask 1044484  }
   0x2   :  { %v3612_v3 = vpack.c.bf16 %v67_v1, %v64_v0  ;;  %v116_v4 = vld [vmem:[%s6103_s1 + $0x1a8] sm:$0xff]  ;;  %v63_v5 = vld [vmem:[%s6103_s1] sm:$0xff]  ;;  %v66_v6 = vld [vmem:[%s6103_s1 + $0x18] sm:$0xff]  ;;  %vm2139_vm5 = vcmask 1046534   ;;  %vm2333_vm9 = vcmask 523264   ;;  %vm2706_vm10 = vcmask 193537  }
   0x3   :  { %v3732_v7 = vpack.c.bf16 %v116_v4, %v113_v2  ;;  %v3614_v8 = vpack.c.bf16 %v66_v6, %v63_v5  ;;  %v65_v9 = vld [vmem:[%s6103_s1 + $0x10] sm:$0xff]  ;;  %v68_v10 = vld [vmem:[%s6103_s1 + $0x28] sm:$0xff]  ;;  %v70_v11 = vld [vmem:[%s6103_s1 + $0x38] sm:$0xff] }
   0x4   :  { %3613 = vmatprep.subr.bf16.mxu0 %v3612_v3  ;;  %v3734_v12 = vpack.c.bf16 %v68_v10, %v65_v9  ;;  %v73_v13 = vld [vmem:[%s6103_s1 + $0x50] sm:$0xff]  ;;  %v119_v14 = vld [vmem:[%s6103_s1 + $0x1c0] sm:$0xff]  ;;  %v122_v15 = vld [vmem:[%s6103_s1 + $0x1d8] sm:$0xff] }
   0x5   :  { %3733 = vmatprep.subr.bf16.mxu1 %v3732_v7  ;;  %3615 = vmatpush1.bf16.msra.mxu0 %v3614_v8  ;;  %v3616_v16 = vpack.c.bf16 %v73_v13, %v70_v11  ;;  %v3736_v17 = vpack.c.bf16 %v122_v15, %v119_v14  ;;  %v69_v18 = vld [vmem:[%s6103_s1 + $0x30] sm:$0xff]  ;;  %v72_v19 = vld [vmem:[%s6103_s1 + $0x48] sm:$0xff]  ;;  %v71_v20 = vld [vmem:[%s6103_s1 + $0x40] sm:$0xff]  ;;  %v299_v13 = vshrl.u32 %v298_v62, 7 }
   0x6   :  { %3735 = vmatpush3.bf16.msra.mxu1 %v3734_v12  ;;  %v3618_v21 = vpack.c.bf16 %v72_v19, %v69_v18  ;;  %v74_v22 = vld [vmem:[%s6103_s1 + $0x58] sm:$0xff]  ;;  %v76_v23 = vld [vmem:[%s6103_s1 + $0x68] sm:$0xff]  ;;  %v79_v24 = vld [vmem:[%s6103_s1 + $0x80] sm:$0xff]  ;;  %v297_v12 = vunpack.c.0.s8 %v296_v61 }
   0x7   :  { %3617 = vmatprep.subr.bf16.mxu0 %v3616_v16  ;;  %3737 = vmatprep.subr.bf16.mxu1 %v3736_v17  ;;  %v3738_v25 = vpack.c.bf16 %v74_v22, %v71_v20  ;;  %v3620_v26 = vpack.c.bf16 %v79_v24, %v76_v23  ;;  %v125_v27 = vld [vmem:[%s6103_s1 + $0x1f0] sm:$0xff]  ;;  %v128_v28 = vld [vmem:[%s6103_s1 + $0x208] sm:$0xff]  ;;  %v75_v29 = vld [vmem:[%s6103_s1 + $0x60] sm:$0xff] }
   0x8   :  { %v3740_v30 = vpack.c.bf16 %v128_v28, %v125_v27  ;;  %v78_v31 = vld [vmem:[%s6103_s1 + $0x78] sm:$0xff]  ;;  %v77_v32 = vld [vmem:[%s6103_s1 + $0x70] sm:$0xff]  ;;  %v80_v33 = vld [vmem:[%s6103_s1 + $0x88] sm:$0xff]  ;;  %v4116_v27 = vsub.s32 %v297_v12, %v299_v13 }
   0x9   :  { %3619 = vmatpush1.bf16.msra.mxu0 %v3618_v21  ;;  %v3622_v34 = vpack.c.bf16 %v78_v31, %v75_v29  ;;  %v82_v35 = vld [vmem:[%s6103_s1 + $0x98] sm:$0xff]  ;;  %v85_v36 = vld [vmem:[%s6103_s1 + $0xb0] sm:$0xff]  ;;  %v131_v37 = vld [vmem:[%s6103_s1 + $0x220] sm:$0xff]  ;;  %v3742_v38 = vpack.c.bf16 %v80_v33, %v77_v32 }
   0xa   :  { %3739 = vmatpush3.bf16.msra.mxu1 %v3738_v25  ;;  %3621 = vmatprep.subr.bf16.mxu0 %v3620_v26  ;;  %v3624_v39 = vpack.c.bf16 %v85_v36, %v82_v35  ;;  %v134_v40 = vld [vmem:[%s6103_s1 + $0x238] sm:$0xff]  ;;  %v81_v41 = vld [vmem:[%s6103_s1 + $0x90] sm:$0xff]  ;;  %v84_v42 = vld [vmem:[%s6103_s1 + $0xa8] sm:$0xff] }
   0xb   :  { %3741 = vmatprep.subr.bf16.mxu1 %v3740_v30  ;;  %v3744_v43 = vpack.c.bf16 %v134_v40, %v131_v37  ;;  %v83_v44 = vld [vmem:[%s6103_s1 + $0xa0] sm:$0xff]  ;;  %v86_v45 = vld [vmem:[%s6103_s1 + $0xb8] sm:$0xff]  ;;  %v88_v46 = vld [vmem:[%s6103_s1 + $0xc8] sm:$0xff]  ;;  %v3626_v50 = vpack.c.bf16 %v84_v42, %v81_v41 }
   0xc   :  { %v91_v47 = vld [vmem:[%s6103_s1 + $0xe0] sm:$0xff]  ;;  %v137_v48 = vld [vmem:[%s6103_s1 + $0x250] sm:$0xff]  ;;  %v140_v49 = vld [vmem:[%s6103_s1 + $0x268] sm:$0xff]  ;;  %v3746_v51 = vpack.c.bf16 %v86_v45, %v83_v44 }
   0xd   :  { %3623 = vmatpush1.bf16.msra.mxu0 %v3622_v34  ;;  %v3628_v52 = vpack.c.bf16 %v91_v47, %v88_v46  ;;  %v87_v53 = vld [vmem:[%s6103_s1 + $0xc0] sm:$0xff]  ;;  %v90_v54 = vld [vmem:[%s6103_s1 + $0xd8] sm:$0xff]  ;;  %v89_v55 = vld [vmem:[%s6103_s1 + $0xd0] sm:$0xff]  ;;  %v3748_v56 = vpack.c.bf16 %v140_v49, %v137_v48 }
   0xe   :  { %3743 = vmatpush3.bf16.msra.mxu1 %v3742_v38  ;;  %3625 = vmatprep.subr.bf16.mxu0 %v3624_v39  ;;  %v92_v57 = vld [vmem:[%s6103_s1 + $0xe8] sm:$0xff]  ;;  %v94_v58 = vld [vmem:[%s6103_s1 + $0xf8] sm:$0xff]  ;;  %v97_v59 = vld [vmem:[%s6103_s1 + $0x110] sm:$0xff]  ;;  %v3630_v1 = vpack.c.bf16 %v90_v54, %v87_v53 }
   0xf   :  { %3745 = vmatprep.subr.bf16.mxu1 %v3744_v43  ;;  %v143_v63 = vld [vmem:[%s6103_s1 + $0x280] sm:$0xff]  ;;  %v146_v0 = vld [vmem:[%s6103_s1 + $0x298] sm:$0xff]  ;;  %v93_v2 = vld [vmem:[%s6103_s1 + $0xf0] sm:$0xff]  ;;  %v3750_v3 = vpack.c.bf16 %v92_v57, %v89_v55  ;;  %v3632_v4 = vpack.c.bf16 %v97_v59, %v94_v58 }
  0x10   :  { %v96_v5 = vld [vmem:[%s6103_s1 + $0x108] sm:$0xff]  ;;  %v95_v6 = vld [vmem:[%s6103_s1 + $0x100] sm:$0xff]  ;;  %v98_v7 = vld [vmem:[%s6103_s1 + $0x118] sm:$0xff]  ;;  %v3752_v8 = vpack.c.bf16 %v146_v0, %v143_v63 }
  0x11   :  { %3627 = vmatpush1.bf16.msra.mxu0 %v3626_v50  ;;  %v100_v9 = vld [vmem:[%s6103_s1 + $0x128] sm:$0xff]  ;;  %v103_v10 = vld [vmem:[%s6103_s1 + $0x140] sm:$0xff]  ;;  %v149_v11 = vld [vmem:[%s6103_s1 + $0x2b0] sm:$0xff]  ;;  %v3634_v17 = vpack.c.bf16 %v96_v5, %v93_v2  ;;  %v3754_v21 = vpack.c.bf16 %v98_v7, %v95_v6  ;;  %v3902_v5 = vmov 0.0|0.0  }
  0x12   :  { %3747 = vmatpush3.bf16.msra.mxu1 %v3746_v51  ;;  %3629 = vmatprep.subr.bf16.mxu0 %v3628_v52  ;;  %v152_v14 = vld [vmem:[%s6103_s1 + $0x2c8] sm:$0xff]  ;;  %v99_v15 = vld [vmem:[%s6103_s1 + $0x120] sm:$0xff]  ;;  %v102_v16 = vld [vmem:[%s6103_s1 + $0x138] sm:$0xff]  ;;  %v3636_v22 = vpack.c.bf16 %v103_v10, %v100_v9 }
  0x13   :  { %3749 = vmatprep.subr.bf16.mxu1 %v3748_v56  ;;  %v101_v18 = vld [vmem:[%s6103_s1 + $0x130] sm:$0xff]  ;;  %v104_v19 = vld [vmem:[%s6103_s1 + $0x148] sm:$0xff]  ;;  %v106_v20 = vld [vmem:[%s6103_s1 + $0x158] sm:$0xff]  ;;  %v3756_v26 = vpack.c.bf16 %v152_v14, %v149_v11  ;;  %v3638_v29 = vpack.c.bf16 %v102_v16, %v99_v15 }
  0x14   :  { %v109_v23 = vld [vmem:[%s6103_s1 + $0x170] sm:$0xff]  ;;  %v155_v24 = vld [vmem:[%s6103_s1 + $0x2e0] sm:$0xff]  ;;  %v158_v25 = vld [vmem:[%s6103_s1 + $0x2f8] sm:$0xff]  ;;  %v3758_v33 = vpack.c.bf16 %v104_v19, %v101_v18 }
  0x15   :  { %3631 = vmatpush1.bf16.msra.mxu0 %v3630_v1  ;;  %v105_v28 = vld [vmem:[%s6103_s1 + $0x150] sm:$0xff]  ;;  %v108_v30 = vld [vmem:[%s6103_s1 + $0x168] sm:$0xff]  ;;  %v3640_v34 = vpack.c.bf16 %v109_v23, %v106_v20  ;;  %v107_v35 = vld [vmem:[%s6103_s1 + $0x160] sm:$0xff]  ;;  %v3760_v38 = vpack.c.bf16 %v158_v25, %v155_v24 }
  0x16   :  { %3751 = vmatpush3.bf16.msra.mxu1 %v3750_v3  ;;  %3633 = vmatprep.subr.bf16.mxu0 %v3632_v4  ;;  %v3829_v31 = vld [vmem:[%s6104_s0] ss:$8 sps:$4 sm:$0xff]   ;;  %v3831_v32 = vld [vmem:[%s6104_s0 + $0x4] ss:$8 sps:$4 sm:$0x33]   ;;  %v110_v36 = vld [vmem:[%s6103_s1 + $0x178] sm:$0xff]  ;;  %v3642_v46 = vpack.c.bf16 %v108_v30, %v105_v28 }
  0x17   :  { %3753 = vmatprep.subr.bf16.mxu1 %v3752_v8  ;;  %v3832_v37 = vld [vmem:[%s6104_s0 + $0x20] ss:$8 sps:$4 sm:$0xff]   ;;  %v301_v41 = vrot.slane %v3829_v31, %v4116_v27  ;;  %v308_v42 = vrot.slane %v3831_v32, %v4116_v27  ;;  %v3835_v43 = vld [vmem:[%s6104_s0 + $0x30] ss:$8 sps:$4 sm:$0xff]   ;;  %v3762_v47 = vpack.c.bf16 %v110_v36, %v107_v35  ;;  %vm5031_vm6 = vmor %vm2134_vm2, %vm2135_vm3 }
  0x18   :  { %v112_v39 = vld [vmem:[%s6103_s1 + $0x188] sm:$0xff]  ;;  %v115_v40 = vld [vmem:[%s6103_s1 + $0x1a0] sm:$0xff]  ;;  %v336_v45 = vrot.slane %v3832_v37, %v4116_v27  ;;  %v4155_v48 = vrot.slane %v3835_v43, %v4116_v27  ;;  %v114_v53 = vld [vmem:[%s6103_s1 + $0x198] sm:$0xff] }
  0x19   :  { %3635 = vmatpush1.bf16.msra.mxu0 %v3634_v17  ;;  %v3834_v44 = vld [vmem:[%s6104_s0 + $0x24] ss:$8 sps:$4 sm:$0x33]   ;;  %v3644_v50 = vpack.c.bf16 %v115_v40, %v112_v39  ;;  %v721_v52 = vrot.slane %v301_v41, %v4116_v27  ;;  %v161_v54 = vld [vmem:[%s6103_s1 + $0x310] sm:$0xff]  ;;  %v118_v56 = vld [vmem:[%s6103_s1 + $0x1b8] sm:$0xff] }
  0x1a   :  { %3755 = vmatpush3.bf16.msra.mxu1 %v3754_v21  ;;  %3637 = vmatprep.subr.bf16.mxu0 %v3636_v22  ;;  %v111_v49 = vld [vmem:[%s6103_s1 + $0x180] sm:$0xff]  ;;  %v3505_v51 = vcombine.low %v308_v42, %v336_v45  ;;  %v164_v55 = vld [vmem:[%s6103_s1 + $0x328] sm:$0xff]  ;;  %v121_v57 = vld [vmem:[%s6103_s1 + $0x1d0] sm:$0xff]  ;;  %v359_v58 = vcombine.high %v336_v45, %v4155_v48  ;;  %v4179_v60 = vrot.slane %v3834_v44, %v4116_v27 }
  0x1b   :  { %3757 = vmatprep.subr.bf16.mxu1 %v3756_v26  ;;  %v3646_v61 = vpack.c.bf16 %v114_v53, %v111_v49  ;;  %v3765_v62 = vpack.c.bf16 %v164_v55, %v161_v54  ;;  %v3648_v1 = vpack.c.bf16 %v121_v57, %v118_v56  ;;  %v117_v2 = vld [vmem:[%s6103_s1 + $0x1b0] sm:$0xff]  ;;  %v120_v3 = vld [vmem:[%s6103_s1 + $0x1c8] sm:$0xff]  ;;  %v167_v4 = vld [vmem:[%s6103_s1 + $0x340] sm:$0xff] }
  0x1c   :  { %v735_v59 = vrot.slane %v3505_v51, %v4116_v27  ;;  %v170_v6 = vld [vmem:[%s6103_s1 + $0x358] sm:$0xff]  ;;  %v124_v7 = vld [vmem:[%s6103_s1 + $0x1e8] sm:$0xff]  ;;  %v127_v8 = vld [vmem:[%s6103_s1 + $0x200] sm:$0xff]  ;;  %v3507_v9 = vcombine.low %v359_v58, %v4179_v60  ;;  %v3650_v10 = vpack.c.bf16 %v120_v3, %v117_v2 }
  0x1d   :  { %3639 = vmatpush1.bf16.msra.mxu0 %v3638_v29  ;;  %v123_v11 = vld [vmem:[%s6103_s1 + $0x1e0] sm:$0xff]  ;;  %v126_v12 = vld [vmem:[%s6103_s1 + $0x1f8] sm:$0xff]  ;;  %v173_v13 = vld [vmem:[%s6103_s1 + $0x370] sm:$0xff]  ;;  %v3768_v14 = vpack.c.bf16 %v170_v6, %v167_v4  ;;  %v3652_v15 = vpack.c.bf16 %v127_v8, %v124_v7 }
  0x1e   :  { %3759 = vmatpush3.bf16.msra.mxu1 %v3758_v33  ;;  %3641 = vmatprep.subr.bf16.mxu0 %v3640_v34  ;;  %v744_v63 = vcombine.high %v721_v52, %v735_v59  ;;  %v4181_v0 = vcombine.low %v721_v52, %v735_v59  ;;  %v3838_v16 = vld [vmem:[%s6104_s0 + $0x40] ss:$8 sps:$4 sm:$0xff]   ;;  %v130_v18 = vld [vmem:[%s6103_s1 + $0x218] sm:$0xff]  ;;  %v133_v19 = vld [vmem:[%s6103_s1 + $0x230] sm:$0xff]  ;;  %v757_v25 = vrot.slane %v3507_v9, %v4116_v27 }
  0x1f   :  { %3761 = vmatprep.subr.bf16.mxu1 %v3760_v38  ;;  %v176_v17 = vld [vmem:[%s6103_s1 + $0x388] sm:$0xff]  ;;  %v129_v20 = vld [vmem:[%s6103_s1 + $0x210] sm:$0xff]  ;;  %v179_v22 = vld [vmem:[%s6103_s1 + $0x3a0] sm:$0xff]  ;;  %v371_v24 = vrot.slane %v3838_v16, %v4116_v27  ;;  %v3654_v26 = vpack.c.bf16 %v126_v12, %v123_v11  ;;  %v3656_v31 = vpack.c.bf16 %v133_v19, %v130_v18 }
  0x20   :  { %1383 = vmatprep.mubr.f32.mxu1 %v744_v63  ;;  %1145 = vmatprep.mubr.f32.mxu0 %v744_v63  ;;  %v132_v21 = vld [vmem:[%s6103_s1 + $0x228] sm:$0xff]  ;;  %v182_v23 = vld [vmem:[%s6103_s1 + $0x3b8] sm:$0xff]  ;;  %v139_v29 = vld [vmem:[%s6103_s1 + $0x260] sm:$0xff]  ;;  %v3771_v30 = vpack.c.bf16 %v176_v17, %v173_v13 }
  0x21   :  { %3643 = vmatpush1.bf16.msra.mxu0 %v3642_v46  ;;  %v136_v28 = vld [vmem:[%s6103_s1 + $0x248] sm:$0xff]  ;;  %v771_v32 = vrot.slane %v371_v24, %v4116_v27  ;;  %v135_v36 = vld [vmem:[%s6103_s1 + $0x240] sm:$0xff]  ;;  %v3844_v39 = vld [vmem:[%s6104_s0 + $0x70] ss:$8 sps:$4 sm:$0xff]   ;;  %v3658_v41 = vpack.c.bf16 %v132_v21, %v129_v20  ;;  %v3774_v42 = vpack.c.bf16 %v182_v23, %v179_v22 }
  0x22   :  { %3763 = vmatpush3.bf16.msra.mxu1 %v3762_v47  ;;  %3645 = vmatprep.subr.bf16.mxu0 %v3644_v50  ;;  %v3841_v33 = vld [vmem:[%s6104_s0 + $0x60] ss:$8 sps:$4 sm:$0xff]   ;;  %v3840_v34 = vld [vmem:[%s6104_s0 + $0x44] ss:$8 sps:$4 sm:$0x33]   ;;  %v138_v43 = vld [vmem:[%s6103_s1 + $0x258] sm:$0xff]  ;;  %v3660_v47 = vpack.c.bf16 %v139_v29, %v136_v28  ;;  %v4288_v52 = vrot.slane %v3844_v39, %v4116_v27 }
  0x23   :  { %3764 = vmatprep.subr.bf16.mxu1 %v3902_v5  ;;  %v3843_v35 = vld [vmem:[%s6104_s0 + $0x64] ss:$8 sps:$4 sm:$0x33]   ;;  %v4260_v37 = vcombine.high %v757_v25, %v771_v32  ;;  %v4262_v38 = vcombine.low %v757_v25, %v771_v32  ;;  %v406_v40 = vrot.slane %v3841_v33, %v4116_v27  ;;  %v185_v44 = vld [vmem:[%s6103_s1 + $0x3d0] sm:$0xff]  ;;  %v378_v46 = vrot.slane %v3840_v34, %v4116_v27  ;;  %v142_v49 = vld [vmem:[%s6103_s1 + $0x278] sm:$0xff] }
  0x24   :  { %v188_v45 = vld [vmem:[%s6103_s1 + $0x3e8] sm:$0xff]  ;;  %v145_v50 = vld [vmem:[%s6103_s1 + $0x290] sm:$0xff]  ;;  %v4285_v51 = vrot.slane %v3843_v35, %v4116_v27  ;;  %v3662_v58 = vpack.c.bf16 %v138_v43, %v135_v36  ;;  %v191_v63 = vld [vmem:[%s6103_s1 + $0x400] sm:$0xff] }
  0x25   :  { %3647 = vmatpush1.bf16.msra.mxu0 %v3646_v61  ;;  %1384 = vmatmul.mubr.f32.vlgmr.msra.gmra.mrb[0].mxu1 %v4181_v0  ;;  %v3509_v53 = vcombine.low %v378_v46, %v406_v40  ;;  %v141_v54 = vld [vmem:[%s6103_s1 + $0x270] sm:$0xff]  ;;  %v429_v55 = vcombine.high %v406_v40, %v4288_v52  ;;  %v3847_v56 = vld [vmem:[%s6104_s0 + $0x80] ss:$8 sps:$4 sm:$0xff]   ;;  %v3849_v57 = vld [vmem:[%s6104_s0 + $0x84] ss:$8 sps:$4 sm:$0x33]   ;;  %v3777_v59 = vpack.c.bf16 %v188_v45, %v185_v44 }
  0x26   :  { %3766 = vmatpush1.bf16.msra.mxu1 %v3765_v62  ;;  %3649 = vmatprep.subr.bf16.mxu0 %v3648_v1  ;;  %v3664_v61 = vpack.c.bf16 %v145_v50, %v142_v49  ;;  %v144_v62 = vld [vmem:[%s6103_s1 + $0x288] sm:$0xff]  ;;  %v194_v3 = vld [vmem:[%s6103_s1 + $0x418] sm:$0xff]  ;;  %v151_v6 = vld [vmem:[%s6103_s1 + $0x2c0] sm:$0xff]  ;;  %v441_v8 = vrot.slane %v3847_v56, %v4116_v27  ;;  %v448_v9 = vrot.slane %v3849_v57, %v4116_v27 }
  0x27   :  { %3767 = vmatprep.subr.bf16.mxu1 %v3902_v5  ;;  %1388 = vmatprep.mubr.f32.mxu1 %v4260_v37  ;;  %v793_v1 = vrot.slane %v3509_v53, %v4116_v27  ;;  %v3850_v2 = vld [vmem:[%s6104_s0 + $0xa0] ss:$8 sps:$4 sm:$0xff]   ;;  %v3511_v7 = vcombine.low %v429_v55, %v4285_v51  ;;  %v3852_v12 = vld [vmem:[%s6104_s0 + $0xa4] ss:$8 sps:$4 sm:$0x33]   ;;  %v3666_v13 = vpack.c.bf16 %v144_v62, %v141_v54  ;;  %v150_v16 = vld [vmem:[%s6103_s1 + $0x2b8] sm:$0xff] }
  0x28   :  { %v148_v4 = vld [vmem:[%s6103_s1 + $0x2a8] sm:$0xff]  ;;  %v829_v18 = vrot.slane %v441_v8, %v4116_v27  ;;  %v3853_v19 = vld [vmem:[%s6104_s0 + $0xb0] ss:$8 sps:$4 sm:$0xff]   ;;  %v203_v45 = vld [vmem:[%s6103_s1 + $0x460] sm:$0xff] }
  0x29   :  { %3651 = vmatpush1.bf16.msra.mxu0 %v3650_v10  ;;  %1389 = vmatmul.mubr.f32.gmra.mrb[2].mxu1 %v4262_v38  ;;  %v476_v10 = vrot.slane %v3850_v2, %v4116_v27  ;;  %v807_v11 = vrot.slane %v3511_v7, %v4116_v27  ;;  %v3668_v20 = vpack.c.bf16 %v151_v6, %v148_v4  ;;  %v197_v21 = vld [vmem:[%s6103_s1 + $0x430] sm:$0xff]  ;;  %v200_v22 = vld [vmem:[%s6103_s1 + $0x448] sm:$0xff]  ;;  %v206_v50 = vld [vmem:[%s6103_s1 + $0x478] sm:$0xff] }
  0x2a   :  { %3769 = vmatpush1.bf16.msra.mxu1 %v3768_v14  ;;  %3653 = vmatprep.subr.bf16.mxu0 %v3652_v15  ;;  %v3780_v14 = vpack.c.bf16 %v194_v3, %v191_v63  ;;  %v147_v15 = vld [vmem:[%s6103_s1 + $0x2a0] sm:$0xff]  ;;  %v157_v28 = vld [vmem:[%s6103_s1 + $0x2f0] sm:$0xff]  ;;  %v156_v35 = vld [vmem:[%s6103_s1 + $0x2e8] sm:$0xff]  ;;  %v3783_v43 = vpack.c.bf16 %v200_v22, %v197_v21  ;;  %v3786_v4 = vpack.c.bf16 %v206_v50, %v203_v45 }
  0x2b   :  { %3770 = vmatprep.subr.bf16.mxu1 %v3902_v5  ;;  %v3513_v17 = vcombine.low %v448_v9, %v476_v10  ;;  %v4347_v23 = vcombine.high %v793_v1, %v807_v11  ;;  %v4349_v24 = vcombine.low %v793_v1, %v807_v11  ;;  %v3856_v25 = vld [vmem:[%s6104_s0 + $0xc0] ss:$8 sps:$4 sm:$0xff]   ;;  %v3670_v32 = vpack.c.bf16 %v150_v16, %v147_v15  ;;  %v153_v33 = vld [vmem:[%s6103_s1 + $0x2d0] sm:$0xff]  ;;  %v174_v50 = vld [vmem:[%s6103_s1 + $0x378] sm:$0xff] }
  0x2c   :  { %v511_v34 = vrot.slane %v3856_v25, %v4116_v27  ;;  %v3862_v49 = vld [vmem:[%s6104_s0 + $0xf0] ss:$8 sps:$4 sm:$0xff]   ;;  %v160_v53 = vld [vmem:[%s6103_s1 + $0x308] sm:$0xff]  ;;  %v163_v54 = vld [vmem:[%s6103_s1 + $0x320] sm:$0xff]  ;;  %v3674_v63 = vpack.c.bf16 %v156_v35, %v153_v33 }
  0x2d   :  { %3655 = vmatpush1.bf16.msra.mxu0 %v3654_v26  ;;  %v154_v26 = vld [vmem:[%s6103_s1 + $0x2d8] sm:$0xff]  ;;  %v843_v29 = vrot.slane %v3513_v17, %v4116_v27  ;;  %1393 = vmatprep.mubr.f32.mxu1 %v4347_v23  ;;  %v4422_v62 = vrot.slane %v3862_v49, %v4116_v27  ;;  %v209_v1 = vld [vmem:[%s6103_s1 + $0x490] sm:$0xff]  ;;  %v3676_v6 = vpack.c.bf16 %v163_v54, %v160_v53  ;;  %v212_v7 = vld [vmem:[%s6103_s1 + $0x4a8] sm:$0xff] }
  0x2e   :  { %3772 = vmatpush1.bf16.msra.mxu1 %v3771_v30  ;;  %3657 = vmatprep.subr.bf16.mxu0 %v3656_v31  ;;  %v4363_v30 = vrot.slane %v3852_v12, %v4116_v27  ;;  %v4366_v31 = vrot.slane %v3853_v19, %v4116_v27  ;;  %v3672_v44 = vpack.c.bf16 %v157_v28, %v154_v26  ;;  %v3865_v9 = vld [vmem:[%s6104_s0 + $0x100] ss:$8 sps:$4 sm:$0xff]   ;;  %v166_v12 = vld [vmem:[%s6103_s1 + $0x338] sm:$0xff]  ;;  %v165_v17 = vld [vmem:[%s6103_s1 + $0x330] sm:$0xff] }
  0x2f   :  { %3773 = vmatprep.subr.bf16.mxu1 %v3902_v5  ;;  %1394 = vmatmul.mubr.f32.gmra.mrb[4].mxu1 %v4349_v24  ;;  %v4377_v36 = vcombine.high %v829_v18, %v843_v29  ;;  %v4379_v39 = vcombine.low %v829_v18, %v843_v29  ;;  %v879_v46 = vrot.slane %v511_v34, %v4116_v27  ;;  %v3868_v15 = vld [vmem:[%s6104_s0 + $0x120] ss:$8 sps:$4 sm:$0xff]   ;;  %v4456_v16 = vld [vmem:[%s6104_s0 + $0x34] ss:$8 sps:$4 sm:$0x33]   ;;  %vm5061_vm7 = vmor %vm5031_vm6, %vm2137_vm4 }
  0x30   :  { %v499_v40 = vcombine.high %v476_v10, %v4366_v31  ;;  %v3867_v10 = vld [vmem:[%s6104_s0 + $0x104] ss:$8 sps:$4 sm:$0x33]   ;;  %v581_v21 = vrot.slane %v3865_v9, %v4116_v27  ;;  %v218_v28 = vld [vmem:[%s6103_s1 + $0x4d8] sm:$0xff]  ;;  %v616_v29 = vrot.slane %v3868_v15, %v4116_v27  ;;  %v4510_v53 = vld [vmem:[%s6103_s1 + $0x4f0] sm:$0xff] }
  0x31   :  { %3659 = vmatpush1.bf16.msra.mxu0 %v3658_v41  ;;  %v3858_v41 = vld [vmem:[%s6104_s0 + $0xc4] ss:$8 sps:$4 sm:$0x33]   ;;  %1398 = vmatprep.mubr.f32.mxu1 %v4377_v36  ;;  %v588_v22 = vrot.slane %v3867_v10, %v4116_v27  ;;  %v3871_v45 = vld [vmem:[%s6104_s0 + $0x130] ss:$8 sps:$4 sm:$0xff]   ;;  %vm5095_vm8 = vmor %vm5061_vm7, %vm2139_vm5 }
  0x32   :  { %3775 = vmatpush1.bf16.msra.mxu1 %v3774_v42  ;;  %3661 = vmatprep.subr.bf16.mxu0 %v3660_v47  ;;  %v3859_v42 = vld [vmem:[%s6104_s0 + $0xe0] ss:$8 sps:$4 sm:$0xff]   ;;  %v3861_v47 = vld [vmem:[%s6104_s0 + $0xe4] ss:$8 sps:$4 sm:$0x33]   ;;  %v3515_v55 = vcombine.low %v499_v40, %v4363_v30  ;;  %v518_v56 = vrot.slane %v3858_v41, %v4116_v27  ;;  %v4556_v15 = vld [vmem:[%s6103_s1 + $0x390] sm:$0xff] }
  0x33   :  { %3776 = vmatprep.subr.bf16.mxu1 %v3902_v5  ;;  %v546_v57 = vrot.slane %v3859_v42, %v4116_v27  ;;  %1399 = vmatmul.mubr.f32.gmra.mrb[6].mxu1 %v4379_v39  ;;  %v168_v18 = vld [vmem:[%s6103_s1 + $0x348] sm:$0xff]  ;;  %v215_v26 = vld [vmem:[%s6103_s1 + $0x4c0] sm:$0xff] }
  0x34   :  { %v865_v2 = vrot.slane %v3515_v55, %v4116_v27  ;;  %v172_v35 = vld [vmem:[%s6103_s1 + $0x368] sm:$0xff]  ;;  %v175_v41 = vld [vmem:[%s6103_s1 + $0x380] sm:$0xff]  ;;  %v3682_v55 = vpack.c.bf16 %v168_v18, %v165_v17  ;;  %v3880_v18 = vld [vmem:[%s6104_s0 + $0x170] ss:$8 sps:$4 sm:$0xff]  }
  0x35   :  { %3663 = vmatpush1.bf16.msra.mxu0 %v3662_v58  ;;  %v159_v58 = vld [vmem:[%s6103_s1 + $0x300] sm:$0xff]  ;;  %v3517_v3 = vcombine.low %v518_v56, %v546_v57  ;;  %v569_v8 = vcombine.high %v546_v57, %v4422_v62  ;;  %v224_v56 = vld [vmem:[%s6103_s1 + $0x508] sm:$0xff] }
  0x36   :  { %3778 = vmatpush1.bf16.msra.mxu1 %v3777_v59  ;;  %3665 = vmatprep.subr.bf16.mxu0 %v3664_v61  ;;  %v162_v59 = vld [vmem:[%s6103_s1 + $0x318] sm:$0xff]  ;;  %v4419_v61 = vrot.slane %v3861_v47, %v4116_v27  ;;  %v4440_v11 = vcombine.high %v865_v2, %v879_v46  ;;  %v3870_v40 = vld [vmem:[%s6104_s0 + $0x124] ss:$8 sps:$4 sm:$0x33]   ;;  %v3874_v54 = vld [vmem:[%s6104_s0 + $0x140] ss:$8 sps:$4 sm:$0xff]  }
  0x37   :  { %3779 = vmatprep.subr.bf16.mxu1 %v3902_v5  ;;  %v3678_v25 = vpack.c.bf16 %v162_v59, %v159_v58  ;;  %v4491_v42 = vld [vmem:[%s6103_s1 + $0x360] sm:$0xff]  ;;  %v178_v58 = vld [vmem:[%s6103_s1 + $0x398] sm:$0xff]  ;;  %v4528_v59 = vrot.slane %v3870_v40, %v4116_v27 }
  0x38   :  { %v3519_v19 = vcombine.low %v569_v8, %v4419_v61  ;;  %1403 = vmatprep.mubr.f32.mxu1 %v4440_v11  ;;  %v3876_v9 = vld [vmem:[%s6104_s0 + $0x144] ss:$8 sps:$4 sm:$0x33]   ;;  %v3877_v10 = vld [vmem:[%s6104_s0 + $0x160] ss:$8 sps:$4 sm:$0xff]  }
  0x39   :  { %3667 = vmatpush1.bf16.msra.mxu0 %v3666_v13  ;;  %v169_v13 = vld [vmem:[%s6103_s1 + $0x350] sm:$0xff]  ;;  %v3879_v17 = vld [vmem:[%s6104_s0 + $0x164] ss:$8 sps:$4 sm:$0x33]  }
  0x3a   :  { %3781 = vmatpush1.bf16.msra.mxu1 %v3780_v14  ;;  %3669 = vmatprep.subr.bf16.mxu0 %v3668_v20  ;;  %v4448_v14 = vcombine.low %v865_v2, %v879_v46  ;;  %v901_v20 = vrot.slane %v3517_v3, %v4116_v27  ;;  %v3680_v33 = vpack.c.bf16 %v169_v13, %v166_v12 }
  0x3b   :  { %3782 = vmatprep.subr.bf16.mxu1 %v3902_v5  ;;  %v915_v34 = vrot.slane %v3519_v19, %v4116_v27  ;;  %v357_v46 = vrot.slane %v4456_v16, %v4116_v27  ;;  %v3684_v2 = vpack.c.bf16 %v175_v41, %v172_v35  ;;  %v651_v3 = vrot.slane %v3874_v54, %v4116_v27  ;;  %v180_v19 = vld [vmem:[%s6103_s1 + $0x3a8] sm:$0xff]  ;;  %v4599_v41 = vld [vmem:[%s6103_s1 + $0x3c0] sm:$0xff] }
  0x3c   :  { %1404 = vmatmul.mubr.f32.gmra.mrb[8].mxu1 %v4448_v14  ;;  %v3795_v12 = vpack.c.bf16 %v224_v56, %v4510_v53  ;;  %v3885_v53 = vld [vmem:[%s6104_s0 + $0x14] ss:$8 sps:$4 sm:$0x33]   ;;  %v236_v56 = vld [vmem:[%s6103_s1 + $0x568] sm:$0xff] }
  0x3d   :  { %3671 = vmatpush1.bf16.msra.mxu0 %v3670_v32  ;;  %v3789_v32 = vpack.c.bf16 %v212_v7, %v209_v1  ;;  %v4500_v47 = vcombine.high %v901_v20, %v915_v34  ;;  %v4502_v49 = vcombine.low %v901_v20, %v915_v34  ;;  %v3792_v1 = vpack.c.bf16 %v218_v28, %v215_v26  ;;  %v181_v7 = vld [vmem:[%s6103_s1 + $0x3b0] sm:$0xff]  ;;  %v227_v20 = vld [vmem:[%s6103_s1 + $0x520] sm:$0xff]  ;;  %v184_v28 = vld [vmem:[%s6103_s1 + $0x3c8] sm:$0xff] }
  0x3e   :  { %3784 = vmatpush1.bf16.msra.mxu1 %v3783_v43  ;;  %3673 = vmatprep.subr.bf16.mxu0 %v3672_v44  ;;  %v3521_v43 = vcombine.low %v588_v22, %v616_v29  ;;  %v937_v44 = vrot.slane %v581_v21, %v4116_v27  ;;  %v987_v16 = vrot.slane %v651_v3, %v4116_v27  ;;  %v230_v21 = vld [vmem:[%s6103_s1 + $0x538] sm:$0xff] }
  0x3f   :  { %3785 = vmatprep.subr.bf16.mxu1 %v3902_v5  ;;  %1408 = vmatprep.mubr.f32.mxu1 %v4500_v47  ;;  %v3688_v26 = vpack.c.bf16 %v181_v7, %v178_v58  ;;  %v360_v34 = vcombine.low %v4179_v60, %v357_v46  ;;  %v3690_v60 = vpack.c.bf16 %v180_v19, %v4556_v15  ;;  %v4612_v46 = vld [vmem:[%s6103_s1 + $0x550] sm:$0xff] }
  0x40   :  { %v951_v57 = vrot.slane %v3521_v43, %v4116_v27  ;;  %1409 = vmatmul.mubr.f32.gmra.mrb[10].mxu1 %v4502_v49  ;;  %v3883_v43 = vld [vmem:[%s6104_s0 + $0x10] ss:$8 sps:$4 sm:$0xff]   ;;  %v322_v3 = vrot.slane %v3885_v53, %v4116_v27 }
  0x41   :  { %3675 = vmatpush1.bf16.msra.mxu0 %v3674_v63  ;;  %v4531_v63 = vrot.slane %v3871_v45, %v4116_v27  ;;  %v186_v45 = vld [vmem:[%s6103_s1 + $0x3d8] sm:$0xff]  ;;  %v189_v15 = vld [vmem:[%s6103_s1 + $0x3f0] sm:$0xff] }
  0x42   :  { %3787 = vmatpush1.bf16.msra.mxu1 %v3786_v4  ;;  %3677 = vmatprep.subr.bf16.mxu0 %v3676_v6  ;;  %v3686_v4 = vpack.c.bf16 %v174_v50, %v4491_v42  ;;  %v4537_v6 = vcombine.high %v937_v44, %v951_v57  ;;  %v4551_v13 = vcombine.low %v937_v44, %v951_v57  ;;  %v202_v53 = vld [vmem:[%s6103_s1 + $0x458] sm:$0xff] }
  0x43   :  { %3788 = vmatprep.subr.bf16.mxu1 %v3902_v5  ;;  %v639_v8 = vcombine.high %v616_v29, %v4531_v63  ;;  %v187_v29 = vld [vmem:[%s6103_s1 + $0x3e0] sm:$0xff]  ;;  %v3798_v44 = vpack.c.bf16 %v230_v21, %v227_v20  ;;  %v3801_v20 = vpack.c.bf16 %v236_v56, %v4612_v46  ;;  %v198_v46 = vld [vmem:[%s6103_s1 + $0x438] sm:$0xff] }
  0x44   :  { %1146 = vmatmul.mubr.f32.vlgmr.msra.gmra.mrb[0].mxu0 %v4181_v0  ;;  %v4518_v0 = vld [vmem:[%s6104_s0 + $0x74] ss:$8 sps:$4 sm:$0x33]   ;;  %1413 = vmatprep.mubr.f32.mxu1 %v4537_v6 }
  0x45   :  { %3679 = vmatpush1.bf16.msra.mxu0 %v3678_v25  ;;  %1151 = vmatprep.mubr.f32.mxu0 %v4260_v37  ;;  %v3523_v22 = vcombine.low %v639_v8, %v4528_v59  ;;  %v658_v25 = vrot.slane %v3876_v9, %v4116_v27  ;;  %v686_v37 = vrot.slane %v3877_v10, %v4116_v27  ;;  %v3855_v8 = vld [vmem:[%s6104_s0 + $0xb4] ss:$8 sps:$4 sm:$0x33]  }
  0x46   :  { %3790 = vmatpush1.bf16.msra.mxu1 %v3789_v32  ;;  %3681 = vmatprep.subr.bf16.mxu0 %v3680_v33  ;;  %v4586_v32 = vrot.slane %v3879_v17, %v4116_v27  ;;  %v4589_v33 = vrot.slane %v3880_v18, %v4116_v27  ;;  %v427_v35 = vrot.slane %v4518_v0, %v4116_v27  ;;  %v239_v17 = vld [vmem:[%s6103_s1 + $0x580] sm:$0xff] }
  0x47   :  { %3791 = vmatprep.subr.bf16.mxu1 %v3902_v5  ;;  %v973_v40 = vrot.slane %v3523_v22, %v4116_v27  ;;  %v3525_v42 = vcombine.low %v658_v25, %v686_v37  ;;  %1414 = vmatmul.mubr.f32.gmra.mrb[12].mxu1 %v4551_v13  ;;  %v3692_v0 = vpack.c.bf16 %v187_v29, %v184_v28  ;;  %v242_v22 = vld [vmem:[%s6103_s1 + $0x598] sm:$0xff]  ;;  %v196_v28 = vld [vmem:[%s6103_s1 + $0x428] sm:$0xff]  ;;  %v199_v29 = vld [vmem:[%s6103_s1 + $0x440] sm:$0xff] }
  0x48   :  { %v709_v50 = vcombine.high %v686_v37, %v4589_v33  ;;  %1152 = vmatmul.mubr.f32.gmra.mrb[2].mxu0 %v4262_v38  ;;  %v190_v38 = vld [vmem:[%s6103_s1 + $0x3f8] sm:$0xff]  ;;  %v430_v7 = vcombine.low %v4285_v51, %v427_v35  ;;  %v3694_v9 = vpack.c.bf16 %v186_v45, %v4599_v41  ;;  %v3508_v10 = vcombine.high %v4155_v48, %v360_v34 }
  0x49   :  { %3683 = vmatpush1.bf16.msra.mxu0 %v3682_v55  ;;  %v4619_v54 = vcombine.high %v973_v40, %v987_v16  ;;  %v4621_v55 = vcombine.low %v973_v40, %v987_v16  ;;  %v1009_v57 = vrot.slane %v3525_v42, %v4116_v27  ;;  %v192_v16 = vld [vmem:[%s6103_s1 + $0x408] sm:$0xff]  ;;  %v3506_v18 = vcombine.low %v322_v3, %v4155_v48  ;;  %v3891_v34 = vld [vmem:[%s6104_s0 + $0x94] ss:$8 sps:$4 sm:$0x33]  }
  0x4a   :  { %3793 = vmatpush1.bf16.msra.mxu1 %v3792_v1  ;;  %3685 = vmatprep.subr.bf16.mxu0 %v3684_v2  ;;  %v3527_v58 = vcombine.low %v709_v50, %v4586_v32  ;;  %v193_v1 = vld [vmem:[%s6103_s1 + $0x410] sm:$0xff]  ;;  %v315_v2 = vrot.slane %v3883_v43, %v4116_v27  ;;  %v764_v40 = vrot.slane %v3508_v10, %v4116_v27 }
  0x4b   :  { %3794 = vmatprep.subr.bf16.mxu1 %v3902_v5  ;;  %1418 = vmatprep.mubr.f32.mxu1 %v4619_v54  ;;  %v3696_v21 = vpack.c.bf16 %v193_v1, %v190_v38  ;;  %v3864_v35 = vld [vmem:[%s6104_s0 + $0xf4] ss:$8 sps:$4 sm:$0x33]   ;;  %v497_v41 = vrot.slane %v3855_v8, %v4116_v27  ;;  %v3512_v43 = vcombine.high %v4288_v52, %v430_v7  ;;  %v208_v7 = vld [vmem:[%s6103_s1 + $0x488] sm:$0xff] }
  0x4c   :  { %1419 = vmatmul.mubr.f32.gmra.mrb[14].mxu1 %v4621_v55  ;;  %v1023_v51 = vrot.slane %v3527_v58, %v4116_v27  ;;  %v728_v19 = vrot.slane %v315_v2, %v4116_v27  ;;  %1157 = vmatprep.mubr.f32.mxu0 %v4347_v23  ;;  %v742_v23 = vrot.slane %v3506_v18, %v4116_v27  ;;  %v201_v58 = vld [vmem:[%s6103_s1 + $0x450] sm:$0xff] }
  0x4d   :  { %3687 = vmatpush1.bf16.msra.mxu0 %v3686_v4  ;;  %v3886_v4 = vld [vmem:[%s6104_s0 + $0x50] ss:$8 sps:$4 sm:$0xff]   ;;  %v3700_v45 = vpack.c.bf16 %v199_v29, %v196_v28  ;;  %v500_v38 = vcombine.low %v4363_v30, %v497_v41  ;;  %v567_v1 = vrot.slane %v3864_v35, %v4116_v27  ;;  %v814_v3 = vrot.slane %v3512_v43, %v4116_v27  ;;  %v211_v30 = vld [vmem:[%s6103_s1 + $0x4a0] sm:$0xff]  ;;  %v3897_v28 = vld [vmem:[%s6104_s0 + $0x114] ss:$8 sps:$4 sm:$0x33]  }
  0x4e   :  { %3796 = vmatpush1.bf16.msra.mxu1 %v3795_v12  ;;  %3689 = vmatprep.subr.bf16.mxu0 %v3688_v26  ;;  %v3888_v12 = vld [vmem:[%s6104_s0 + $0x54] ss:$8 sps:$4 sm:$0x33]   ;;  %v385_v25 = vrot.slane %v3886_v4, %v4116_v27  ;;  %v4670_v26 = vcombine.high %v1009_v57, %v1023_v51  ;;  %v4672_v48 = vcombine.low %v1009_v57, %v1023_v51 }
  0x4f   :  { %3797 = vmatprep.subr.bf16.mxu1 %v3902_v5  ;;  %v392_v37 = vrot.slane %v3888_v12, %v4116_v27  ;;  %1158 = vmatmul.mubr.f32.gmra.mrb[4].mxu0 %v4349_v24  ;;  %v4692_v42 = vcombine.high %v728_v19, %v742_v23  ;;  %v195_v24 = vld [vmem:[%s6103_s1 + $0x420] sm:$0xff]  ;;  %v462_v57 = vrot.slane %v3891_v34, %v4116_v27  ;;  %v3894_v51 = vld [vmem:[%s6104_s0 + $0xd4] ss:$8 sps:$4 sm:$0x33]  }
  0x50   :  { %1423 = vmatprep.mubr.f32.mxu1 %v4670_v26  ;;  %1163 = vmatprep.mubr.f32.mxu0 %v4377_v36  ;;  %v3889_v36 = vld [vmem:[%s6104_s0 + $0x90] ss:$8 sps:$4 sm:$0xff]   ;;  %v778_v50 = vrot.slane %v385_v25, %v4116_v27  ;;  %v3702_v2 = vpack.c.bf16 %v198_v46, %v195_v24  ;;  %v3516_v18 = vcombine.high %v4366_v31, %v500_v38  ;;  %v3882_v34 = vld [vmem:[%s6104_s0 + $0x174] ss:$8 sps:$4 sm:$0x33]   ;;  %v220_v46 = vld [vmem:[%s6103_s1 + $0x4e8] sm:$0xff] }
  0x51   :  { %3691 = vmatpush1.bf16.msra.mxu0 %v3690_v60  ;;  %1424 = vmatmul.mubr.f32.gmra.mrb[16].mxu1 %v4672_v48  ;;  %v3698_v60 = vpack.c.bf16 %v192_v16, %v189_v15  ;;  %v3510_v56 = vcombine.low %v392_v37, %v4288_v52  ;;  %v204_v52 = vld [vmem:[%s6103_s1 + $0x468] sm:$0xff]  ;;  %v455_v8 = vrot.slane %v3889_v36, %v4116_v27  ;;  %v3873_v15 = vld [vmem:[%s6104_s0 + $0x134] ss:$8 sps:$4 sm:$0x33]   ;;  %v223_v36 = vld [vmem:[%s6103_s1 + $0x500] sm:$0xff] }
  0x52   :  { %3799 = vmatpush1.bf16.msra.mxu1 %v3798_v44  ;;  %3693 = vmatprep.subr.bf16.mxu0 %v3692_v0  ;;  %v3804_v44 = vpack.c.bf16 %v242_v22, %v239_v17  ;;  %v205_v0 = vld [vmem:[%s6103_s1 + $0x470] sm:$0xff]  ;;  %v3514_v12 = vcombine.low %v462_v57, %v4366_v31  ;;  %v3706_v16 = vpack.c.bf16 %v204_v52, %v201_v58  ;;  %v214_v25 = vld [vmem:[%s6103_s1 + $0x4b8] sm:$0xff]  ;;  %v219_v58 = vld [vmem:[%s6103_s1 + $0x4e0] sm:$0xff] }
  0x53   :  { %3800 = vmatprep.subr.bf16.mxu1 %v3902_v5  ;;  %3538 = vmatprep.mubr.msk.f32.mxu1 %vm1062_vm0, %v4692_v42  ;;  %v3704_v4 = vpack.c.bf16 %v205_v0, %v202_v53  ;;  %v800_v10 = vrot.slane %v3510_v56, %v4116_v27  ;;  %v3708_v17 = vpack.c.bf16 %v211_v30, %v208_v7  ;;  %v217_v37 = vld [vmem:[%s6103_s1 + $0x4d0] sm:$0xff]  ;;  %v222_v38 = vld [vmem:[%s6103_s1 + $0x4f8] sm:$0xff] }
  0x54   :  { %1164 = vmatmul.mubr.f32.gmra.mrb[6].mxu0 %v4379_v39  ;;  %v3892_v39 = vld [vmem:[%s6104_s0 + $0xd0] ss:$8 sps:$4 sm:$0xff]   ;;  %v637_v29 = vrot.slane %v3873_v15, %v4116_v27  ;;  %v602_v53 = vrot.slane %v3897_v28, %v4116_v27  ;;  %v707_v56 = vrot.slane %v3882_v34, %v4116_v27  ;;  %v3900_v30 = vld [vmem:[%s6104_s0 + $0x154] ss:$8 sps:$4 sm:$0x33]   ;;  %v232_v15 = vld [vmem:[%s6103_s1 + $0x548] sm:$0xff] }
  0x55   :  { %3695 = vmatpush1.bf16.msra.mxu0 %v3694_v9  ;;  %1169 = vmatprep.mubr.f32.mxu0 %v4440_v11  ;;  %v4741_v9 = vcombine.high %v764_v40, %v778_v50  ;;  %v570_v11 = vcombine.low %v4419_v61, %v567_v1  ;;  %v210_v61 = vld [vmem:[%s6103_s1 + $0x498] sm:$0xff]  ;;  %v525_v22 = vrot.slane %v3892_v39, %v4116_v27 }
  0x56   :  { %3802 = vmatpush1.bf16.msra.mxu1 %v3801_v20  ;;  %3697 = vmatprep.subr.bf16.mxu0 %v3696_v21  ;;  %v207_v20 = vld [vmem:[%s6103_s1 + $0x480] sm:$0xff]  ;;  %v836_v21 = vrot.slane %v455_v8, %v4116_v27  ;;  %v4767_v31 = vcombine.high %v800_v10, %v814_v3  ;;  %v4789_v43 = vcombine.low %v800_v10, %v814_v3 }
  0x57   :  { %3803 = vmatprep.subr.bf16.mxu1 %v3902_v5  ;;  %v4728_v5 = vcombine.low %v728_v19, %v742_v23  ;;  %v4755_v19 = vcombine.low %v764_v40, %v778_v50  ;;  %v532_v23 = vrot.slane %v3894_v51, %v4116_v27  ;;  %v3710_v35 = vpack.c.bf16 %v210_v61, %v207_v20 }
  0x58   :  { %1170 = vmatmul.mubr.f32.gmra.mrb[8].mxu0 %v4448_v14  ;;  %v850_v14 = vrot.slane %v3514_v12, %v4116_v27  ;;  %v872_v40 = vrot.slane %v3516_v18, %v4116_v27  ;;  %v3520_v41 = vcombine.high %v4422_v62, %v570_v11  ;;  %v640_v0 = vcombine.low %v4528_v59, %v637_v29  ;;  %v225_v12 = vld [vmem:[%s6103_s1 + $0x510] sm:$0xff] }
  0x59   :  { %3699 = vmatpush1.bf16.msra.mxu0 %v3698_v60  ;;  %1175 = vmatprep.mubr.f32.mxu0 %v4500_v47  ;;  %v3712_v60 = vpack.c.bf16 %v217_v37, %v214_v25  ;;  %v213_v47 = vld [vmem:[%s6103_s1 + $0x4b0] sm:$0xff]  ;;  %v3518_v50 = vcombine.low %v532_v23, %v4422_v62  ;;  %v3716_v59 = vpack.c.bf16 %v223_v36, %v220_v46 }
  0x5a   :  { %3805 = vmatpush1.bf16.msra.mxu1 %v3804_v44  ;;  %3701 = vmatprep.subr.bf16.mxu0 %v3700_v45  ;;  %v216_v44 = vld [vmem:[%s6103_s1 + $0x4c8] sm:$0xff]  ;;  %v886_v45 = vrot.slane %v525_v22, %v4116_v27  ;;  %v4803_v24 = vcombine.high %v836_v21, %v850_v14  ;;  %v922_v1 = vrot.slane %v3520_v41, %v4116_v27  ;;  %v231_v22 = vld [vmem:[%s6103_s1 + $0x540] sm:$0xff]  ;;  %v241_v23 = vld [vmem:[%s6103_s1 + $0x590] sm:$0xff] }
  0x5b   :  { %v3714_v57 = vpack.c.bf16 %v216_v44, %v213_v47  ;;  %v4825_v62 = vcombine.low %v836_v21, %v850_v14  ;;  %v3522_v7 = vcombine.low %v602_v53, %v4531_v63  ;;  %v710_v8 = vcombine.low %v4586_v32, %v707_v56 }
  0x5c   :  { %1176 = vmatmul.mubr.f32.gmra.mrb[10].mxu0 %v4502_v49  ;;  %v3895_v49 = vld [vmem:[%s6104_s0 + $0x110] ss:$8 sps:$4 sm:$0xff]   ;;  %v4839_v3 = vcombine.high %v872_v40, %v886_v45  ;;  %v3718_v39 = vpack.c.bf16 %v222_v38, %v219_v58  ;;  %v3524_v51 = vcombine.high %v4531_v63, %v640_v0  ;;  %v889_v11 = vcombine.low %v872_v40, %v886_v45 }
  0x5d   :  { %1494 = vmatmul.mubr.f32.vlgmr.msra.gmra.mrb[18].mxu1 %v4728_v5  ;;  %3703 = vmatpush1.bf16.msra.mxu0 %v3702_v2  ;;  %v229_v2 = vld [vmem:[%s6103_s1 + $0x530] sm:$0xff]  ;;  %v595_v52 = vrot.slane %v3895_v49, %v4116_v27  ;;  %v672_v18 = vrot.slane %v3900_v30, %v4116_v27  ;;  %v3528_v29 = vcombine.high %v4589_v33, %v710_v8 }
  0x5e   :  { %3539 = vmatprep.mubr.msk.f32.mxu1 %vm1062_vm0, %v4741_v9  ;;  %3705 = vmatprep.subr.bf16.mxu0 %v3704_v4  ;;  %v908_v4 = vrot.slane %v3518_v50, %v4116_v27  ;;  %v980_v14 = vrot.slane %v3524_v51, %v4116_v27 }
  0x5f   :  { %1181 = vmatprep.mubr.f32.mxu0 %v4537_v6  ;;  %v226_v6 = vld [vmem:[%s6103_s1 + $0x518] sm:$0xff]  ;;  %v944_v32 = vrot.slane %v595_v52, %v4116_v27  ;;  %v3526_v28 = vcombine.low %v672_v18, %v4589_v33  ;;  %v240_v33 = vld [vmem:[%s6103_s1 + $0x588] sm:$0xff] }
  0x60   :  { %1182 = vmatmul.mubr.f32.gmra.mrb[12].mxu0 %v4551_v13  ;;  %v3898_v13 = vld [vmem:[%s6104_s0 + $0x150] ss:$8 sps:$4 sm:$0xff]   ;;  %v3720_v10 = vpack.c.bf16 %v229_v2, %v226_v6  ;;  %v925_v21 = vcombine.low %v908_v4, %v922_v1 }
  0x61   :  { %1499 = vmatmul.mubr.f32.gmra.mrb[20].mxu1 %v4755_v19  ;;  %3707 = vmatpush1.bf16.msra.mxu0 %v3706_v16  ;;  %v665_v63 = vrot.slane %v3898_v13, %v4116_v27  ;;  %v926_v16 = vcombine.high %v908_v4, %v922_v1  ;;  %v1016_v47 = vrot.slane %v3526_v28, %v4116_v27 }
  0x62   :  { %3540 = vmatprep.mubr.msk.f32.mxu1 %vm1062_vm0, %v4767_v31  ;;  %3709 = vmatprep.subr.bf16.mxu0 %v3708_v17  ;;  %v958_v17 = vrot.slane %v3522_v7, %v4116_v27 }
  0x63   :  { %1187 = vmatprep.mubr.f32.mxu0 %v4619_v54  ;;  %v228_v54 = vld [vmem:[%s6103_s1 + $0x528] sm:$0xff]  ;;  %v994_v25 = vrot.slane %v665_v63, %v4116_v27 }
  0x64   :  { %1188 = vmatmul.mubr.f32.gmra.mrb[14].mxu0 %v4621_v55  ;;  %v235_v55 = vld [vmem:[%s6103_s1 + $0x560] sm:$0xff]  ;;  %v3722_v20 = vpack.c.bf16 %v228_v54, %v225_v12  ;;  %v962_v37 = vcombine.high %v944_v32, %v958_v17  ;;  %v961_v34 = vcombine.low %v944_v32, %v958_v17 }
  0x65   :  { %1504 = vmatmul.mubr.f32.gmra.mrb[22].mxu1 %v4789_v43  ;;  %3711 = vmatpush1.bf16.msra.mxu0 %v3710_v35  ;;  %v3724_v61 = vpack.c.bf16 %v235_v55, %v232_v15  ;;  %v998_v41 = vcombine.high %v980_v14, %v994_v25  ;;  %v997_v44 = vcombine.low %v980_v14, %v994_v25 }
  0x66   :  { %3541 = vmatprep.mubr.msk.f32.mxu1 %vm1062_vm0, %v4803_v24  ;;  %3713 = vmatprep.subr.bf16.mxu0 %v3712_v60  ;;  %v237_v60 = vld [vmem:[%s6103_s1 + $0x570] sm:$0xff] }
  0x67   :  { %1193 = vmatprep.mubr.f32.mxu0 %v4670_v26  ;;  %v234_v26 = vld [vmem:[%s6103_s1 + $0x558] sm:$0xff]  ;;  %v3730_v45 = vpack.c.bf16 %v240_v33, %v237_v60 }
  0x68   :  { %1194 = vmatmul.mubr.f32.gmra.mrb[16].mxu0 %v4672_v48  ;;  %v238_v48 = vld [vmem:[%s6103_s1 + $0x578] sm:$0xff]  ;;  %v3726_v35 = vpack.c.bf16 %v234_v26, %v231_v22  ;;  %s3903_s1 = smov 64  }
  0x69   :  { %1509 = vmatmul.mubr.f32.gmra.mrb[24].mxu1 %v4825_v62  ;;  %3715 = vmatpush1.bf16.msra.mxu0 %v3714_v57  ;;  %v3728_v40 = vpack.c.bf16 %v241_v23, %v238_v48 }
  0x6a   :  { %3542 = vmatprep.mubr.msk.f32.mxu1 %vm1062_vm0, %v4839_v3  ;;  %3717 = vmatprep.subr.bf16.mxu0 %v3716_v59 }
  0x6b   :  { %3529 = vmatprep.mubr.msk.f32.mxu0 %vm1062_vm0, %v4692_v42  ;;  %v1030_v42 = vrot.slane %v3528_v29, %v4116_v27 }
  0x6d   :  { %1514 = vmatmul.mubr.f32.gmra.mrb[26].mxu1 %v889_v11  ;;  %3719 = vmatpush1.bf16.msra.mxu0 %v3718_v39  ;;  %v1034_v49 = vcombine.high %v1016_v47, %v1030_v42  ;;  %v1033_v46 = vcombine.low %v1016_v47, %v1030_v42 }
  0x6e   :  { %3543 = vmatprep.mubr.msk.f32.mxu1 %vm1062_vm0, %v926_v16  ;;  %3721 = vmatprep.subr.bf16.mxu0 %v3720_v10 }
  0x71   :  { %1519 = vmatmul.mubr.f32.gmra.mrb[28].mxu1 %v925_v21  ;;  %3723 = vmatpush1.bf16.msra.mxu0 %v3722_v20 }
  0x72   :  { %3544 = vmatprep.mubr.msk.f32.mxu1 %vm1062_vm0, %v962_v37  ;;  %3725 = vmatprep.subr.bf16.mxu0 %v3724_v61 }
  0x75   :  { %1524 = vmatmul.mubr.f32.gmra.mrb[30].mxu1 %v961_v34  ;;  %3727 = vmatpush1.bf16.msra.mxu0 %v3726_v35 }
  0x76   :  { %3545 = vmatprep.mubr.msk.f32.mxu1 %vm1062_vm0, %v998_v41  ;;  %3729 = vmatprep.subr.bf16.mxu0 %v3728_v40 }
  0x79   :  { %1529 = vmatmul.mubr.f32.gmra.mrb[32].mxu1 %v997_v44  ;;  %3731 = vmatpush1.bf16.msra.mxu0 %v3730_v45 }
  0x7a   :  { %3546 = vmatprep.mubr.msk.f32.mxu1 %vm1062_vm0, %v1034_v49 }
  0x7c   :  { %1265 = vmatmul.mubr.f32.vlgmr.msra.gmra.mrb[0].mxu0 %v4728_v5 }
  0x7d   :  { %1534 = vmatmul.mubr.f32.gmra.mrb[34].mxu1 %v1033_v46  ;;  %3530 = vmatprep.mubr.msk.f32.mxu0 %vm1062_vm0, %v4741_v9 }
  0x80   :  { %1271 = vmatmul.mubr.f32.gmra.mrb[2].mxu0 %v4755_v19 }
  0x81   :  { %3531 = vmatprep.mubr.msk.f32.mxu0 %vm1062_vm0, %v4767_v31 }
  0x84   :  { %1277 = vmatmul.mubr.f32.gmra.mrb[4].mxu0 %v4789_v43 }
  0x85   :  { %3532 = vmatprep.mubr.msk.f32.mxu0 %vm1062_vm0, %v4803_v24 }
  0x88   :  { %1283 = vmatmul.mubr.f32.gmra.mrb[6].mxu0 %v4825_v62 }
  0x89   :  { %3533 = vmatprep.mubr.msk.f32.mxu0 %vm1062_vm0, %v4839_v3 }
  0x8c   :  { %1289 = vmatmul.mubr.f32.gmra.mrb[8].mxu0 %v889_v11 }
  0x8d   :  { %3534 = vmatprep.mubr.msk.f32.mxu0 %vm1062_vm0, %v926_v16 }
  0x90   :  { %1295 = vmatmul.mubr.f32.gmra.mrb[10].mxu0 %v925_v21 }
  0x91   :  { %3535 = vmatprep.mubr.msk.f32.mxu0 %vm1062_vm0, %v962_v37 }
  0x94   :  { %1301 = vmatmul.mubr.f32.gmra.mrb[12].mxu0 %v961_v34 }
  0x95   :  { %3536 = vmatprep.mubr.msk.f32.mxu0 %vm1062_vm0, %v998_v41 }
  0x98   :  { %1307 = vmatmul.mubr.f32.gmra.mrb[14].mxu0 %v997_v44 }
  0x99   :  { %3537 = vmatprep.mubr.msk.f32.mxu0 %vm1062_vm0, %v1034_v49 }
  0x9c   :  { %1313 = vmatmul.mubr.f32.gmra.mrb[16].mxu0 %v1033_v46 }
  0xf8   :  { %v3585_v5 = vpop.f32.mrb[0].mxu1 }
  0xf9   :  { %v3586_v9 = vpop.f32.mrb[1].mxu1 }
  0xfa   :  { %v3587_v19 = vadd.f32 %v3586_v9, %v3585_v5 }
  0xfc   :  { %v3588_v31 = vpop.f32.mrb[2].mxu1 }
  0xfd   :  { %v3589_v43 = vpop.f32.mrb[3].mxu1 }
  0xfe   :  { %v3590_v24 = vadd.f32 %v3589_v43, %v3588_v31 }
 0x102   :  { %v3591_v36 = vpop.f32.mrb[4].mxu1 }
 0x103   :  { %v3592_v50 = vpop.f32.mrb[5].mxu1 }
 0x104   :  { %v3593_v53 = vadd.f32 %v3592_v50, %v3591_v36 }
 0x106   :  { %v3594_v0 = vpop.f32.mrb[6].mxu1 }
 0x107   :  { %v3595_v56 = vpop.f32.mrb[7].mxu1 }
 0x108   :  { %v3596_v57 = vadd.f32 %v3595_v56, %v3594_v0 }
 0x10f   :  { %v3597_v58 = vpop.f32.mrb[8].mxu1 }
 0x110   :  { %v3598_v38 = vpop.f32.mrb[9].mxu1 }
 0x111   :  { %v3599_v1 = vadd.f32 %v3598_v38, %v3597_v58 }
 0x113   :  { %v3600_v62 = vpop.f32.mrb[10].mxu1 }
 0x114   :  { %v3601_v59 = vpop.f32.mrb[11].mxu1 }
 0x115   :  { %v3602_v6 = vadd.f32 %v3601_v59, %v3600_v62 }
 0x11a   :  { %v3603_v2 = vpop.f32.mrb[12].mxu1 }
 0x11b   :  { %v3604_v52 = vpop.f32.mrb[13].mxu1 }
 0x11c   :  { %v3605_v13 = vadd.f32 %v3604_v52, %v3603_v2 }
 0x11f   :  { %v3606_v3 = vpop.f32.mrb[14].mxu1 }
 0x120   :  { %v3607_v4 = vpop.f32.mrb[15].mxu1 }
 0x121   :  { %v3608_v7 = vadd.f32 %v3607_v4, %v3606_v3 }
 0x124   :  { %v3609_v30 = vpop.f32.mrb[16].mxu1 }
 0x125   :  { %v3610_v8 = vpop.f32.mrb[17].mxu1 }
 0x126   :  { %v3611_v39 = vadd.f32 %v3610_v8, %v3609_v30 }
 0x130   :  { %v1495_v10 = vpop.f32.mrb[18].mxu1 }
 0x131   :  { %v1496_v12 = vadd.f32 %v3587_v19, %v1495_v10  ;;  %v1497_v51 = vpop.f32.mrb[19].mxu1 }
 0x133   :  { %v1568_v34 = vcombine.high %v1496_v12, %v1496_v12  ;;  %v1589_v46 = vrot.slane %v1496_v12, %v4116_v27 }
 0x134   :  { %v1500_v11 = vpop.f32.mrb[20].mxu1 }
 0x135   :  { %v1501_v54 = vadd.f32 %v3590_v24, %v1500_v11  ;;  %v1502_v32 = vpop.f32.mrb[21].mxu1  ;;  %v1596_v5 = vrot.slane %v1568_v34, %v4116_v27 }
 0x137   :  { %v1603_v40 = vcombine.high %v1501_v54, %v1501_v54  ;;  %v1624_v9 = vrot.slane %v1501_v54, %v4116_v27 }
 0x138   :  { %v1505_v15 = vpop.f32.mrb[22].mxu1 }
 0x139   :  { %v1506_v55 = vadd.f32 %v3593_v53, %v1505_v15  ;;  %v1507_v63 = vpop.f32.mrb[23].mxu1  ;;  %v1631_v24 = vrot.slane %v1603_v40, %v4116_v27 }
 0x13b   :  { %v1638_v41 = vcombine.high %v1506_v55, %v1506_v55  ;;  %v1659_v36 = vrot.slane %v1506_v55, %v4116_v27 }
 0x13c   :  { %v1510_v16 = vpop.f32.mrb[24].mxu1 }
 0x13d   :  { %v1511_v17 = vadd.f32 %v3596_v57, %v1510_v16  ;;  %v1512_v18 = vpop.f32.mrb[25].mxu1  ;;  %v1666_v50 = vrot.slane %v1638_v41, %v4116_v27 }
 0x13f   :  { %v1673_v47 = vcombine.high %v1511_v17, %v1511_v17  ;;  %v4936_v53 = vrot.slane %v1511_v17, %v4116_v27 }
 0x140   :  { %v1515_v20 = vpop.f32.mrb[26].mxu1 }
 0x141   :  { %v4917_v61 = vadd.f32 %v3599_v1, %v1515_v20  ;;  %v1517_v21 = vpop.f32.mrb[27].mxu1  ;;  %v4939_v56 = vrot.slane %v1673_v47, %v4116_v27 }
 0x143   :  { %v1708_v57 = vcombine.high %v4917_v61, %v4917_v61  ;;  %v4953_v2 = vrot.slane %v4917_v61, %v4116_v27 }
 0x144   :  { %v1520_v22 = vpop.f32.mrb[28].mxu1 }
 0x145   :  { %v4919_v14 = vadd.f32 %v3602_v6, %v1520_v22  ;;  %v1522_v25 = vpop.f32.mrb[29].mxu1 }
 0x147   :  { %v1743_v52 = vcombine.high %v4919_v14, %v4919_v14 }
 0x148   :  { %v1525_v37 = vpop.f32.mrb[30].mxu1 }
 0x149   :  { %v4921_v26 = vadd.f32 %v3605_v13, %v1525_v37  ;;  %v1527_v48 = vpop.f32.mrb[31].mxu1  ;;  %v4982_v63 = vrot.slane %v1743_v52, %v4116_v27 }
 0x14b   :  { %v1778_v21 = vcombine.high %v4921_v26, %v4921_v26  ;;  %v4995_v22 = vrot.slane %v4921_v26, %v4116_v27 }
 0x14c   :  { %v1530_v23 = vpop.f32.mrb[32].mxu1 }
 0x14d   :  { %v4923_v28 = vadd.f32 %v3608_v7, %v1530_v23  ;;  %v1532_v29 = vpop.f32.mrb[33].mxu1  ;;  %v4962_v7 = vrot.slane %v4919_v14, %v4116_v27  ;;  %v1806_v52 = vrot.slane %v1778_v21, %v4116_v27 }
 0x14f   :  { %v1266_v35 = vpop.f32.mrb[0].mxu0  ;;  %v1813_v26 = vcombine.high %v4923_v28, %v4923_v28 }
 0x150   :  { %v1535_v60 = vpop.f32.mrb[34].mxu1  ;;  %v1268_v33 = vpop.f32.mrb[1].mxu0 }
 0x151   :  { %v4925_v42 = vadd.f32 %v3611_v39, %v1535_v60  ;;  %v1566_v44 = vcombine.low %v1266_v35, %v1268_v33  ;;  %v1567_v45 = vcombine.high %v1266_v35, %v1268_v33  ;;  %v1537_v49 = vpop.f32.mrb[35].mxu1 }
 0x153   :  { %v1575_v19 = vrot.slane %v1566_v44, %v4116_v27  ;;  %v1582_v31 = vrot.slane %v1567_v45, %v4116_v27  ;;  %v1272_v43 = vpop.f32.mrb[2].mxu0 }
 0x154   :  { %v1274_v0 = vpop.f32.mrb[3].mxu0 }
 0x155   :  { %v4943_v58 = vcombine.low %v1582_v31, %v1596_v5  ;;  %v4945_v38 = vcombine.high %v1582_v31, %v1596_v5  ;;  %v1601_v1 = vcombine.low %v1272_v43, %v1274_v0  ;;  %v1602_v62 = vcombine.high %v1272_v43, %v1274_v0 }
 0x156   :  { %v4947_v59 = vcombine.high %v1575_v19, %v1589_v46  ;;  %v4949_v6 = vcombine.low %v1575_v19, %v1589_v46  ;;  %v1924_v13 = vrot.slane %v1575_v19, %v4116_v27 }
 0x157   :  { %v1931_v3 = vrot.slane %v4943_v58, %v4116_v27  ;;  %v1278_v4 = vpop.f32.mrb[4].mxu0  ;;  %v1610_v30 = vrot.slane %v1601_v1, %v4116_v27  ;;  %v1617_v8 = vrot.slane %v1602_v62, %v4116_v27  ;;  %v4971_v11 = vrot.slane %v4945_v38, 7 }
 0x158   :  { %2721 = vrot.lane.b32.xlu1 %v4947_v59, %s3903_s1  ;;  %2719 = vrot.lane.b32.xlu0 %v4949_v6, %s3903_s1  ;;  %v1280_v39 = vpop.f32.mrb[5].mxu0 }
 0x159   :  { %v1932_v10 = vcombine.high %v1924_v13, %v1931_v3  ;;  %v1636_v12 = vcombine.low %v1278_v4, %v1280_v39  ;;  %v1637_v51 = vcombine.high %v1278_v4, %v1280_v39  ;;  %v4973_v54 = vcombine.low %v1610_v30, %v1624_v9 }
 0x15a   :  { %v4975_v32 = vcombine.high %v1610_v30, %v1624_v9  ;;  %v4977_v15 = vcombine.low %v1617_v8, %v1631_v24  ;;  %v4979_v55 = vcombine.high %v1617_v8, %v1631_v24  ;;  %v3547_v16 = vcombine.low %v4945_v38, %v1610_v30 }
 0x15b   :  { %2122 = vst.msk [vmem:[%s6105_s2] sm:$0x3f] %vm2121_vm1, %v1932_v10  ;;  %v1645_v17 = vrot.slane %v1636_v12, %v4116_v27  ;;  %v1652_v18 = vrot.slane %v1637_v51, %v4116_v27  ;;  %v1284_v20 = vpop.f32.mrb[6].mxu0  ;;  %v1956_v60 = vrot.slane %v1617_v8, %v4116_v27  ;;  %v5027_v9 = vrot.slane %v4949_v6, 7 }
 0x15c   :  { %v1947_v14 = vrot.slane %v4975_v32, %v4116_v27  ;;  %2231 = vrot.lane.b32.xlu1 %v4971_v11, %s3903_s1  ;;  %2725 = vrot.lane.b32.xlu0 %v4945_v38, %s3903_s1  ;;  %v1286_v25 = vpop.f32.mrb[7].mxu0  ;;  %v1940_v37 = vrot.slane %v3547_v16, %v4116_v27  ;;  %v5068_v30 = vrot.slane %v4923_v28, %v4116_v27  ;;  %v2157_v61 = vrot.slane %v4979_v55, 7 }
 0x15d   :  { %v5004_v48 = vcombine.low %v1645_v17, %v1659_v36  ;;  %v5006_v23 = vcombine.high %v1645_v17, %v1659_v36  ;;  %v5008_v29 = vcombine.low %v1652_v18, %v1666_v50  ;;  %v5012_v34 = vcombine.high %v1652_v18, %v1666_v50 }
 0x15e   :  { %v1671_v35 = vcombine.low %v1284_v20, %v1286_v25  ;;  %v1672_v40 = vcombine.high %v1284_v20, %v1286_v25  ;;  %v1948_v41 = vcombine.high %v1940_v37, %v1947_v14  ;;  %v2142_v16 = vrot.slane %v5027_v9, 2 }
 0x15f   :  { %v1963_v33 = vrot.slane %v5004_v48, %v4116_v27  ;;  %v3548_v47 = vcombine.low %v5006_v23, %v1652_v18  ;;  %v1290_v44 = vpop.f32.mrb[8].mxu0  ;;  %v1979_v45 = vrot.slane %v5012_v34, %v4116_v27  ;;  %v5090_v17 = vrot.slane %v1813_v26, %v4116_v27 }
 0x160   :  { %v1680_v49 = vrot.slane %v1671_v35, %v4116_v27  ;;  %v1687_v46 = vrot.slane %v1672_v40, %v4116_v27  ;;  %2723 = vrot.lane.b32.xlu0 %v4943_v58, %s3903_s1  ;;  %2727 = vrot.lane.b32.xlu1 %v4973_v54, %s3903_s1  ;;  %v1292_v5 = vpop.f32.mrb[9].mxu0  ;;  %2123 = vst.msk [vmem:[%s6105_s2 + $0x8] sm:$0x3f] %vm2121_vm1, %v1948_v41 }
 0x161   :  { %v1964_v31 = vcombine.high %v1956_v60, %v1963_v33  ;;  %v1972_v43 = vrot.slane %v3548_v47, %v4116_v27  ;;  %v1706_v24 = vcombine.low %v1290_v44, %v1292_v5  ;;  %v1707_v36 = vcombine.high %v1290_v44, %v1292_v5 }
 0x162   :  { %v5041_v50 = vcombine.low %v1680_v49, %v4936_v53  ;;  %v5044_v0 = vcombine.high %v1680_v49, %v4936_v53  ;;  %v5047_v1 = vcombine.low %v1687_v46, %v4939_v56  ;;  %v5050_v62 = vcombine.high %v1687_v46, %v4939_v56 }
 0x163   :  { %v1980_v13 = vcombine.high %v1972_v43, %v1979_v45  ;;  %2124 = vst.msk [vmem:[%s6105_s2 + $0x10] sm:$0x3f] %vm2121_vm1, %v1964_v31  ;;  %v1715_v3 = vrot.slane %v1706_v24, %v4116_v27  ;;  %v1296_v4 = vpop.f32.mrb[10].mxu0  ;;  %v2143_v56 = vrot.slane %v4947_v59, 7  ;;  %v1988_v8 = vrot.slane %v1680_v49, %v4116_v27 }
 0x164   :  { %v1995_v39 = vrot.slane %v5047_v1, %v4116_v27  ;;  %2225 = vrot.lane.b32.xlu0 %v5027_v9, %s3903_s1  ;;  %2733 = vrot.lane.b32.xlu1 %v4979_v55, %s3903_s1  ;;  %v1298_v10 = vpop.f32.mrb[11].mxu0  ;;  %v5109_v40 = vrot.slane %v1707_v36, %v4116_v27  ;;  %v2146_v47 = vrot.slane %v4943_v58, 7 }
 0x165   :  { %2125 = vst.msk [vmem:[%s6105_s2 + $0x18] sm:$0x3f] %vm2121_vm1, %v1980_v13  ;;  %v5082_v28 = vcombine.low %v1715_v3, %v4953_v2  ;;  %v5085_v12 = vcombine.high %v1715_v3, %v4953_v2  ;;  %v3549_v51 = vcombine.low %v5050_v62, %v1715_v3  ;;  %v1741_v20 = vcombine.low %v1296_v4, %v1298_v10 }
 0x166   :  { %v1996_v18 = vcombine.high %v1988_v8, %v1995_v39  ;;  %v1742_v21 = vcombine.high %v1296_v4, %v1298_v10  ;;  %v1848_v2 = vcombine.high %v4925_v42, %v4925_v42  ;;  %v2145_v35 = vrot.slane %v2143_v56, 2 }
 0x167   :  { %v2004_v25 = vrot.slane %v3549_v51, %v4116_v27  ;;  %v2011_v37 = vrot.slane %v5085_v12, %v4116_v27  ;;  %v1302_v26 = vpop.f32.mrb[12].mxu0  ;;  %v1750_v41 = vrot.slane %v1741_v20, %v4116_v27  ;;  %v5120_v46 = vsel %vm5095_vm8, %v2142_v16, %v2143_v56 }
 0x168   :  { %2126 = vst.msk [vmem:[%s6105_s2 + $0x20] sm:$0x3f] %vm2121_vm1, %v1996_v18  ;;  %v1757_v60 = vrot.slane %v1742_v21, %v4116_v27  ;;  %2731 = vrot.lane.b32.xlu0 %v4977_v15, %s3903_s1  ;;  %2729 = vrot.lane.b32.xlu1 %v4975_v32, %s3903_s1  ;;  %v1304_v33 = vpop.f32.mrb[13].mxu0  ;;  %v5142_v13 = vsel %vm5095_vm8, %v2145_v35, %v2146_v47  ;;  %v5145_v3 = vrot.slane %v4977_v15, 7  ;;  %v2150_v8 = vrot.slane %v4973_v54, 7 }
 0x169   :  { %v2012_v44 = vcombine.high %v2004_v25, %v2011_v37  ;;  %v1776_v45 = vcombine.low %v1302_v26, %v1304_v33  ;;  %v1777_v49 = vcombine.high %v1302_v26, %v1304_v33  ;;  %v5123_v5 = vcombine.low %v1750_v41, %v4962_v7 }
 0x16a   :  { %v5126_v19 = vcombine.high %v1750_v41, %v4962_v7  ;;  %v5129_v31 = vcombine.low %v1757_v60, %v4982_v63  ;;  %v5132_v43 = vcombine.high %v1757_v60, %v4982_v63  ;;  %v2020_v63 = vrot.slane %v5109_v40, %v4116_v27 }
 0x16b   :  { %6179 = vst [vmem:[#allocation2_spill] sm:$0xff] %v5123_v5  ;;  %2127 = vst.msk [vmem:[%s6105_s2 + $0x28] sm:$0x3f] %vm2121_vm1, %v2012_v44  ;;  %v1785_v24 = vrot.slane %v1776_v45, %v4116_v27  ;;  %v1792_v36 = vrot.slane %v1777_v49, %v4116_v27  ;;  %v1308_v7 = vpop.f32.mrb[14].mxu0  ;;  %v2027_v4 = vrot.slane %v5123_v5, %v4116_v27  ;;  %v2149_v47 = vrot.slane %v4971_v11, 2 }
 0x16c   :  { %6180 = vst [vmem:[#allocation3_spill] sm:$0xff] %v5132_v43  ;;  %v3550_v53 = vcombine.low %v5126_v19, %v1757_v60  ;;  %2227 = vrot.lane.b32.xlu0 %v5120_v46, %s3903_s1  ;;  %2229 = vrot.lane.b32.xlu1 %v5142_v13, %s3903_s1  ;;  %v1310_v56 = vpop.f32.mrb[15].mxu0  ;;  %v2043_v21 = vrot.slane %v5132_v43, %v4116_v27 }
 0x16d   :  { %v5158_v39 = vcombine.low %v1785_v24, %v4995_v22  ;;  %v5161_v10 = vcombine.high %v1785_v24, %v4995_v22  ;;  %v5163_v51 = vcombine.low %v1792_v36, %v1806_v52  ;;  %v5165_v16 = vcombine.high %v1792_v36, %v1806_v52 }
 0x16e   :  { %v2028_v18 = vcombine.high %v2020_v63, %v2027_v4  ;;  %v2036_v20 = vrot.slane %v3550_v53, %v4116_v27  ;;  %v1811_v25 = vcombine.low %v1308_v7, %v1310_v56  ;;  %v1869_v37 = vrot.slane %v4925_v42, %v4116_v27 }
 0x16f   :  { %6181 = vst [vmem:[#allocation4_spill] sm:$0xff] %v5158_v39  ;;  %6182 = vst [vmem:[#allocation5_spill] sm:$0xff] %v5161_v10  ;;  %v2052_v26 = vrot.slane %v1785_v24, %v4116_v27  ;;  %v2059_v22 = vrot.slane %v5163_v51, %v4116_v27  ;;  %v1812_v35 = vcombine.high %v1308_v7, %v1310_v56  ;;  %v1314_v41 = vpop.f32.mrb[16].mxu0  ;;  %v2152_v56 = vrot.slane %v2150_v8, 2 }
 0x170   :  { %6183 = vst [vmem:[#allocation6_spill] sm:$0xff] %v5163_v51  ;;  %6184 = vst [vmem:[#allocation7_spill] sm:$0xff] %v5165_v16  ;;  %v1876_v52 = vrot.slane %v1848_v2, %v4116_v27  ;;  %v2044_v60 = vcombine.high %v2036_v20, %v2043_v21  ;;  %v1820_v33 = vrot.slane %v1811_v25, %v4116_v27  ;;  %2237 = vrot.lane.b32.xlu0 %v5145_v3, %s3903_s1  ;;  %v1316_v42 = vpop.f32.mrb[17].mxu0 }
 0x171   :  { %2128 = vst.msk [vmem:[%s6105_s2 + $0x30] sm:$0x3f] %vm2121_vm1, %v2028_v18  ;;  %2739 = vrot.lane.b32.xlu1 %v5008_v29, %s3903_s1  ;;  %v2060_v44 = vcombine.high %v2052_v26, %v2059_v22  ;;  %v1827_v2 = vrot.slane %v1812_v35, %v4116_v27  ;;  %v1846_v45 = vcombine.low %v1314_v41, %v1316_v42  ;;  %v2153_v26 = vrot.slane %v4975_v32, 7 }
 0x172   :  { %v1847_v49 = vcombine.high %v1314_v41, %v1316_v42  ;;  %2129 = vst.msk [vmem:[%s6105_s2 + $0x38] sm:$0x3f] %vm2121_vm1, %v2044_v60  ;;  %v5192_v24 = vcombine.low %v1820_v33, %v5068_v30  ;;  %v5195_v36 = vcombine.high %v1820_v33, %v5068_v30  ;;  %v3551_v7 = vcombine.low %v5165_v16, %v1820_v33 }
 0x173   :  { %v5200_v63 = vsel %vm5095_vm8, %v2149_v47, %v2150_v8  ;;  %2130 = vst.msk [vmem:[%s6105_s2 + $0x40] sm:$0x3f] %vm2121_vm1, %v2060_v44  ;;  %v5207_v4 = vcombine.low %v1827_v2, %v5090_v17  ;;  %v5210_v53 = vcombine.high %v1827_v2, %v5090_v17  ;;  %v1855_v30 = vrot.slane %v1846_v45, %v4116_v27 }
 0x174   :  { %6185 = vst [vmem:[#allocation8_spill] sm:$0xff] %v5192_v24  ;;  %6186 = vst [vmem:[#allocation9_spill] sm:$0xff] %v5195_v36  ;;  %v2068_v18 = vrot.slane %v3551_v7, %v4116_v27  ;;  %v2075_v20 = vrot.slane %v5195_v36, %v4116_v27  ;;  %v1862_v21 = vrot.slane %v1847_v49, %v4116_v27  ;;  %2233 = vrot.lane.b32.xlu0 %v5200_v63, %s3903_s1 }
 0x175   :  { %6187 = vst [vmem:[#allocation10_spill] sm:$0xff] %v5207_v4  ;;  %6188 = vst [vmem:[#allocation11_spill] sm:$0xff] %v5210_v53  ;;  %2741 = vrot.lane.b32.xlu1 %v5012_v34, %s3903_s1  ;;  %v5221_v25 = vcombine.low %v1855_v30, %v1869_v37  ;;  %v5223_v17 = vcombine.high %v1855_v30, %v1869_v37  ;;  %v2156_v41 = vrot.slane %v5145_v3, 2  ;;  %v2160_v7 = vrot.slane %v5004_v48, 7 }
 0x176   :  { %v2076_v8 = vcombine.high %v2068_v18, %v2075_v20  ;;  %v5226_v22 = vcombine.low %v1862_v21, %v1876_v52  ;;  %v5228_v35 = vcombine.high %v1862_v21, %v1876_v52  ;;  %v2084_v60 = vrot.slane %v1827_v2, %v4116_v27 }
 0x177   :  { %6189 = vst [vmem:[#allocation12_spill] sm:$0xff] %v5221_v25  ;;  %6190 = vst [vmem:[#allocation13_spill] sm:$0xff] %v5223_v17  ;;  %v2091_v33 = vrot.slane %v5221_v25, %v4116_v27  ;;  %v3552_v42 = vcombine.low %v5223_v17, %v1862_v21  ;;  %v5237_v37 = vsel %vm5095_vm8, %v2152_v56, %v2153_v26  ;;  %v2159_v56 = vrot.slane %v2157_v61, 2 }
 0x178   :  { %6191 = vst [vmem:[#allocation14_spill] sm:$0xff] %v5226_v22  ;;  %6192 = vst [vmem:[#allocation15_spill] sm:$0xff] %v5228_v35  ;;  %v1736_v47 = vrot.slane %v1708_v57, %v4116_v27  ;;  %2737 = vrot.lane.b32.xlu0 %v5006_v23, %s3903_s1  ;;  %v2107_v2 = vrot.slane %v5228_v35, %v4116_v27  ;;  %v5264_v49 = vsel %vm5095_vm8, %v2156_v41, %v2157_v61 }
 0x179   :  { %2131 = vst.msk [vmem:[%s6105_s2 + $0x48] sm:$0x3f] %vm2121_vm1, %v2076_v8  ;;  %2235 = vrot.lane.b32.xlu1 %v5237_v37, %s3903_s1  ;;  %v2092_v52 = vcombine.high %v2084_v60, %v2091_v33  ;;  %v2100_v44 = vrot.slane %v3552_v42, %v4116_v27  ;;  %v5279_v18 = vrot.slane %v5006_v23, 7  ;;  %v5283_v20 = vsel %vm5095_vm8, %v2159_v56, %v2160_v7 }
 0x17a   :  { %v5256_v57 = vcombine.high %v5109_v40, %v1736_v47  ;;  %v5272_v30 = vcombine.low %v5109_v40, %v1736_v47  ;;  %v2164_v21 = vrot.slane %v5008_v29, 7  ;;  %v2167_v26 = vrot.slane %v5012_v34, 7 }
 0x17b   :  { %v2108_v45 = vcombine.high %v2100_v44, %v2107_v2  ;;  %2132 = vst.msk [vmem:[%s6105_s2 + $0x50] sm:$0x3f] %vm2121_vm1, %v2092_v52  ;;  %v2163_v41 = vrot.slane %v5279_v18, 2  ;;  %v2176_v60 = vrot.slane %v5050_v62, 7  ;;  %v5310_v42 = vrot.slane %v5041_v50, 7 }
 0x17c   :  { %6193 = vst [vmem:[#allocation16_spill] sm:$0xff] %v5256_v57  ;;  %2735 = vrot.lane.b32.xlu0 %v5004_v48, %s3903_s1  ;;  %6194 = vst [vmem:[#allocation17_spill] sm:$0xff] %v5272_v30  ;;  %v2166_v40 = vrot.slane %v2164_v21, 2  ;;  %v2171_v52 = vrot.slane %v5044_v0, 7  ;;  %v2174_v61 = vrot.slane %v5047_v1, 7  ;;  %v2178_v7 = vrot.slane %v5082_v28, 7 }
 0x17d   :  { %2239 = vrot.lane.b32.xlu1 %v5264_v49, %s3903_s1  ;;  %2133 = vst.msk [vmem:[%s6105_s2 + $0x58] sm:$0x3f] %vm2121_vm1, %v2108_v45  ;;  %v5307_v33 = vsel %vm5095_vm8, %v2163_v41, %v2164_v21  ;;  %v2170_v47 = vrot.slane %v5310_v42, 2  ;;  %v5340_v56 = vrot.slane %v5272_v30, 7  ;;  %s3904_s2 = smov 96  }
 0x17e   :  { %v5297_v8 = vsel %vm5095_vm8, %v2166_v40, %v2167_v26  ;;  %v2173_v2 = vrot.slane %v2171_v52, 2  ;;  %v2180_v21 = vrot.slane %v2178_v7, 2  ;;  %v2177_v40 = vrot.slane %v2176_v60, 2 }
 0x17f   :  { %v5323_v44 = vsel %vm5095_vm8, %v2170_v47, %v2171_v52  ;;  %6197 = vst [vmem:[#allocation20_spill] sm:$0xff] %v5340_v56  ;;  %v2181_v26 = vrot.slane %v5085_v12, 7  ;;  %v2184_v52 = vrot.slane %v5340_v56, 2 }
 0x180   :  { %2241 = vrot.lane.b32.xlu0 %v5283_v20, %s3903_s1  ;;  %6195 = vst [vmem:[#allocation18_spill] sm:$0xff] %v5323_v44  ;;  %v5332_v45 = vsel %vm5095_vm8, %v2173_v2, %v2174_v61  ;;  %v2179_v41 = vsel %vm5095_vm8, %v2177_v40, %v2178_v7  ;;  %v2185_v2 = vrot.slane %v5256_v57, 7  ;;  %v2188_v7 = vrot.slane %v5123_v5, 7 }
 0x181   :  { %2243 = vrot.lane.b32.xlu1 %v5279_v18, %s3903_s1  ;;  %6196 = vst [vmem:[#allocation19_spill] sm:$0xff] %v5332_v45  ;;  %v2182_v47 = vsel %vm5095_vm8, %v2180_v21, %v2181_v26  ;;  %v2192_v26 = vrot.slane %v5129_v31, 7 }
 0x182   :  { %v5357_v61 = vsel %vm5095_vm8, %v2184_v52, %v2185_v2  ;;  %v2187_v21 = vrot.slane %v2185_v2, 2 }
 0x183   :  { %6198 = vst [vmem:[#allocation21_spill] sm:$0xff] %v5357_v61 }
 0x184   :  { %2743 = vrot.lane.b32.xlu0 %v5041_v50, %s3903_s1  ;;  %v5373_v40 = vsel %vm5095_vm8, %v2187_v21, %v2188_v7  ;;  %v5399_v21 = vrot.slane %v5158_v39, 7 }
 0x185   :  { %2745 = vrot.lane.b32.xlu1 %v5044_v0, %s3903_s1  ;;  %6200 = vst [vmem:[#allocation23_spill] sm:$0xff] %v5373_v40 }
 0x186   :  { %6203 = vst [vmem:[#allocation26_spill] sm:$0xff] %v5399_v21 }
 0x188   :  { %2747 = vrot.lane.b32.xlu0 %v5047_v1, %s3903_s1 }
 0x189   :  { %2247 = vrot.lane.b32.xlu1 %v5297_v8, %s3903_s1 }
 0x18c   :  { %2245 = vrot.lane.b32.xlu0 %v5307_v33, %s3903_s1 }
 0x18d   :  { %2255 = vrot.lane.b32.xlu1 %v2176_v60, %s3903_s1  ;;  %v5364_v60 = vrot.slane %v5126_v19, 7 }
 0x18f   :  { %6199 = vst [vmem:[#allocation22_spill] sm:$0xff] %v5364_v60  ;;  %v2191_v2 = vrot.slane %v5364_v60, 2 }
 0x190   :  { %2249 = vrot.lane.b32.xlu0 %v5310_v42, %s3903_s1 }
 0x191   :  { %2751 = vrot.lane.b32.xlu1 %v5256_v57, %s3903_s1  ;;  %v5396_v7 = vsel %vm5095_vm8, %v2191_v2, %v2192_v26 }
 0x192   :  { %6202 = vst [vmem:[#allocation25_spill] sm:$0xff] %v5396_v7 }
 0x194   :  { %2749 = vrot.lane.b32.xlu0 %v5272_v30, %s3903_s1 }
 0x195   :  { %2251 = vrot.lane.b32.xlu1 %v5323_v44, %s3903_s1 }
 0x198   :  { %2253 = vrot.lane.b32.xlu0 %v5332_v45, %s3903_s1 }
 0x199   :  { %2757 = vrot.lane.b32.xlu1 %v5129_v31, %s3903_s1 }
 0x19c   :  { %2261 = vrot.lane.b32.xlu0 %v5340_v56, %s3903_s1  ;;  %v2202_v56 = vrot.slane %v5163_v51, 7 }
 0x19d   :  { %2753 = vrot.lane.b32.xlu1 %v5123_v5, %s3903_s1 }
 0x1a0   :  { %2257 = vrot.lane.b32.xlu0 %v2179_v41, %s3903_s1  ;;  %v2194_v41 = vrot.slane %v2192_v26, 2  ;;  %v5411_v26 = vrot.slane %v5165_v16, 7 }
 0x1a1   :  { %2259 = vrot.lane.b32.xlu1 %v2182_v47, %s3903_s1  ;;  %v2195_v47 = vrot.slane %v5132_v43, 7 }
 0x1a2   :  { %6204 = vst [vmem:[#allocation27_spill] sm:$0xff] %v5411_v26 }
 0x1a3   :  { %v5387_v52 = vsel %vm5095_vm8, %v2194_v41, %v2195_v47  ;;  %v2198_v41 = vrot.slane %v5399_v21, 2  ;;  %v2199_v47 = vrot.slane %v5161_v10, 7 }
 0x1a4   :  { %2755 = vrot.lane.b32.xlu0 %v5126_v19, %s3903_s1  ;;  %6201 = vst [vmem:[#allocation24_spill] sm:$0xff] %v5387_v52 }
 0x1a5   :  { %2263 = vrot.lane.b32.xlu1 %v5357_v61, %s3903_s1  ;;  %v5416_v2 = vsel %vm5095_vm8, %v2198_v41, %v2199_v47  ;;  %v2201_v61 = vrot.slane %v2199_v47, 2  ;;  %v2218_v47 = vrot.slane %v5223_v17, 7 }
 0x1a6   :  { %6205 = vst [vmem:[#allocation28_spill] sm:$0xff] %v5416_v2 }
 0x1a7   :  { %v2219_v17 = vrot.slane %v2218_v47, 2 }
 0x1a8   :  { %2759 = vrot.lane.b32.xlu0 %v5132_v43, %s3903_s1 }
 0x1a9   :  { %2267 = vrot.lane.b32.xlu1 %v5364_v60, %s3903_s1  ;;  %v2213_v60 = vrot.slane %v5210_v53, 7 }
 0x1ac   :  { %2265 = vrot.lane.b32.xlu0 %v5373_v40, %s3903_s1 }
 0x1ad   :  { %2763 = vrot.lane.b32.xlu1 %v5161_v10, %s3903_s1 }
 0x1b0   :  { %2761 = vrot.lane.b32.xlu0 %v5158_v39, %s3903_s1 }
 0x1b1   :  { %2765 = vrot.lane.b32.xlu1 %v5163_v51, %s3903_s1 }
 0x1b4   :  { %2767 = vrot.lane.b32.xlu0 %v5165_v16, %s3903_s1 }
 0x1b5   :  { %2271 = vrot.lane.b32.xlu1 %v5387_v52, %s3903_s1  ;;  %v5420_v52 = vrot.slane %v5207_v4, 7 }
 0x1b7   :  { %6206 = vst [vmem:[#allocation29_spill] sm:$0xff] %v5420_v52  ;;  %v2212_v41 = vrot.slane %v5420_v52, 2 }
 0x1b8   :  { %2269 = vrot.lane.b32.xlu0 %v5396_v7, %s3903_s1  ;;  %v2206_v7 = vrot.slane %v5192_v24, 7 }
 0x1b9   :  { %2769 = vrot.lane.b32.xlu1 %v5192_v24, %s3903_s1  ;;  %v2223_v24 = vrot.slane %v5228_v35, 7 }
 0x1bc   :  { %2273 = vrot.lane.b32.xlu0 %v5399_v21, %s3903_s1  ;;  %v2205_v21 = vrot.slane %v5411_v26, 2 }
 0x1bd   :  { %2775 = vrot.lane.b32.xlu1 %v5210_v53, %s3903_s1 }
 0x1be   :  { %v5429_v40 = vsel %vm5095_vm8, %v2205_v21, %v2206_v7  ;;  %v5444_v21 = vsel %vm5095_vm8, %v2212_v41, %v2213_v60 }
 0x1bf   :  { %6207 = vst [vmem:[#allocation30_spill] sm:$0xff] %v5429_v40  ;;  %6209 = vst [vmem:[#allocation32_spill] sm:$0xff] %v5444_v21 }
 0x1c0   :  { %2279 = vrot.lane.b32.xlu0 %v5411_v26, %s3903_s1  ;;  %v5440_v26 = vsel %vm5095_vm8, %v2201_v61, %v2202_v56 }
 0x1c1   :  { %2275 = vrot.lane.b32.xlu1 %v5416_v2, %s3903_s1  ;;  %v2208_v2 = vrot.slane %v2206_v7, 2  ;;  %6208 = vst [vmem:[#allocation31_spill] sm:$0xff] %v5440_v26 }
 0x1c4   :  { %2773 = vrot.lane.b32.xlu0 %v5207_v4, %s3903_s1  ;;  %v2209_v4 = vrot.slane %v5195_v36, 7 }
 0x1c5   :  { %2281 = vrot.lane.b32.xlu1 %v5429_v40, %s3903_s1 }
 0x1c6   :  { %v5458_v56 = vsel %vm5095_vm8, %v2208_v2, %v2209_v4  ;;  %v2216_v4 = vrot.slane %v5221_v25, 7 }
 0x1c7   :  { %6210 = vst [vmem:[#allocation33_spill] sm:$0xff] %v5458_v56 }
 0x1c8   :  { %2277 = vrot.lane.b32.xlu0 %v5440_v26, %s3903_s1  ;;  %v2220_v26 = vrot.slane %v5226_v22, 7 }
 0x1c9   :  { %2287 = vrot.lane.b32.xlu1 %v5444_v21, %s3903_s1 }
 0x1ca   :  { %v5452_v53 = vpop.permute.xlu1 %2721  ;;  %v5454_v7 = vpop.permute.xlu0 %2719  ;;  %v2222_v16 = vrot.slane %v2220_v26, 2 }
 0x1cb   :  { %v6146_v61 = vrot.slane %v5452_v53, 2  ;;  %v6147_v41 = vrot.slane %v5454_v7, 2 }
 0x1cc   :  { %2285 = vrot.lane.b32.xlu0 %v5420_v52, %s3903_s1  ;;  %v2221_v52 = vsel %vm5095_vm8, %v2219_v17, %v2220_v26  ;;  %v2224_v26 = vsel %vm5095_vm8, %v2222_v16, %v2223_v24 }
 0x1cd   :  { %2283 = vrot.lane.b32.xlu1 %v5458_v56, %s3903_s1  ;;  %v2840_v2 = vadd.f32 %v6146_v61, %v4973_v54  ;;  %v2839_v22 = vadd.f32 %v6147_v41, %v4945_v38  ;;  %v2215_v56 = vrot.slane %v2213_v60, 2 }
 0x1ce   :  { %v5467_v21 = vpop.permute.xlu1 %2231  ;;  %v5469_v40 = vpop.permute.xlu0 %2725 }
 0x1cf   :  { %v5489_v61 = vsel %vm5095_vm8, %v2215_v56, %v2216_v4  ;;  %v2899_v41 = vcombine.low %v2839_v22, %v2840_v2  ;;  %v6154_v60 = vrot.slane %v5469_v40, 2 }
 0x1d0   :  { %2291 = vrot.lane.b32.xlu0 %v2218_v47, %s3903_s1  ;;  %6211 = vst [vmem:[#allocation34_spill] sm:$0xff] %v5489_v61 }
 0x1d1   :  { %2293 = vrot.lane.b32.xlu1 %v2221_v52, %s3903_s1  ;;  %v2906_v16 = vrot.slane %v2899_v41, %v4116_v27  ;;  %v2842_v24 = vadd.f32 %v6154_v60, %v4977_v15 }
 0x1d2   :  { %v5483_v5 = vpop.permute.xlu0 %2723  ;;  %v5485_v30 = vpop.permute.xlu1 %2727 }
 0x1d3   :  { %v6150_v51 = vrot.slane %v5483_v5, 2  ;;  %v6151_v17 = vrot.slane %v5485_v30, 2 }
 0x1d4   :  { %2289 = vrot.lane.b32.xlu0 %v5489_v61, %s3903_s1 }
 0x1d5   :  { %2295 = vrot.lane.b32.xlu1 %v2224_v26, %s3903_s1  ;;  %v2841_v52 = vadd.f32 %v6150_v51, %v4975_v32  ;;  %v2843_v14 = vadd.f32 %v6151_v17, %v4979_v55 }
 0x1d6   :  { %v2226_v47 = vpop.permute.xlu0 %2225  ;;  %v5502_v22 = vpop.permute.xlu1 %2733 }
 0x1d7   :  { %v2913_v56 = vrot.slane %v2841_v52, %v4116_v27  ;;  %v2297_v2 = vrot.slane %v2226_v47, 2  ;;  %v2915_v51 = vcombine.low %v2842_v24, %v2843_v14  ;;  %v2300_v24 = vrot.slane %v5467_v21, 2 }
 0x1d8   :  { %2771 = vrot.lane.b32.xlu0 %v5195_v36, %s3903_s1 }
 0x1d9   :  { %2777 = vrot.lane.b32.xlu1 %v5221_v25, %s3903_s1  ;;  %v2914_v4 = vcombine.low %v2906_v16, %v2913_v56  ;;  %v2334_v25 = vsel %vm2333_vm9, %v2226_v47, %v2297_v2  ;;  %v2922_v14 = vrot.slane %v2915_v51, %v4116_v27 }
 0x1da   :  { %v5516_v26 = vpop.permute.xlu0 %2731  ;;  %v5518_v52 = vpop.permute.xlu1 %2729  ;;  %v2406_v2 = vadd.f32 %v2334_v25, %v4949_v6  ;;  %v2337_v6 = vsel %vm2333_vm9, %v5467_v21, %v2300_v24  ;;  %v6212_v25 = vrot.slane %v5454_v7, 2  ;;  %v3191_v7 = vrot.slane %v5142_v13, 4 }
 0x1db   :  { %v6162_v17 = vrot.slane %v5518_v52, 2  ;;  %v6169_v36 = vrot.slane %v5516_v26, 2  ;;  %v3193_v24 = vrot.slane %v5200_v63, 4 }
 0x1dc   :  { %3059 = vrot.lane.b32.xlu0 %v2914_v4, %s3904_s2  ;;  %v3129_v4 = vadd.f32 %v5467_v21, %v4945_v38 }
 0x1dd   :  { %v2844_v41 = vadd.f32 %v6162_v17, %v5004_v48 }
 0x1de   :  { %v2228_v60 = vpop.permute.xlu0 %2227  ;;  %v2230_v56 = vpop.permute.xlu1 %2229 }
 0x1df   :  { %v2929_v16 = vrot.slane %v2844_v41, %v4116_v27  ;;  %v2298_v35 = vrot.slane %v2228_v60, 2  ;;  %v2299_v61 = vrot.slane %v2230_v56, 2  ;;  %v6168_v41 = vrot.slane %v5502_v22, 2 }
 0x1e1   :  { %v2335_v57 = vsel %vm2333_vm9, %v2228_v60, %v2298_v35  ;;  %v2336_v17 = vsel %vm2333_vm9, %v2230_v56, %v2299_v61  ;;  %v2930_v47 = vcombine.low %v2922_v14, %v2929_v16  ;;  %v2845_v35 = vadd.f32 %v6169_v36, %v5006_v23 }
 0x1e2   :  { %v2407_v39 = vadd.f32 %v2335_v57, %v4947_v59  ;;  %v2408_v51 = vadd.f32 %v2336_v17, %v4943_v58  ;;  %v2238_v10 = vpop.permute.xlu0 %2237  ;;  %v3159_v59 = vadd.f32 %v3129_v4, %v6212_v25  ;;  %v2846_v58 = vadd.f32 %v6168_v41, %v5008_v29 }
 0x1e3   :  { %v5538_v45 = vpop.permute.xlu1 %2739  ;;  %3061 = vrot.lane.b32.xlu1 %v2930_v47, %s3904_s2  ;;  %v3190_v14 = vrot.slane %v5120_v46, 4  ;;  %v2303_v25 = vrot.slane %v2238_v10, 2  ;;  %v3132_v46 = vadd.f32 %v2238_v10, %v4977_v15 }
 0x1e4   :  { %v2478_v60 = vcombine.low %v2406_v2, %v2407_v39  ;;  %v2492_v57 = vrot.slane %v2408_v51, %v4116_v27  ;;  %v3189_v39 = vrot.slane %v5027_v9, 4  ;;  %v2931_v4 = vcombine.low %v2845_v35, %v2846_v58 }
 0x1e5   :  { %v2409_v51 = vadd.f32 %v2337_v6, %v4945_v38  ;;  %v2789_v61 = vrot.slane %v5538_v45, 2 }
 0x1e6   :  { %v2234_v17 = vpop.permute.xlu0 %2233  ;;  %v2485_v16 = vrot.slane %v2478_v60, %v4116_v27  ;;  %v6213_v60 = vrot.slane %v5452_v53, 2  ;;  %v3249_v9 = vadd.f32 %v3189_v39, %v3159_v59  ;;  %v2938_v58 = vrot.slane %v2931_v4, %v4116_v27 }
 0x1e7   :  { %v5553_v56 = vpop.permute.xlu1 %2741  ;;  %v2301_v47 = vrot.slane %v2234_v17, 2  ;;  %v3130_v21 = vadd.f32 %v2234_v17, %v4973_v54 }
 0x1e8   :  { %v2493_v2 = vcombine.low %v2485_v16, %v2492_v57  ;;  %v2790_v63 = vrot.slane %v5553_v56, 2 }
 0x1e9   :  { %v2338_v41 = vsel %vm2333_vm9, %v2234_v17, %v2301_v47  ;;  %v3160_v36 = vadd.f32 %v3130_v21, %v6213_v60  ;;  %v6214_v17 = vrot.slane %v5483_v5, 2 }
 0x1ea   :  { %v2410_v44 = vadd.f32 %v2338_v41, %v4973_v54  ;;  %v5568_v43 = vpop.permute.xlu0 %2737  ;;  %2670 = vrot.lane.b32.xlu0 %v2493_v2, %s3905_s21  ;;  %v2340_v54 = vsel %vm2333_vm9, %v2238_v10, %v2303_v25  ;;  %v2850_v5 = vadd.f32 %v2790_v63, %v5047_v1 }
 0x1eb   :  { %v2236_v13 = vpop.permute.xlu1 %2235  ;;  %v3250_v38 = vadd.f32 %v3190_v14, %v3160_v36  ;;  %v2788_v59 = vrot.slane %v5568_v43, 2  ;;  %v6215_v36 = vrot.slane %v5469_v40, 2 }
 0x1ec   :  { %v2302_v35 = vrot.slane %v2236_v13, 2  ;;  %v3131_v53 = vadd.f32 %v2236_v13, %v4975_v32  ;;  %v2494_v6 = vcombine.low %v2409_v51, %v2410_v44  ;;  %v2849_v44 = vadd.f32 %v2789_v61, %v5044_v0 }
 0x1ed   :  { %v3309_v41 = vcombine.low %v3249_v9, %v3250_v38  ;;  %v3162_v39 = vadd.f32 %v3132_v46, %v6215_v36  ;;  %v2848_v47 = vadd.f32 %v2788_v59, %v5041_v50  ;;  %v6216_v38 = vrot.slane %v5485_v30, 2 }
 0x1ee   :  { %v2339_v57 = vsel %vm2333_vm9, %v2236_v13, %v2302_v35  ;;  %v3161_v16 = vadd.f32 %v3131_v53, %v6214_v17  ;;  %v5588_v21 = vpop.permute.xlu0 %2735  ;;  %v6217_v36 = vrot.slane %v4971_v11, 4  ;;  %v2961_v30 = vrot.slane %v2850_v5, %v4116_v27 }
 0x1ef   :  { %v2411_v14 = vadd.f32 %v2339_v57, %v4975_v32  ;;  %v2240_v10 = vpop.permute.xlu1 %2239  ;;  %v2947_v51 = vcombine.low %v2848_v47, %v2849_v44  ;;  %v2787_v25 = vrot.slane %v5588_v21, 2  ;;  %v2501_v32 = vrot.slane %v2494_v6, %v4116_v27 }
 0x1f0   :  { %v3251_v4 = vadd.f32 %v3191_v7, %v3161_v16  ;;  %v2304_v40 = vrot.slane %v2240_v10, 2  ;;  %v3133_v2 = vadd.f32 %v2240_v10, %v4979_v55  ;;  %v3316_v9 = vrot.slane %v3309_v41, %v4116_v27 }
 0x1f1   :  { %v2508_v60 = vrot.slane %v2411_v14, %v4116_v27  ;;  %v2847_v53 = vadd.f32 %v2787_v25, %v5012_v34  ;;  %v2954_v16 = vrot.slane %v2947_v51, %v4116_v27  ;;  %v2412_v41 = vadd.f32 %v2340_v54, %v4977_v15 }
 0x1f2   :  { %v3323_v46 = vrot.slane %v3251_v4, %v4116_v27  ;;  %v2341_v13 = vsel %vm2333_vm9, %v2240_v10, %v2304_v40  ;;  %v3163_v35 = vadd.f32 %v3133_v2, %v6216_v38  ;;  %v2242_v17 = vpop.permute.xlu0 %2241  ;;  %v3252_v44 = vadd.f32 %v6217_v36, %v3162_v39 }
 0x1f3   :  { %v2413_v7 = vadd.f32 %v2341_v13, %v4979_v55  ;;  %v2244_v57 = vpop.permute.xlu1 %2243  ;;  %v2509_v6 = vcombine.low %v2501_v32, %v2508_v60  ;;  %v2945_v55 = vrot.slane %v2847_v53, %v4116_v27  ;;  %v2305_v10 = vrot.slane %v2242_v17, 2 }
 0x1f4   :  { %v3324_v14 = vcombine.low %v3316_v9, %v3323_v46  ;;  %v3253_v47 = vadd.f32 %v3193_v24, %v3163_v35  ;;  %v3134_v4 = vadd.f32 %v2242_v17, %v5004_v48  ;;  %v3194_v40 = vrot.slane %v5237_v37, 4 }
 0x1f5   :  { %2672 = vrot.lane.b32.xlu1 %v2509_v6, %s3905_s21  ;;  %v2510_v11 = vcombine.low %v2412_v41, %v2413_v7  ;;  %v2342_v24 = vsel %vm2333_vm9, %v2242_v17, %v2305_v10  ;;  %v6218_v54 = vrot.slane %v5518_v52, 2  ;;  %v2946_v51 = vcombine.low %v2938_v58, %v2945_v55 }
 0x1f6   :  { %3479 = vst.msk [vmem:[%s6106_s5 - $0x1] sm:$0x3e] %vm2706_vm10, %v3324_v14  ;;  %v3325_v15 = vcombine.low %v3252_v44, %v3253_v47  ;;  %v5624_v2 = vpop.permute.xlu0 %2743  ;;  %v2962_v32 = vcombine.low %v2954_v16, %v2961_v30  ;;  %v2414_v37 = vadd.f32 %v2342_v24, %v5004_v48  ;;  %v2306_v17 = vrot.slane %v2244_v57, 2 }
 0x1f7   :  { %v3164_v39 = vadd.f32 %v3134_v4, %v6218_v54  ;;  %v5622_v5 = vpop.permute.xlu1 %2745  ;;  %v2791_v46 = vrot.slane %v5624_v2, 2  ;;  %3063 = vrot.lane.b32.xlu0 %v2946_v51, %s3904_s2  ;;  %v2517_v13 = vrot.slane %v2510_v11, %v4116_v27  ;;  %v3135_v36 = vadd.f32 %v2244_v57, %v5006_v23 }
 0x1f8   :  { %v2792_v60 = vrot.slane %v5622_v5, 2  ;;  %v2524_v58 = vrot.slane %v2414_v37, %v4116_v27  ;;  %v3332_v38 = vrot.slane %v3325_v15, %v4116_v27  ;;  %v2343_v4 = vsel %vm2333_vm9, %v2244_v57, %v2306_v17 }
 0x1f9   :  { %v3254_v9 = vadd.f32 %v3194_v40, %v3164_v39  ;;  %3065 = vrot.lane.b32.xlu1 %v2962_v32, %s3904_s2  ;;  %v2851_v35 = vadd.f32 %v2791_v46, %v5050_v62  ;;  %v6219_v24 = vrot.slane %v5516_v26, 2  ;;  %v3195_v37 = vrot.slane %v5145_v3, 4 }
 0x1fa   :  { %v2852_v52 = vadd.f32 %v2792_v60, %v5082_v28  ;;  %v5641_v53 = vpop.permute.xlu0 %2747  ;;  %v2525_v41 = vcombine.low %v2517_v13, %v2524_v58  ;;  %v6220_v26 = vrot.slane %v5502_v22, 2 }
 0x1fb   :  { %v3339_v48 = vrot.slane %v3254_v9, %v4116_v27  ;;  %v2248_v7 = vpop.permute.xlu1 %2247  ;;  %v2793_v16 = vrot.slane %v5641_v53, 2  ;;  %v3165_v54 = vadd.f32 %v3135_v36, %v6219_v24  ;;  %v3196_v9 = vrot.slane %v5264_v49, 4  ;;  %v6225_v53 = vld [vmem:[#allocation4_spill] sm:$0xff] }
 0x1fc   :  { %v2308_v6 = vrot.slane %v2248_v7, 2  ;;  %v2963_v14 = vcombine.low %v2851_v35, %v2852_v52  ;;  %v3137_v47 = vadd.f32 %v2248_v7, %v5012_v34  ;;  %2674 = vrot.lane.b32.xlu0 %v2525_v41, %s3905_s21  ;;  %v3197_v52 = vrot.slane %v5283_v20, 4 }
 0x1fd   :  { %v3340_v44 = vcombine.low %v3332_v38, %v3339_v48  ;;  %v2853_v30 = vadd.f32 %v2793_v16, %v5085_v12  ;;  %v3255_v20 = vadd.f32 %v3195_v37, %v3165_v54 }
 0x1fe   :  { %v2246_v10 = vpop.permute.xlu0 %2245  ;;  %v2345_v40 = vsel %vm2333_vm9, %v2248_v7, %v2308_v6  ;;  %v2970_v15 = vrot.slane %v2963_v14, %v4116_v27  ;;  %v3167_v39 = vadd.f32 %v3137_v47, %v2787_v25  ;;  %v2415_v25 = vadd.f32 %v2343_v4, %v5006_v23 }
 0x1ff   :  { %3480 = vst.msk [vmem:[%s6106_s5 + $0x7] sm:$0x3e] %vm2706_vm10, %v3340_v44  ;;  %v5654_v55 = vpop.permute.xlu1 %2255  ;;  %v2977_v11 = vrot.slane %v2853_v30, %v4116_v27  ;;  %v2307_v51 = vrot.slane %v2246_v10, 2  ;;  %v3136_v32 = vadd.f32 %v2246_v10, %v5008_v29  ;;  %v2417_v13 = vadd.f32 %v2345_v40, %v5012_v34 }
 0x200   :  { %v3257_v7 = vadd.f32 %v3197_v52, %v3167_v39  ;;  %v3198_v6 = vrot.slane %v5279_v18, 4  ;;  %v3200_v52 = vrot.slane %v5297_v8, 4  ;;  %v3141_v45 = vadd.f32 %v5654_v55, %v5050_v62 }
 0x201   :  { %v2978_v57 = vcombine.low %v2970_v15, %v2977_v11  ;;  %v2344_v58 = vsel %vm2333_vm9, %v2246_v10, %v2307_v51  ;;  %v3166_v38 = vadd.f32 %v3136_v32, %v6220_v26  ;;  %v2540_v23 = vrot.slane %v2417_v13, %v4116_v27 }
 0x202   :  { %v2250_v48 = vpop.permute.xlu0 %2249  ;;  %v2416_v35 = vadd.f32 %v2344_v58, %v5008_v29  ;;  %v3355_v10 = vrot.slane %v3257_v7, %v4116_v27  ;;  %v3199_v11 = vrot.slane %v5307_v33, 4  ;;  %v2312_v13 = vrot.slane %v5654_v55, 2 }
 0x203   :  { %v5672_v21 = vpop.permute.xlu1 %2751  ;;  %v2309_v3 = vrot.slane %v2250_v48, 2  ;;  %v3138_v49 = vadd.f32 %v2250_v48, %v5041_v50  ;;  %3067 = vrot.lane.b32.xlu0 %v2978_v57, %s3904_s2  ;;  %v3256_v34 = vadd.f32 %v3196_v9, %v3166_v38  ;;  %v3171_v7 = vadd.f32 %v3141_v45, %v2791_v46 }
 0x204   :  { %v2526_v17 = vcombine.low %v2415_v25, %v2416_v35  ;;  %v2795_v4 = vrot.slane %v5672_v21, 2  ;;  %v2349_v56 = vsel %vm2333_vm9, %v5654_v55, %v2312_v13  ;;  %v6241_v21 = vld [vmem:[#allocation28_spill] sm:$0xff] }
 0x205   :  { %v3341_v22 = vcombine.low %v3255_v20, %v3256_v34  ;;  %v2346_v41 = vsel %vm2333_vm9, %v2250_v48, %v2309_v3  ;;  %v3168_v29 = vadd.f32 %v3138_v49, %v2788_v59  ;;  %v3201_v20 = vrot.slane %v5310_v42, 4 }
 0x206   :  { %v5680_v44 = vpop.permute.xlu0 %2749  ;;  %v2533_v40 = vrot.slane %v2526_v17, %v4116_v27  ;;  %v2418_v15 = vadd.f32 %v2346_v41, %v5041_v50  ;;  %v6222_v41 = vld [vmem:[#allocation18_spill] sm:$0xff] }
 0x207   :  { %v2252_v36 = vpop.permute.xlu1 %2251  ;;  %v2794_v30 = vrot.slane %v5680_v44, 2  ;;  %v3348_v18 = vrot.slane %v3341_v22, %v4116_v27  ;;  %v3258_v9 = vadd.f32 %v3198_v6, %v3168_v29  ;;  %v6221_v6 = vld [vmem:[#allocation3_spill] sm:$0xff]  ;;  %v3202_v42 = vrot.slane %v6222_v41, 4  ;;  %v6228_v41 = vld [vmem:[#allocation17_spill] sm:$0xff] }
 0x208   :  { %v2310_v14 = vrot.slane %v2252_v36, 2  ;;  %v3139_v47 = vadd.f32 %v2252_v36, %v5044_v0  ;;  %v2541_v37 = vcombine.low %v2533_v40, %v2540_v23  ;;  %v2421_v40 = vadd.f32 %v2349_v56, %v5050_v62 }
 0x209   :  { %v3356_v24 = vcombine.low %v3348_v18, %v3355_v10  ;;  %v2854_v39 = vadd.f32 %v2794_v30, %v5126_v19 }
 0x20a   :  { %v2347_v43 = vsel %vm2333_vm9, %v2252_v36, %v2310_v14  ;;  %v3169_v59 = vadd.f32 %v3139_v47, %v2789_v61  ;;  %v2254_v51 = vpop.permute.xlu0 %2253  ;;  %2676 = vrot.lane.b32.xlu1 %v2541_v37, %s3905_s21  ;;  %v6223_v36 = vld [vmem:[#allocation19_spill] sm:$0xff] }
 0x20b   :  { %v2419_v54 = vadd.f32 %v2347_v43, %v5044_v0  ;;  %v5700_v32 = vpop.permute.xlu1 %2757  ;;  %v2311_v57 = vrot.slane %v2254_v51, 2  ;;  %v3140_v50 = vadd.f32 %v2254_v51, %v5047_v1  ;;  %3481 = vst.msk [vmem:[%s6106_s5 + $0xf] sm:$0x3e] %vm2706_vm10, %v3356_v24  ;;  %v2855_v0 = vadd.f32 %v2795_v4, %v5129_v31 }
 0x20c   :  { %v3259_v33 = vadd.f32 %v3199_v11, %v3169_v59  ;;  %v3203_v2 = vrot.slane %v6223_v36, 4  ;;  %v3261_v11 = vadd.f32 %v3201_v20, %v3171_v7  ;;  %v2798_v59 = vrot.slane %v5700_v32, 2 }
 0x20d   :  { %v2542_v61 = vcombine.low %v2418_v15, %v2419_v54  ;;  %v2348_v8 = vsel %vm2333_vm9, %v2254_v51, %v2311_v57  ;;  %v3170_v26 = vadd.f32 %v3140_v50, %v2790_v63  ;;  %v2979_v38 = vcombine.low %v2854_v39, %v2855_v0 }
 0x20e   :  { %v3357_v58 = vcombine.low %v3258_v9, %v3259_v33  ;;  %v2420_v48 = vadd.f32 %v2348_v8, %v5047_v1  ;;  %v2262_v25 = vpop.permute.xlu0 %2261 }
 0x20f   :  { %v5719_v35 = vpop.permute.xlu1 %2753  ;;  %v3260_v3 = vadd.f32 %v3200_v52, %v3170_v26  ;;  %v2549_v34 = vrot.slane %v2542_v61, %v4116_v27  ;;  %v2986_v14 = vrot.slane %v2979_v38, %v4116_v27  ;;  %v2315_v62 = vrot.slane %v2262_v25, 2  ;;  %v6224_v61 = vld [vmem:[#allocation5_spill] sm:$0xff] }
 0x210   :  { %v2796_v49 = vrot.slane %v5719_v35, 2  ;;  %v2556_v17 = vrot.slane %v2420_v48, %v4116_v27  ;;  %v3364_v1 = vrot.slane %v3357_v58, %v4116_v27  ;;  %v6238_v35 = vld [vmem:[#allocation25_spill] sm:$0xff] }
 0x211   :  { %v3371_v63 = vrot.slane %v3260_v3, %v4116_v27 }
 0x212   :  { %v2856_v22 = vadd.f32 %v2796_v49, %v6221_v6  ;;  %v2258_v46 = vpop.permute.xlu0 %2257  ;;  %v2557_v29 = vcombine.low %v2549_v34, %v2556_v17  ;;  %v6226_v17 = vld [vmem:[#allocation16_spill] sm:$0xff] }
 0x213   :  { %v2260_v23 = vpop.permute.xlu1 %2259  ;;  %v3372_v47 = vcombine.low %v3364_v1, %v3371_v63  ;;  %v2313_v10 = vrot.slane %v2258_v46, 2  ;;  %v3142_v18 = vadd.f32 %v2258_v46, %v5082_v28 }
 0x214   :  { %v2993_v55 = vrot.slane %v2856_v22, %v4116_v27  ;;  %v2314_v15 = vrot.slane %v2260_v23, 2  ;;  %v3143_v43 = vadd.f32 %v2260_v23, %v5085_v12  ;;  %2678 = vrot.lane.b32.xlu0 %v2557_v29, %s3905_s21  ;;  %v6227_v22 = vld [vmem:[#allocation6_spill] sm:$0xff] }
 0x215   :  { %3482 = vst.msk [vmem:[%s6106_s5 + $0x17] sm:$0x3e] %vm2706_vm10, %v3372_v47  ;;  %v2350_v24 = vsel %vm2333_vm9, %v2258_v46, %v2313_v10  ;;  %v3172_v54 = vadd.f32 %v3142_v18, %v2792_v60  ;;  %v6229_v18 = vld [vmem:[#allocation2_spill] sm:$0xff] }
 0x216   :  { %v2994_v39 = vcombine.low %v2986_v14, %v2993_v55  ;;  %v2422_v51 = vadd.f32 %v2350_v24, %v5082_v28  ;;  %v2351_v37 = vsel %vm2333_vm9, %v2260_v23, %v2314_v15  ;;  %v3173_v9 = vadd.f32 %v3143_v43, %v2793_v16  ;;  %v5754_v33 = vpop.permute.xlu0 %2755 }
 0x217   :  { %v2264_v57 = vpop.permute.xlu1 %2263  ;;  %v3262_v50 = vadd.f32 %v3202_v42, %v3172_v54  ;;  %v2423_v52 = vadd.f32 %v2351_v37, %v5085_v12  ;;  %v2797_v45 = vrot.slane %v5754_v33, 2  ;;  %v2858_v28 = vadd.f32 %v2798_v59, %v6224_v61  ;;  %v6231_v37 = vld [vmem:[#allocation7_spill] sm:$0xff] }
 0x218   :  { %v2316_v0 = vrot.slane %v2264_v57, 2  ;;  %3069 = vrot.lane.b32.xlu1 %v2994_v39, %s3904_s2  ;;  %v2558_v5 = vcombine.low %v2421_v40, %v2422_v51  ;;  %v3263_v60 = vadd.f32 %v3203_v2, %v3173_v9  ;;  %v2352_v12 = vsel %vm2333_vm9, %v2262_v25, %v2315_v62  ;;  %v6230_v62 = vld [vmem:[#allocation8_spill] sm:$0xff] }
 0x219   :  { %v3373_v13 = vcombine.low %v3261_v11, %v3262_v50  ;;  %v2857_v16 = vadd.f32 %v2797_v45, %v6225_v53  ;;  %v2572_v48 = vrot.slane %v2423_v52, %v4116_v27  ;;  %v2424_v42 = vadd.f32 %v2352_v12, %v6228_v41  ;;  %v6232_v50 = vld [vmem:[#allocation9_spill] sm:$0xff]  ;;  %v6233_v12 = vld [vmem:[#allocation22_spill] sm:$0xff] }
 0x21a   :  { %v2353_v58 = vsel %vm2333_vm9, %v2264_v57, %v2316_v0  ;;  %v5767_v8 = vpop.permute.xlu0 %2759  ;;  %v2565_v38 = vrot.slane %v2558_v5, %v4116_v27  ;;  %v3387_v20 = vrot.slane %v3263_v60, %v4116_v27 }
 0x21b   :  { %v2268_v26 = vpop.permute.xlu1 %2267  ;;  %v3380_v3 = vrot.slane %v3373_v13, %v4116_v27  ;;  %v2995_v7 = vcombine.low %v2857_v16, %v2858_v28  ;;  %v2799_v34 = vrot.slane %v5767_v8, 2  ;;  %v2425_v56 = vadd.f32 %v2353_v58, %v6226_v17 }
 0x21c   :  { %v2573_v1 = vcombine.low %v2565_v38, %v2572_v48  ;;  %v2318_v57 = vrot.slane %v2268_v26, 2  ;;  %v3144_v28 = vadd.f32 %v2268_v26, %v5126_v19  ;;  %v3207_v38 = vrot.slane %v6233_v12, 4  ;;  %v6250_v12 = vld [vmem:[#allocation14_spill] sm:$0xff] }
 0x21d   :  { %v3388_v63 = vcombine.low %v3380_v3, %v3387_v20  ;;  %v2859_v25 = vadd.f32 %v2799_v34, %v6227_v22  ;;  %v3002_v29 = vrot.slane %v2995_v7, %v4116_v27  ;;  %v2574_v14 = vcombine.low %v2424_v42, %v2425_v56  ;;  %v6234_v3 = vld [vmem:[#allocation20_spill] sm:$0xff] }
 0x21e   :  { %v2266_v36 = vpop.permute.xlu0 %2265  ;;  %2680 = vrot.lane.b32.xlu1 %v2573_v1, %s3905_s21  ;;  %v3204_v20 = vrot.slane %v6234_v3, 4  ;;  %v2355_v7 = vsel %vm2333_vm9, %v2268_v26, %v2318_v57 }
 0x21f   :  { %v5779_v2 = vpop.permute.xlu1 %2763  ;;  %3483 = vst.msk [vmem:[%s6106_s5 + $0x1f] sm:$0x3e] %vm2706_vm10, %v3388_v63  ;;  %v3009_v46 = vrot.slane %v2859_v25, %v4116_v27  ;;  %v2317_v23 = vrot.slane %v2266_v36, 2  ;;  %v2581_v39 = vrot.slane %v2574_v14, %v4116_v27  ;;  %v3174_v25 = vadd.f32 %v3144_v28, %v2794_v30  ;;  %v6237_v14 = vld [vmem:[#allocation24_spill] sm:$0xff] }
 0x220   :  { %v2801_v55 = vrot.slane %v5779_v2, 2  ;;  %v2427_v30 = vadd.f32 %v2355_v7, %v5126_v19  ;;  %v6244_v7 = vld [vmem:[#allocation32_spill] sm:$0xff] }
 0x221   :  { %v2354_v47 = vsel %vm2333_vm9, %v2266_v36, %v2317_v23  ;;  %v3010_v10 = vcombine.low %v3002_v29, %v3009_v46  ;;  %v6235_v46 = vld [vmem:[#allocation21_spill] sm:$0xff]  ;;  %v6236_v29 = vld [vmem:[#allocation23_spill] sm:$0xff]  ;;  %v3264_v28 = vadd.f32 %v3204_v20, %v3174_v25 }
 0x222   :  { %v2426_v40 = vadd.f32 %v2354_v47, %v6229_v18  ;;  %v5793_v15 = vpop.permute.xlu0 %2761  ;;  %v2861_v51 = vadd.f32 %v2801_v55, %v6230_v62  ;;  %v3205_v23 = vrot.slane %v6235_v46, 4  ;;  %v3206_v26 = vrot.slane %v6236_v29, 4  ;;  %v6239_v18 = vld [vmem:[#allocation26_spill] sm:$0xff] }
 0x223   :  { %v5791_v11 = vpop.permute.xlu1 %2765  ;;  %v2800_v24 = vrot.slane %v5793_v15, 2  ;;  %3071 = vrot.lane.b32.xlu0 %v3010_v10, %s3904_s2  ;;  %v3209_v47 = vrot.slane %v6237_v14, 4 }
 0x224   :  { %v2802_v43 = vrot.slane %v5791_v11, 2  ;;  %v2588_v54 = vrot.slane %v2426_v40, %v4116_v27  ;;  %v3210_v40 = vrot.slane %v6239_v18, 4 }
 0x225   :  { %v2860_v9 = vadd.f32 %v2800_v24, %v6231_v37 }
 0x226   :  { %v2862_v52 = vadd.f32 %v2802_v43, %v6232_v50  ;;  %v5809_v5 = vpop.permute.xlu0 %2767  ;;  %v2589_v60 = vcombine.low %v2581_v39, %v2588_v54 }
 0x227   :  { %v2272_v0 = vpop.permute.xlu1 %2271  ;;  %v3011_v13 = vcombine.low %v2860_v9, %v2861_v51 }
 0x228   :  { %v2320_v16 = vrot.slane %v2272_v0, 2  ;;  %v3146_v58 = vadd.f32 %v2272_v0, %v6221_v6  ;;  %2682 = vrot.lane.b32.xlu0 %v2589_v60, %s3905_s21  ;;  %v3025_v17 = vrot.slane %v2862_v52, %v4116_v27 }
 0x229   :  { %v3018_v48 = vrot.slane %v3011_v13, %v4116_v27 }
 0x22a   :  { %v3176_v56 = vadd.f32 %v3146_v58, %v2796_v49  ;;  %v2270_v1 = vpop.permute.xlu0 %2269  ;;  %v2357_v41 = vsel %vm2333_vm9, %v2272_v0, %v2320_v16  ;;  %v3208_v49 = vrot.slane %v6238_v35, 4  ;;  %v6240_v0 = vld [vmem:[#allocation27_spill] sm:$0xff]  ;;  %v6242_v58 = vld [vmem:[#allocation30_spill] sm:$0xff] }
 0x22b   :  { %v5821_v63 = vpop.permute.xlu1 %2769  ;;  %v2319_v42 = vrot.slane %v2270_v1, 2  ;;  %v3145_v36 = vadd.f32 %v2270_v1, %v5129_v31  ;;  %v3026_v10 = vcombine.low %v3018_v48, %v3025_v17  ;;  %v2429_v39 = vadd.f32 %v2357_v41, %v6221_v6  ;;  %v6243_v48 = vld [vmem:[#allocation31_spill] sm:$0xff]  ;;  %v6245_v17 = vld [vmem:[#allocation33_spill] sm:$0xff] }
 0x22c   :  { %v3266_v51 = vadd.f32 %v3206_v26, %v3176_v56  ;;  %v3213_v60 = vrot.slane %v6240_v0, 4  ;;  %v3214_v19 = vrot.slane %v6242_v58, 4  ;;  %v3212_v6 = vrot.slane %v6243_v48, 4 }
 0x22d   :  { %v2356_v54 = vsel %vm2333_vm9, %v2270_v1, %v2319_v42  ;;  %v3175_v44 = vadd.f32 %v3145_v36, %v2795_v4  ;;  %3073 = vrot.lane.b32.xlu1 %v3026_v10, %s3904_s2  ;;  %v3211_v4 = vrot.slane %v6241_v21, 4  ;;  %v2803_v1 = vrot.slane %v5809_v5, 2 }
 0x22e   :  { %v2428_v9 = vadd.f32 %v2356_v54, %v5129_v31  ;;  %v2274_v57 = vpop.permute.xlu0 %2273  ;;  %v3217_v31 = vrot.slane %v6244_v7, 4  ;;  %v3403_v42 = vrot.slane %v3266_v51, %v4116_v27  ;;  %v6246_v51 = vld [vmem:[#allocation29_spill] sm:$0xff] }
 0x22f   :  { %v5839_v52 = vpop.permute.xlu1 %2775  ;;  %v3265_v13 = vadd.f32 %v3205_v23, %v3175_v44  ;;  %v3147_v16 = vadd.f32 %v2274_v57, %v6225_v53  ;;  %v2321_v20 = vrot.slane %v2274_v57, 2  ;;  %v2604_v23 = vrot.slane %v2429_v39, %v4116_v27 }
 0x230   :  { %v2590_v3 = vcombine.low %v2427_v30, %v2428_v9  ;;  %v3216_v9 = vrot.slane %v6246_v51, 4  ;;  %v2807_v39 = vrot.slane %v5839_v52, 2 }
 0x231   :  { %v3389_v41 = vcombine.low %v3264_v28, %v3265_v13  ;;  %v3177_v26 = vadd.f32 %v3147_v16, %v2797_v45  ;;  %v6247_v28 = vld [vmem:[#allocation34_spill] sm:$0xff]  ;;  %v2358_v45 = vsel %vm2333_vm9, %v2274_v57, %v2321_v20 }
 0x232   :  { %v2280_v25 = vpop.permute.xlu0 %2279  ;;  %v2597_v46 = vrot.slane %v2590_v3, %v4116_v27  ;;  %v3218_v13 = vrot.slane %v6247_v28, 4  ;;  %v2804_v3 = vrot.slane %v5821_v63, 2 }
 0x233   :  { %v2276_v36 = vpop.permute.xlu1 %2275  ;;  %v3396_v29 = vrot.slane %v3389_v41, %v4116_v27  ;;  %v2324_v10 = vrot.slane %v2280_v25, 2  ;;  %v3150_v35 = vadd.f32 %v2280_v25, %v6231_v37  ;;  %v6248_v41 = vld [vmem:[#allocation10_spill] sm:$0xff]  ;;  %v3267_v63 = vadd.f32 %v3207_v38, %v3177_v26 }
 0x234   :  { %v2322_v54 = vrot.slane %v2276_v36, 2  ;;  %v3148_v44 = vadd.f32 %v2276_v36, %v6224_v61  ;;  %v2605_v30 = vcombine.low %v2597_v46, %v2604_v23  ;;  %v5864_v33 = vadd.f32 %v2803_v1, %v6248_v41 }
 0x235   :  { %v3404_v21 = vcombine.low %v3396_v29, %v3403_v42  ;;  %v2361_v57 = vsel %vm2333_vm9, %v2280_v25, %v2324_v10  ;;  %v3180_v42 = vadd.f32 %v3150_v35, %v2800_v24  ;;  %v5892_v38 = vadd.f32 %v2807_v39, %v6250_v12 }
 0x236   :  { %v2359_v16 = vsel %vm2333_vm9, %v2276_v36, %v2322_v54  ;;  %v3178_v46 = vadd.f32 %v3148_v44, %v2798_v59  ;;  %v5870_v23 = vpop.permute.xlu0 %2773  ;;  %2684 = vrot.lane.b32.xlu1 %v2605_v30, %s3905_s21  ;;  %v6249_v54 = vld [vmem:[#allocation11_spill] sm:$0xff]  ;;  %v2430_v30 = vadd.f32 %v2358_v45, %v6225_v53  ;;  %v5896_v24 = vadd.f32 %v2361_v57, %v6231_v37 }
 0x237   :  { %v2282_v56 = vpop.permute.xlu1 %2281  ;;  %3484 = vst.msk [vmem:[%s6106_s5 + $0x27] sm:$0x3e] %vm2706_vm10, %v3404_v21  ;;  %v2431_v59 = vadd.f32 %v2359_v16, %v6224_v61  ;;  %v2806_v36 = vrot.slane %v5870_v23, 2  ;;  %v5886_v44 = vadd.f32 %v2804_v3, %v6249_v54  ;;  %v3270_v53 = vadd.f32 %v3210_v40, %v3180_v42  ;;  %v6251_v16 = vld [vmem:[#allocation13_spill] sm:$0xff] }
 0x238   :  { %v2325_v32 = vrot.slane %v2282_v56, 2  ;;  %v3268_v20 = vadd.f32 %v3208_v49, %v3178_v46  ;;  %v3151_v29 = vadd.f32 %v2282_v56, %v6230_v62 }
 0x239   :  { %v5907_v37 = vadd.f32 %v2806_v36, %v6251_v16 }
 0x23a   :  { %v2362_v15 = vsel %vm2333_vm9, %v2282_v56, %v2325_v32  ;;  %v3405_v61 = vcombine.low %v3267_v63, %v3268_v20  ;;  %v3181_v25 = vadd.f32 %v3151_v29, %v2801_v55  ;;  %v2278_v26 = vpop.permute.xlu0 %2277  ;;  %v2606_v56 = vcombine.low %v2430_v30, %v2431_v59 }
 0x23b   :  { %v5899_v49 = vadd.f32 %v2362_v15, %v6230_v62  ;;  %v2288_v10 = vpop.permute.xlu1 %2287  ;;  %v2323_v35 = vrot.slane %v2278_v26, 2  ;;  %v3149_v21 = vadd.f32 %v2278_v26, %v6227_v22 }
 0x23c   :  { %v2328_v45 = vrot.slane %v2288_v10, 2  ;;  %v3271_v46 = vadd.f32 %v3211_v4, %v3181_v25  ;;  %v3154_v62 = vadd.f32 %v2288_v10, %v6249_v54  ;;  %v3412_v23 = vrot.slane %v3405_v61, %v4116_v27 }
 0x23d   :  { %v2360_v2 = vsel %vm2333_vm9, %v2278_v26, %v2323_v35  ;;  %v3179_v55 = vadd.f32 %v3149_v21, %v2799_v34  ;;  %v2622_v40 = vcombine.low %v5896_v24, %v5899_v49  ;;  %v2613_v15 = vrot.slane %v2606_v56, %v4116_v27 }
 0x23e   :  { %v2365_v18 = vsel %vm2333_vm9, %v2288_v10, %v2328_v45  ;;  %v3421_v63 = vcombine.low %v3270_v53, %v3271_v46  ;;  %v2432_v57 = vadd.f32 %v2360_v2, %v6227_v22  ;;  %v3184_v42 = vadd.f32 %v3154_v62, %v2804_v3  ;;  %v2286_v32 = vpop.permute.xlu0 %2285 }
 0x23f   :  { %v2284_v4 = vpop.permute.xlu1 %2283  ;;  %v3269_v59 = vadd.f32 %v3209_v47, %v3179_v55  ;;  %v2327_v20 = vrot.slane %v2286_v32, 2  ;;  %v3153_v29 = vadd.f32 %v2286_v32, %v6248_v41  ;;  %v5922_v8 = vadd.f32 %v2365_v18, %v6249_v54 }
 0x240   :  { %v2326_v30 = vrot.slane %v2284_v4, 2  ;;  %v3152_v34 = vadd.f32 %v2284_v4, %v6232_v50  ;;  %v2620_v24 = vrot.slane %v2432_v57, %v4116_v27  ;;  %v5930_v3 = vadd.f32 %v3214_v19, %v3184_v42 }
 0x241   :  { %v3419_v22 = vrot.slane %v3269_v59, %v4116_v27  ;;  %v2364_v14 = vsel %vm2333_vm9, %v2286_v32, %v2327_v20  ;;  %v3183_v47 = vadd.f32 %v3153_v29, %v2803_v1  ;;  %v3428_v5 = vrot.slane %v3421_v63, %v4116_v27 }
 0x242   :  { %v2436_v54 = vadd.f32 %v2364_v14, %v6248_v41  ;;  %v2363_v61 = vsel %vm2333_vm9, %v2284_v4, %v2326_v30  ;;  %v3182_v49 = vadd.f32 %v3152_v34, %v2802_v43  ;;  %v2292_v25 = vpop.permute.xlu0 %2291  ;;  %v2621_v10 = vcombine.low %v2613_v15, %v2620_v24 }
 0x243   :  { %v2294_v26 = vpop.permute.xlu1 %2293  ;;  %v3420_v53 = vcombine.low %v3412_v23, %v3419_v22  ;;  %v5941_v58 = vadd.f32 %v3213_v60, %v3183_v47  ;;  %v2330_v19 = vrot.slane %v2292_v25, 2  ;;  %v3156_v35 = vadd.f32 %v2292_v25, %v6251_v16 }
 0x244   :  { %v3272_v1 = vadd.f32 %v3212_v6, %v3182_v49  ;;  %v2331_v41 = vrot.slane %v2294_v26, 2  ;;  %v3157_v11 = vadd.f32 %v2294_v26, %v6250_v12  ;;  %2686 = vrot.lane.b32.xlu0 %v2621_v10, %s3905_s21  ;;  %v2435_v0 = vadd.f32 %v2363_v61, %v6232_v50 }
 0x245   :  { %3485 = vst.msk [vmem:[%s6106_s5 + $0x2f] sm:$0x3e] %vm2706_vm10, %v3420_v53  ;;  %v3437_v43 = vcombine.low %v5941_v58, %v5930_v3  ;;  %v2367_v60 = vsel %vm2333_vm9, %v2292_v25, %v2330_v19  ;;  %v3186_v21 = vadd.f32 %v3156_v35, %v2806_v36  ;;  %v3043_v23 = vcombine.low %v5907_v37, %v5892_v38 }
 0x246   :  { %v3435_v48 = vrot.slane %v3272_v1, %v4116_v27  ;;  %v2439_v6 = vadd.f32 %v2367_v60, %v6251_v16  ;;  %v2368_v45 = vsel %vm2333_vm9, %v2294_v26, %v2331_v41  ;;  %v3187_v56 = vadd.f32 %v3157_v11, %v2807_v39  ;;  %v2290_v62 = vpop.permute.xlu0 %2289 }
 0x247   :  { %v2296_v46 = vpop.permute.xlu1 %2295  ;;  %v2638_v2 = vcombine.low %v2436_v54, %v5922_v8  ;;  %v2440_v50 = vadd.f32 %v2368_v45, %v6250_v12  ;;  %v3276_v18 = vadd.f32 %v3216_v9, %v3186_v21  ;;  %v2329_v63 = vrot.slane %v2290_v62, 2  ;;  %v6252_v12 = vld [vmem:[#allocation15_spill] sm:$0xff] }
 0x248   :  { %v2332_v55 = vrot.slane %v2296_v46, 2  ;;  %v3436_v36 = vcombine.low %v3428_v5, %v3435_v48  ;;  %v3277_v16 = vadd.f32 %v3217_v31, %v3187_v56  ;;  %v2629_v57 = vrot.slane %v2622_v40, %v4116_v27  ;;  %v6253_v31 = vld [vmem:[#allocation12_spill] sm:$0xff] }
 0x249   :  { %v2654_v52 = vcombine.low %v2439_v6, %v2440_v50  ;;  %v2636_v38 = vrot.slane %v2435_v0, %v4116_v27  ;;  %v3158_v51 = vadd.f32 %v2296_v46, %v6252_v12  ;;  %v2366_v7 = vsel %vm2333_vm9, %v2290_v62, %v2329_v63 }
 0x24a   :  { %v2369_v39 = vsel %vm2333_vm9, %v2296_v46, %v2332_v55  ;;  %3486 = vst.msk [vmem:[%s6106_s5 + $0x37] sm:$0x3e] %vm2706_vm10, %v3436_v36  ;;  %v3155_v9 = vadd.f32 %v2290_v62, %v6253_v31  ;;  %v2772_v32 = vpop.permute.xlu0 %2771  ;;  %v2438_v4 = vadd.f32 %v2366_v7, %v6253_v31  ;;  %v3027_v29 = vcombine.low %v5864_v33, %v5886_v44 }
 0x24b   :  { %v2441_v37 = vadd.f32 %v2369_v39, %v6252_v12  ;;  %v2778_v42 = vpop.permute.xlu1 %2777  ;;  %v2637_v40 = vcombine.low %v2629_v57, %v2636_v38  ;;  %v2805_v20 = vrot.slane %v2772_v32, 2  ;;  %v3453_v30 = vcombine.low %v3276_v18, %v3277_v16 }
 0x24c   :  { %v2808_v59 = vrot.slane %v2778_v42, 2  ;;  %v2661_v8 = vrot.slane %v2654_v52, %v4116_v27  ;;  %v2645_v54 = vrot.slane %v2638_v2, %v4116_v27  ;;  %v2652_v61 = vrot.slane %v2438_v4, %v4116_v27 }
 0x24d   :  { %v2668_v34 = vrot.slane %v2441_v37, %v4116_v27  ;;  %2688 = vrot.lane.b32.xlu1 %v2637_v40, %s3905_s21  ;;  %v2865_v22 = vadd.f32 %v2805_v20, %v6253_v31  ;;  %v3185_v3 = vadd.f32 %v3155_v9, %v2805_v20  ;;  %v3050_v33 = vrot.slane %v3043_v23, %v4116_v27 }
 0x24e   :  { %v2868_v15 = vadd.f32 %v2808_v59, %v6252_v12  ;;  %v3188_v24 = vadd.f32 %v3158_v51, %v2808_v59  ;;  %v3060_v14 = vpop.permute.xlu0 %3059  ;;  %v6254_v26 = vrot.slane %v6245_v17, 4  ;;  %v3444_v53 = vrot.slane %v3437_v43, %v4116_v27 }
 0x24f   :  { %v2669_v47 = vcombine.low %v2661_v8, %v2668_v34  ;;  %v3041_v25 = vrot.slane %v2865_v22, %v4116_v27  ;;  %3089 = vst.msk [vmem:[%s6107_s4] sm:$0x3f] %vm2121_vm1, %v3060_v14  ;;  %v2653_v58 = vcombine.low %v2645_v54, %v2652_v61  ;;  %v3034_v19 = vrot.slane %v3027_v29, %v4116_v27 }
 0x250   :  { %v3057_v44 = vrot.slane %v2868_v15, %v4116_v27  ;;  %v3278_v49 = vadd.f32 %v3218_v13, %v3188_v24  ;;  %v3275_v10 = vadd.f32 %v6254_v26, %v3185_v3  ;;  %v3460_v35 = vrot.slane %v3453_v30, %v4116_v27 }
 0x251   :  { %2692 = vrot.lane.b32.xlu1 %v2669_v47, %s3905_s21  ;;  %2690 = vrot.lane.b32.xlu0 %v2653_v58, %s3905_s21  ;;  %v3042_v5 = vcombine.low %v3034_v19, %v3041_v25 }
 0x252   :  { %v3467_v28 = vrot.slane %v3278_v49, %v4116_v27  ;;  %v3451_v13 = vrot.slane %v3275_v10, %v4116_v27  ;;  %v3058_v17 = vcombine.low %v3050_v33, %v3057_v44 }
 0x254   :  { %v3468_v1 = vcombine.low %v3460_v35, %v3467_v28  ;;  %v3452_v41 = vcombine.low %v3444_v53, %v3451_v13 }
 0x255   :  { %3077 = vrot.lane.b32.xlu1 %v3058_v17, %s3904_s2  ;;  %v3062_v27 = vpop.permute.xlu1 %3061  ;;  %3075 = vrot.lane.b32.xlu0 %v3042_v5, %s3904_s2 }
 0x256   :  { %3488 = vst.msk [vmem:[%s6106_s5 + $0x47] sm:$0x3e] %vm2706_vm10, %v3468_v1  ;;  %3487 = vst.msk [vmem:[%s6106_s5 + $0x3f] sm:$0x3e] %vm2706_vm10, %v3452_v41 }
 0x257   :  { %3090 = vst.msk [vmem:[%s6107_s4 + $0x8] sm:$0x3f] %vm2121_vm1, %v3062_v27 }
 0x25c   :  { %v2671_v11 = vpop.permute.xlu0 %2670 }
 0x25d   :  { %2707 = vst.msk [vmem:[%s6108_s3 - $0x1] sm:$0x3e] %vm2706_vm10, %v2671_v11 }
 0x267   :  { %v2673_v43 = vpop.permute.xlu1 %2672 }
 0x268   :  { %2708 = vst.msk [vmem:[%s6108_s3 + $0x7] sm:$0x3e] %vm2706_vm10, %v2673_v43 }
 0x269   :  { %v3064_v0 = vpop.permute.xlu0 %3063 }
 0x26a   :  { %3091 = vst.msk [vmem:[%s6107_s4 + $0x10] sm:$0x3f] %vm2121_vm1, %v3064_v0 }
 0x26b   :  { %v3066_v60 = vpop.permute.xlu1 %3065 }
 0x26c   :  { %3092 = vst.msk [vmem:[%s6107_s4 + $0x18] sm:$0x3f] %vm2121_vm1, %v3066_v60 }
 0x26e   :  { %v2675_v21 = vpop.permute.xlu0 %2674 }
 0x26f   :  { %2709 = vst.msk [vmem:[%s6108_s3 + $0xf] sm:$0x3e] %vm2706_vm10, %v2675_v21 }
 0x275   :  { %v3068_v48 = vpop.permute.xlu0 %3067 }
 0x276   :  { %3093 = vst.msk [vmem:[%s6107_s4 + $0x20] sm:$0x3f] %vm2121_vm1, %v3068_v48 }
 0x27c   :  { %v2677_v6 = vpop.permute.xlu1 %2676 }
 0x27d   :  { %2710 = vst.msk [vmem:[%s6108_s3 + $0x17] sm:$0x3e] %vm2706_vm10, %v2677_v6 }
 0x286   :  { %v2679_v45 = vpop.permute.xlu0 %2678 }
 0x287   :  { %2711 = vst.msk [vmem:[%s6108_s3 + $0x1f] sm:$0x3e] %vm2706_vm10, %v2679_v45 }
 0x28a   :  { %v3070_v56 = vpop.permute.xlu1 %3069 }
 0x28b   :  { %3094 = vst.msk [vmem:[%s6107_s4 + $0x28] sm:$0x3f] %vm2121_vm1, %v3070_v56 }
 0x290   :  { %v2681_v46 = vpop.permute.xlu1 %2680 }
 0x291   :  { %2712 = vst.msk [vmem:[%s6108_s3 + $0x27] sm:$0x3e] %vm2706_vm10, %v2681_v46 }
 0x295   :  { %v3072_v62 = vpop.permute.xlu0 %3071 }
 0x296   :  { %3095 = vst.msk [vmem:[%s6107_s4 + $0x30] sm:$0x3f] %vm2121_vm1, %v3072_v62 }
 0x29a   :  { %v2683_v23 = vpop.permute.xlu0 %2682 }
 0x29b   :  { %2713 = vst.msk [vmem:[%s6108_s3 + $0x2f] sm:$0x3e] %vm2706_vm10, %v2683_v23 }
 0x29f   :  { %v3074_v2 = vpop.permute.xlu1 %3073 }
 0x2a0   :  { %3096 = vst.msk [vmem:[%s6107_s4 + $0x38] sm:$0x3f] %vm2121_vm1, %v3074_v2 }
 0x2a8   :  { %v2685_v50 = vpop.permute.xlu1 %2684 }
 0x2a9   :  { %2714 = vst.msk [vmem:[%s6108_s3 + $0x37] sm:$0x3e] %vm2706_vm10, %v2685_v50 }
 0x2b6   :  { %v2687_v55 = vpop.permute.xlu0 %2686 }
 0x2b7   :  { %2715 = vst.msk [vmem:[%s6108_s3 + $0x3f] sm:$0x3e] %vm2706_vm10, %v2687_v55 }
 0x2bf   :  { %v2689_v36 = vpop.permute.xlu1 %2688 }
 0x2c0   :  { %2716 = vst.msk [vmem:[%s6108_s3 + $0x47] sm:$0x3e] %vm2706_vm10, %v2689_v36 }
 0x2c3   :  { %v2693_v18 = vpop.permute.xlu1 %2692  ;;  %v2691_v16 = vpop.permute.xlu0 %2690 }
 0x2c4   :  { %2718 = vst.msk [vmem:[%s6108_s3 + $0x57] sm:$0x3e] %vm2706_vm10, %v2693_v18  ;;  %2717 = vst.msk [vmem:[%s6108_s3 + $0x4f] sm:$0x3e] %vm2706_vm10, %v2691_v16 }
 0x2c7   :  { %v3078_v63 = vpop.permute.xlu1 %3077  ;;  %v3076_v52 = vpop.permute.xlu0 %3075 }
 0x2c8   :  { %3098 = vst.msk [vmem:[%s6107_s4 + $0x48] sm:$0x3f] %vm2121_vm1, %v3078_v63  ;;  %3097 = vst.msk [vmem:[%s6107_s4 + $0x40] sm:$0x3f] %vm2121_vm1, %v3076_v52 }

// kernel: model_forward.3
= control target key start
LH: loop header
LB: loop body
LE: loop exit
PB: predicated region body
PF: predicated region fallthrough
CT: control target
= control target key end

     0   :  { %s2761_s21 = smov 0   ;;  %s3279_s0 = inlined_call_operand.vmem [shape: bf16[2,1,2912], index: 0, kind: input, shape index: {}]   ;;  %s3280_s1 = inlined_call_operand.vmem [shape: s8[5824,384], index: 1, kind: input, shape index: {}]   ;;  %s3281_s2 = inlined_call_operand.vmem [shape: f32[1,384], index: 2, kind: input, shape index: {}]   ;;  %s3282_s3 = inlined_call_operand.vmem [shape: f32[1,384], index: 3, kind: input, shape index: {}]   ;;  %s3283_s4 = inlined_call_operand.vmem [shape: f32[2,384], index: 4, kind: input, shape index: {}]   ;;  %s3284_s5 = inlined_call_operand.vmem [shape: f32[2,1], index: 5, kind: input, shape index: {}]   ;;  %s3285_s6 = inlined_call_operand.vmem [shape: f32[2,1], index: 6, kind: output, shape index: {}]  }
   0x1 LB: > { %s2767_s22 = sadd.s32 4294967295, %s2718_s21   ;;  %p2377_p0 = scmp.ge.s32.totalorder %s2718_s21, 1  ;;  %s2718_s21 = sphi %s2761_s21, %s16_s21  }
   0x2   : > { %p218_p1 = scmp.lt.s32.totalorder %s2718_s21, 3 }
   0x4   : > { %p219_p2 = pnand %p2377_p0, %p218_p1 }
   0x5   : > { %p248_p3 = scmp.lt.s32.totalorder (!%p219_p2), %s2767_s22, 1  ;;  %s252_s23 = smul.u32 (!%p219_p2), 91, %s2767_s22 }
   0x6   : > { %222 = sbr.rel (%p219_p2) target bundleno = 975 (0x3cf), region = 44  ;;  %p2379_p5 = scmp.ne.s32.totalorder (!%p219_p2), %s2767_s22, 0 }
   0x7   : > { %p253_p4 = scmp.lt.s32.totalorder (!%p219_p2), %s252_s23, 181 }
   0xd   : > { %s249_s24 = scalar_select %p248_p3, %s2767_s22, 1 }
   0xe   : > { %s3287_s23 = smov (!%p253_p4, %s252_s23), 181  ;;  %263 = sbr.rel (%p2379_p5) target bundleno = 21 (0x15), region = 48 }
   0xf   : > { %s2692_s25 = smul.u32 23, %s249_s24  ;;  %v264_v0 = vlaneseq (!%p2379_p5)  ;;  %v2720_v1 = vmov (!%p2379_p5), 0.0  }
  0x10   : > { %s2693_s29 = smul.u32 24, %s3287_s23 }
  0x11   : > { %s2777_s28 = scalar_lea.vmem %s3279_s0, %s2692_s25  ;;  %vm266_vm0 = vcmp.lt.s32.totalorder (!%p2379_p5), %v264_v0, 384 }
  0x12   : > { %s2782_s8 = scalar_lea.vmem %s3280_s1, %s2693_s29  ;;  %268 = vst.msk [vmem:[#allocation2] sm:$0x7] (!%p2379_p5), %vm266_vm0, %v2720_v1 }
  0x15 PF: > { %v274_v2 = vld [vmem:[%s2782_s8 + $0x8] sm:$0xff]  ;;  %v273_v4 = vld [vmem:[%s2782_s8] sm:$0xff]  ;;  %v276_v18 = vld [vmem:[%s2782_s8 + $0x18] sm:$0xff]  ;;  %v1099_v32 = vlaneseq  ;;  %v2721_v38 = vmov 1966171168   ;;  %vm1263_vm1 = vcmask 785408  }
  0x16   : > { %v346_v3 = vld [vmem:[%s2782_s8 + $0x248] sm:$0xff]  ;;  %v547_v5 = vunpack.c.l.s8.bf16 %v274_v2  ;;  %v550_v6 = vunpack.c.h.s8.bf16 %v274_v2  ;;  %v345_v9 = vld [vmem:[%s2782_s8 + $0x240] sm:$0xff]  ;;  %v546_v10 = vunpack.c.l.s8.bf16 %v273_v4  ;;  %v549_v14 = vunpack.c.h.s8.bf16 %v273_v4  ;;  %v348_v19 = vld [vmem:[%s2782_s8 + $0x258] sm:$0xff]  ;;  %p2382_p6 = scmp.ne.s32.totalorder %s2767_s22, 1 }
  0x17   : > { %v691_v7 = vunpack.c.l.s8.bf16 %v346_v3  ;;  %v694_v8 = vunpack.c.h.s8.bf16 %v346_v3  ;;  %v690_v11 = vunpack.c.l.s8.bf16 %v345_v9  ;;  %v277_v12 = vld [vmem:[%s2782_s8 + $0x20] sm:$0xff]  ;;  %v693_v15 = vunpack.c.h.s8.bf16 %v345_v9  ;;  %v280_v24 = vld [vmem:[%s2782_s8 + $0x38] sm:$0xff]  ;;  %v279_v30 = vld [vmem:[%s2782_s8 + $0x30] sm:$0xff] }
  0x18   : > { %v349_v13 = vld [vmem:[%s2782_s8 + $0x260] sm:$0xff]  ;;  %1267 = vmatprep.subr.bf16.mxu1 %v547_v5  ;;  %v553_v16 = vunpack.c.l.s8.bf16 %v277_v12  ;;  %v552_v20 = vunpack.c.l.s8.bf16 %v276_v18  ;;  %v696_v21 = vunpack.c.l.s8.bf16 %v348_v19  ;;  %v556_v22 = vunpack.c.h.s8.bf16 %v277_v12  ;;  %v352_v25 = vld [vmem:[%s2782_s8 + $0x278] sm:$0xff]  ;;  %v351_v31 = vld [vmem:[%s2782_s8 + $0x270] sm:$0xff] }
  0x19   : > { %1390 = vmatprep.subr.bf16.mxu0 %v691_v7  ;;  %1268 = vmatpush1.bf16.msra.mxu1 %v546_v10  ;;  %v697_v17 = vunpack.c.l.s8.bf16 %v349_v13  ;;  %v700_v23 = vunpack.c.h.s8.bf16 %v349_v13  ;;  %v555_v26 = vunpack.c.h.s8.bf16 %v276_v18  ;;  %v699_v27 = vunpack.c.h.s8.bf16 %v348_v19  ;;  %v270_v35 = vld [vmem:[%s2777_s28] sm:$0xff]  ;;  %v283_v41 = vld [vmem:[%s2782_s8 + $0x50] sm:$0xff]  ;;  %v282_v49 = vld [vmem:[%s2782_s8 + $0x48] sm:$0xff] }
  0x1a   : > { %1391 = vmatpush1.bf16.msra.mxu0 %v690_v11  ;;  %1269 = vmatprep.subr.bf16.mxu1 %v550_v6  ;;  %v559_v28 = vunpack.c.l.s8.bf16 %v280_v24  ;;  %v703_v29 = vunpack.c.l.s8.bf16 %v352_v25  ;;  %v558_v33 = vunpack.c.l.s8.bf16 %v279_v30  ;;  %v702_v34 = vunpack.c.l.s8.bf16 %v351_v31  ;;  %v355_v42 = vld [vmem:[%s2782_s8 + $0x290] sm:$0xff]  ;;  %v354_v50 = vld [vmem:[%s2782_s8 + $0x288] sm:$0xff]  ;;  %v285_v4 = vld [vmem:[%s2782_s8 + $0x60] sm:$0xff] }
  0x1b   : > { %1392 = vmatprep.subr.bf16.mxu0 %v694_v8  ;;  %v562_v36 = vunpack.c.h.s8.bf16 %v280_v24  ;;  %v706_v37 = vunpack.c.h.s8.bf16 %v352_v25  ;;  %v1097_v39 = vunpack.c.l.s4 %v2721_v38  ;;  %v2799_v40 = vshrl.u32 %v1099_v32, 7  ;;  %v286_v60 = vld [vmem:[%s2782_s8 + $0x68] sm:$0xff]  ;;  %v357_v5 = vld [vmem:[%s2782_s8 + $0x2a0] sm:$0xff]  ;;  %v360_v18 = vld [vmem:[%s2782_s8 + $0x2b8] sm:$0xff] }
  0x1c   : > { %v1095_v43 = vcombine.high %v270_v35, %v270_v35  ;;  %v561_v45 = vunpack.c.h.s8.bf16 %v279_v30  ;;  %v705_v46 = vunpack.c.h.s8.bf16 %v351_v31  ;;  %v565_v47 = vunpack.c.l.s8.bf16 %v283_v41  ;;  %v358_v61 = vld [vmem:[%s2782_s8 + $0x2a8] sm:$0xff]  ;;  %v289_v11 = vld [vmem:[%s2782_s8 + $0x80] sm:$0xff]  ;;  %v364_v24 = vld [vmem:[%s2782_s8 + $0x2d8] sm:$0xff] }
  0x1d   : > { %1270 = vmatpush1.bf16.msra.mxu1 %v549_v14  ;;  %v1098_v44 = vunpack.c.0.s8 %v1097_v39  ;;  %v709_v48 = vunpack.c.l.s8.bf16 %v355_v42  ;;  %v564_v54 = vunpack.c.l.s8.bf16 %v282_v49  ;;  %v708_v55 = vunpack.c.l.s8.bf16 %v354_v50  ;;  %v361_v12 = vld [vmem:[%s2782_s8 + $0x2c0] sm:$0xff]  ;;  %v363_v30 = vld [vmem:[%s2782_s8 + $0x2d0] sm:$0xff] }
  0x1e   : > { %1393 = vmatpush1.bf16.msra.mxu0 %v693_v15  ;;  %1271 = vmatprep.subr.bf16.mxu1 %v553_v16  ;;  %v568_v56 = vunpack.c.h.s8.bf16 %v283_v41  ;;  %v712_v57 = vunpack.c.h.s8.bf16 %v355_v42  ;;  %v567_v0 = vunpack.c.h.s8.bf16 %v282_v49  ;;  %v711_v1 = vunpack.c.h.s8.bf16 %v354_v50  ;;  %v298_v50 = vld [vmem:[%s2782_s8 + $0xc8] sm:$0xff] }
  0x1f   : > { %1394 = vmatprep.subr.bf16.mxu0 %v697_v17  ;;  %v2806_v51 = vsub.s32 %v1098_v44, %v2799_v40  ;;  %v571_v2 = vunpack.c.l.s8.bf16 %v286_v60  ;;  %v715_v3 = vunpack.c.l.s8.bf16 %v358_v61  ;;  %v570_v7 = vunpack.c.l.s8.bf16 %v285_v4  ;;  %v288_v17 = vld [vmem:[%s2782_s8 + $0x78] sm:$0xff]  ;;  %v366_v44 = vld [vmem:[%s2782_s8 + $0x2e8] sm:$0xff] }
  0x20   : > { %v714_v8 = vunpack.c.l.s8.bf16 %v357_v5  ;;  %v574_v9 = vunpack.c.h.s8.bf16 %v286_v60  ;;  %v718_v10 = vunpack.c.h.s8.bf16 %v358_v61  ;;  %v573_v13 = vunpack.c.h.s8.bf16 %v285_v4  ;;  %v297_v61 = vld [vmem:[%s2782_s8 + $0xc0] sm:$0xff] }
  0x21   : > { %1272 = vmatpush1.bf16.msra.mxu1 %v552_v20  ;;  %v2809_v52 = vrot.slane %v270_v35, %v2806_v51  ;;  %v2812_v53 = vrot.slane %v1095_v43, %v2806_v51  ;;  %v717_v14 = vunpack.c.h.s8.bf16 %v357_v5  ;;  %v577_v15 = vunpack.c.l.s8.bf16 %v289_v11  ;;  %v294_v43 = vld [vmem:[%s2782_s8 + $0xa8] sm:$0xff] }
  0x22   : > { %1395 = vmatpush1.bf16.msra.mxu0 %v696_v21  ;;  %1273 = vmatprep.subr.bf16.mxu1 %v556_v22  ;;  %v721_v16 = vunpack.c.l.s8.bf16 %v361_v12  ;;  %v576_v19 = vunpack.c.l.s8.bf16 %v288_v17  ;;  %v720_v20 = vunpack.c.l.s8.bf16 %v360_v18  ;;  %v580_v21 = vunpack.c.h.s8.bf16 %v289_v11 }
  0x23   : > { %1396 = vmatprep.subr.bf16.mxu0 %v700_v23  ;;  %v1110_v58 = vcombine.high %v2809_v52, %v2809_v52  ;;  %v1111_v59 = vcombine.high %v2812_v53, %v2812_v53  ;;  %v724_v22 = vunpack.c.h.s8.bf16 %v361_v12  ;;  %v292_v23 = vld [vmem:[%s2782_s8 + $0x98] sm:$0xff]  ;;  %v579_v25 = vunpack.c.h.s8.bf16 %v288_v17 }
  0x24   : > { %v730_v35 = vunpack.c.h.s8.bf16 %v364_v24  ;;  %v729_v39 = vunpack.c.h.s8.bf16 %v363_v30  ;;  %v598_v5 = vunpack.c.h.s8.bf16 %v298_v50  ;;  %v597_v11 = vunpack.c.h.s8.bf16 %v297_v61 }
  0x25   : > { %1274 = vmatpush1.bf16.msra.mxu1 %v555_v26  ;;  %v2821_v62 = vrot.slane %v1110_v58, %v2806_v51  ;;  %v2824_v63 = vrot.slane %v1111_v59, %v2806_v51  ;;  %v723_v26 = vunpack.c.h.s8.bf16 %v360_v18  ;;  %v735_v58 = vunpack.c.h.s8.bf16 %v366_v44 }
  0x26   : > { %1397 = vmatpush1.bf16.msra.mxu0 %v699_v27  ;;  %1275 = vmatprep.subr.bf16.mxu1 %v559_v28  ;;  %v583_v27 = vunpack.c.l.s8.bf16 %v292_v23  ;;  %v727_v28 = vunpack.c.l.s8.bf16 %v364_v24  ;;  %v595_v59 = vunpack.c.l.s8.bf16 %v298_v50  ;;  %vm2724_vm2 = vmmov 0  }
  0x27   : > { %1398 = vmatprep.subr.bf16.mxu0 %v703_v29  ;;  %v2830_v6 = vcombine.high %v2824_v63, %v2824_v63  ;;  %1299 = vmatprep.mubr.bf16.mxu1 %v2821_v62  ;;  %v291_v29 = vld [vmem:[%s2782_s8 + $0x90] sm:$0xff]  ;;  %vm2269_vm3 = vcmp.lt.s32.totalorder %v1099_v32, 384  ;;  %v2294_v32 = vsub.s32 (!%p2382_p6), 2, %v2799_v40  ;;  %vm2322_vm4 = vcmask (!%p2382_p6), 1041408  }
  0x28   : > { %v582_v31 = vunpack.c.l.s8.bf16 %v291_v29  ;;  %v585_v38 = vunpack.c.h.s8.bf16 %v291_v29  ;;  %vm2332_vm5 = vcmask (!%p2382_p6), 1024  }
  0x29   : > { %1276 = vmatpush1.bf16.msra.mxu1 %v558_v33  ;;  %1422 = vmatprep.mubr.bf16.mxu0 %v2830_v6  ;;  %v726_v33 = vunpack.c.l.s8.bf16 %v363_v30 }
  0x2a   : > { %1399 = vmatpush1.bf16.msra.mxu0 %v702_v34  ;;  %1277 = vmatprep.subr.bf16.mxu1 %v562_v36  ;;  %v586_v34 = vunpack.c.h.s8.bf16 %v292_v23  ;;  %v295_v36 = vld [vmem:[%s2782_s8 + $0xb0] sm:$0xff] }
  0x2b   : > { %1400 = vmatprep.subr.bf16.mxu0 %v706_v37  ;;  %v367_v37 = vld [vmem:[%s2782_s8 + $0x2f0] sm:$0xff]  ;;  %v589_v41 = vunpack.c.l.s8.bf16 %v295_v36 }
  0x2c   : > { %v733_v42 = vunpack.c.l.s8.bf16 %v367_v37  ;;  %v736_v49 = vunpack.c.h.s8.bf16 %v367_v37 }
  0x2d   : > { %1278 = vmatpush1.bf16.msra.mxu1 %v561_v45  ;;  %v2847_v45 = vld [vmem:[%s2777_s28 + $0x8] sm:$0xff] }
  0x2e   : > { %1401 = vmatpush1.bf16.msra.mxu0 %v705_v46  ;;  %1279 = vmatprep.subr.bf16.mxu1 %v565_v47  ;;  %v588_v46 = vunpack.c.l.s8.bf16 %v294_v43  ;;  %v732_v47 = vunpack.c.l.s8.bf16 %v366_v44 }
  0x2f   : > { %1402 = vmatprep.subr.bf16.mxu0 %v709_v48  ;;  %v592_v48 = vunpack.c.h.s8.bf16 %v295_v36 }
  0x31   : > { %1280 = vmatpush1.bf16.msra.mxu1 %v564_v54  ;;  %v370_v54 = vld [vmem:[%s2782_s8 + $0x308] sm:$0xff] }
  0x32   : > { %1403 = vmatpush1.bf16.msra.mxu0 %v708_v55  ;;  %1281 = vmatprep.subr.bf16.mxu1 %v568_v56  ;;  %v2853_v55 = vrot.slane %v2847_v45, %v2806_v51  ;;  %v2857_v56 = vrot.slane %v2812_v53, %v2806_v51  ;;  %v739_v60 = vunpack.c.l.s8.bf16 %v370_v54 }
  0x33   : > { %1404 = vmatprep.subr.bf16.mxu0 %v712_v57  ;;  %v591_v57 = vunpack.c.h.s8.bf16 %v294_v43 }
  0x34   : > { %v2869_v53 = vcombine.high %v2857_v56, %v2857_v56 }
  0x35   : > { %1282 = vmatpush1.bf16.msra.mxu1 %v567_v0  ;;  %v369_v0 = vld [vmem:[%s2782_s8 + $0x300] sm:$0xff] }
  0x36   : > { %1405 = vmatpush1.bf16.msra.mxu0 %v711_v1  ;;  %1283 = vmatprep.subr.bf16.mxu1 %v571_v2  ;;  %v1159_v1 = vcombine.high %v2853_v55, %v2853_v55  ;;  %v2865_v2 = vrot.slane %v2809_v52, %v2806_v51  ;;  %v738_v4 = vunpack.c.l.s8.bf16 %v369_v0  ;;  %v2875_v52 = vcombine.high %v2821_v62, %v2821_v62 }
  0x37   : > { %1406 = vmatprep.subr.bf16.mxu0 %v715_v3  ;;  %v594_v3 = vunpack.c.l.s8.bf16 %v297_v61  ;;  %v741_v12 = vunpack.c.h.s8.bf16 %v369_v0 }
  0x39   : > { %1284 = vmatpush1.bf16.msra.mxu1 %v570_v7  ;;  %v742_v7 = vunpack.c.h.s8.bf16 %v370_v54 }
  0x3a   : > { %1407 = vmatpush1.bf16.msra.mxu0 %v714_v8  ;;  %1285 = vmatprep.subr.bf16.mxu1 %v574_v9  ;;  %v301_v8 = vld [vmem:[%s2782_s8 + $0xe0] sm:$0xff] }
  0x3b   : > { %1408 = vmatprep.subr.bf16.mxu0 %v718_v10  ;;  %v373_v9 = vld [vmem:[%s2782_s8 + $0x320] sm:$0xff]  ;;  %v2878_v10 = vrot.slane %v1159_v1, %v2806_v51 }
  0x3d   : > { %1286 = vmatpush1.bf16.msra.mxu1 %v573_v13  ;;  %v601_v13 = vunpack.c.l.s8.bf16 %v301_v8 }
  0x3e   : > { %1409 = vmatpush1.bf16.msra.mxu0 %v717_v14  ;;  %1287 = vmatprep.subr.bf16.mxu1 %v577_v15  ;;  %v745_v14 = vunpack.c.l.s8.bf16 %v373_v9  ;;  %v300_v15 = vld [vmem:[%s2782_s8 + $0xd8] sm:$0xff] }
  0x3f   : > { %1410 = vmatprep.subr.bf16.mxu0 %v721_v16  ;;  %v372_v16 = vld [vmem:[%s2782_s8 + $0x318] sm:$0xff]  ;;  %v600_v17 = vunpack.c.l.s8.bf16 %v300_v15  ;;  %v603_v23 = vunpack.c.h.s8.bf16 %v300_v15 }
  0x40   : > { %v744_v18 = vunpack.c.l.s8.bf16 %v372_v16  ;;  %v747_v24 = vunpack.c.h.s8.bf16 %v372_v16 }
  0x41   : > { %1288 = vmatpush1.bf16.msra.mxu1 %v576_v19  ;;  %v604_v19 = vunpack.c.h.s8.bf16 %v301_v8 }
  0x42   : > { %1411 = vmatpush1.bf16.msra.mxu0 %v720_v20  ;;  %1289 = vmatprep.subr.bf16.mxu1 %v580_v21  ;;  %v748_v20 = vunpack.c.h.s8.bf16 %v373_v9  ;;  %v304_v21 = vld [vmem:[%s2782_s8 + $0xf8] sm:$0xff] }
  0x43   : > { %1412 = vmatprep.subr.bf16.mxu0 %v724_v22  ;;  %v376_v22 = vld [vmem:[%s2782_s8 + $0x338] sm:$0xff] }
  0x45   : > { %1290 = vmatpush1.bf16.msra.mxu1 %v579_v25  ;;  %v607_v25 = vunpack.c.l.s8.bf16 %v304_v21 }
  0x46   : > { %1413 = vmatpush1.bf16.msra.mxu0 %v723_v26  ;;  %1291 = vmatprep.subr.bf16.mxu1 %v583_v27  ;;  %v751_v26 = vunpack.c.l.s8.bf16 %v376_v22  ;;  %v303_v27 = vld [vmem:[%s2782_s8 + $0xf0] sm:$0xff] }
  0x47   : > { %1414 = vmatprep.subr.bf16.mxu0 %v727_v28  ;;  %v375_v28 = vld [vmem:[%s2782_s8 + $0x330] sm:$0xff]  ;;  %v606_v29 = vunpack.c.l.s8.bf16 %v303_v27  ;;  %v609_v36 = vunpack.c.h.s8.bf16 %v303_v27 }
  0x48   : > { %v750_v30 = vunpack.c.l.s8.bf16 %v375_v28  ;;  %v753_v37 = vunpack.c.h.s8.bf16 %v375_v28 }
  0x49   : > { %1292 = vmatpush1.bf16.msra.mxu1 %v582_v31  ;;  %v610_v31 = vunpack.c.h.s8.bf16 %v304_v21 }
  0x4a   : > { %1415 = vmatpush1.bf16.msra.mxu0 %v726_v33  ;;  %1293 = vmatprep.subr.bf16.mxu1 %v586_v34  ;;  %v754_v33 = vunpack.c.h.s8.bf16 %v376_v22  ;;  %v307_v34 = vld [vmem:[%s2782_s8 + $0x110] sm:$0xff] }
  0x4b   : > { %1416 = vmatprep.subr.bf16.mxu0 %v730_v35  ;;  %v379_v35 = vld [vmem:[%s2782_s8 + $0x350] sm:$0xff] }
  0x4d   : > { %1294 = vmatpush1.bf16.msra.mxu1 %v585_v38  ;;  %v613_v38 = vunpack.c.l.s8.bf16 %v307_v34 }
  0x4e   : > { %1417 = vmatpush1.bf16.msra.mxu0 %v729_v39  ;;  %1295 = vmatprep.subr.bf16.mxu1 %v589_v41  ;;  %v757_v39 = vunpack.c.l.s8.bf16 %v379_v35  ;;  %v306_v41 = vld [vmem:[%s2782_s8 + $0x108] sm:$0xff] }
  0x4f   : > { %1418 = vmatprep.subr.bf16.mxu0 %v733_v42  ;;  %v378_v42 = vld [vmem:[%s2782_s8 + $0x348] sm:$0xff]  ;;  %v612_v43 = vunpack.c.l.s8.bf16 %v306_v41  ;;  %v615_v50 = vunpack.c.h.s8.bf16 %v306_v41 }
  0x50   : > { %v756_v44 = vunpack.c.l.s8.bf16 %v378_v42  ;;  %v759_v54 = vunpack.c.h.s8.bf16 %v378_v42 }
  0x51   : > { %1296 = vmatpush1.bf16.msra.mxu1 %v588_v46  ;;  %v616_v46 = vunpack.c.h.s8.bf16 %v307_v34 }
  0x52   : > { %1419 = vmatpush1.bf16.msra.mxu0 %v732_v47  ;;  %1297 = vmatprep.subr.bf16.mxu1 %v592_v48  ;;  %v760_v47 = vunpack.c.h.s8.bf16 %v379_v35  ;;  %v310_v48 = vld [vmem:[%s2782_s8 + $0x128] sm:$0xff] }
  0x53   : > { %1420 = vmatprep.subr.bf16.mxu0 %v736_v49  ;;  %v382_v49 = vld [vmem:[%s2782_s8 + $0x368] sm:$0xff]  ;;  %v622_v1 = vunpack.c.h.s8.bf16 %v310_v48 }
  0x55   : > { %1298 = vmatpush1.bf16.msra.mxu1 %v591_v57  ;;  %v619_v57 = vunpack.c.l.s8.bf16 %v310_v48 }
  0x56   : > { %1421 = vmatpush1.bf16.msra.mxu0 %v735_v58  ;;  %1308 = vmatprep.subr.bf16.mxu1 %v595_v59  ;;  %v763_v58 = vunpack.c.l.s8.bf16 %v382_v49  ;;  %v309_v59 = vld [vmem:[%s2782_s8 + $0x120] sm:$0xff] }
  0x57   : > { %1431 = vmatprep.subr.bf16.mxu0 %v739_v60  ;;  %v381_v60 = vld [vmem:[%s2782_s8 + $0x360] sm:$0xff]  ;;  %v618_v61 = vunpack.c.l.s8.bf16 %v309_v59 }
  0x58   : > { %1300 = vmatmul.mubr.bf16.vlgmr.msra.gmra.mrb[0].mxu1 %v2865_v2  ;;  %v762_v0 = vunpack.c.l.s8.bf16 %v381_v60  ;;  %v765_v8 = vunpack.c.h.s8.bf16 %v381_v60 }
  0x59   : > { %1423 = vmatmul.mubr.bf16.vlgmr.msra.gmra.mrb[0].mxu0 %v2869_v53  ;;  %1309 = vmatpush1.bf16.msra.mxu1 %v594_v3  ;;  %v766_v3 = vunpack.c.h.s8.bf16 %v382_v49 }
  0x5a   : > { %1432 = vmatpush1.bf16.msra.mxu0 %v738_v4  ;;  %1310 = vmatprep.subr.bf16.mxu1 %v598_v5  ;;  %v313_v4 = vld [vmem:[%s2782_s8 + $0x140] sm:$0xff] }
  0x5b   : > { %1433 = vmatprep.subr.bf16.mxu0 %v742_v7  ;;  %1340 = vmatprep.mubr.bf16.mxu1 %v2875_v52  ;;  %v385_v5 = vld [vmem:[%s2782_s8 + $0x380] sm:$0xff]  ;;  %v621_v7 = vunpack.c.h.s8.bf16 %v309_v59  ;;  %v625_v9 = vunpack.c.l.s8.bf16 %v313_v4  ;;  %v628_v16 = vunpack.c.h.s8.bf16 %v313_v4  ;;  %v2920_v59 = vrot.slane %v2853_v55, %v2806_v51 }
  0x5c   : > { %1463 = vmatprep.mubr.bf16.mxu0 %v2878_v10  ;;  %v397_v4 = vld [vmem:[%s2782_s8 + $0x3e0] sm:$0xff] }
  0x5d   : > { %1311 = vmatpush1.bf16.msra.mxu1 %v597_v11  ;;  %v769_v11 = vunpack.c.l.s8.bf16 %v385_v5 }
  0x5e   : > { %1434 = vmatpush1.bf16.msra.mxu0 %v741_v12  ;;  %1312 = vmatprep.subr.bf16.mxu1 %v601_v13  ;;  %v312_v12 = vld [vmem:[%s2782_s8 + $0x138] sm:$0xff] }
  0x5f   : > { %1435 = vmatprep.subr.bf16.mxu0 %v745_v14  ;;  %v384_v13 = vld [vmem:[%s2782_s8 + $0x378] sm:$0xff]  ;;  %v624_v14 = vunpack.c.l.s8.bf16 %v312_v12 }
  0x60   : > { %v768_v15 = vunpack.c.l.s8.bf16 %v384_v13  ;;  %v771_v21 = vunpack.c.h.s8.bf16 %v384_v13 }
  0x61   : > { %1313 = vmatpush1.bf16.msra.mxu1 %v600_v17  ;;  %v772_v17 = vunpack.c.h.s8.bf16 %v385_v5  ;;  %v2926_v5 = vcombine.high %v2878_v10, %v2878_v10 }
  0x62   : > { %1436 = vmatpush1.bf16.msra.mxu0 %v744_v18  ;;  %1314 = vmatprep.subr.bf16.mxu1 %v604_v19  ;;  %v316_v18 = vld [vmem:[%s2782_s8 + $0x158] sm:$0xff] }
  0x63   : > { %1437 = vmatprep.subr.bf16.mxu0 %v748_v20  ;;  %v388_v19 = vld [vmem:[%s2782_s8 + $0x398] sm:$0xff]  ;;  %v627_v20 = vunpack.c.h.s8.bf16 %v312_v12  ;;  %v631_v22 = vunpack.c.l.s8.bf16 %v316_v18  ;;  %v634_v28 = vunpack.c.h.s8.bf16 %v316_v18 }
  0x64   : > { %v396_v12 = vld [vmem:[%s2782_s8 + $0x3d8] sm:$0xff] }
  0x65   : > { %1315 = vmatpush1.bf16.msra.mxu1 %v603_v23  ;;  %v775_v23 = vunpack.c.l.s8.bf16 %v388_v19  ;;  %v400_v18 = vld [vmem:[%s2782_s8 + $0x3f8] sm:$0xff] }
  0x66   : > { %1438 = vmatpush1.bf16.msra.mxu0 %v747_v24  ;;  %1316 = vmatprep.subr.bf16.mxu1 %v607_v25  ;;  %v315_v24 = vld [vmem:[%s2782_s8 + $0x150] sm:$0xff] }
  0x67   : > { %1439 = vmatprep.subr.bf16.mxu0 %v751_v26  ;;  %v387_v25 = vld [vmem:[%s2782_s8 + $0x390] sm:$0xff]  ;;  %v630_v26 = vunpack.c.l.s8.bf16 %v315_v24 }
  0x68   : > { %v774_v27 = vunpack.c.l.s8.bf16 %v387_v25  ;;  %v777_v34 = vunpack.c.h.s8.bf16 %v387_v25 }
  0x69   : > { %1317 = vmatpush1.bf16.msra.mxu1 %v606_v29  ;;  %v778_v29 = vunpack.c.h.s8.bf16 %v388_v19 }
  0x6a   : > { %1440 = vmatpush1.bf16.msra.mxu0 %v750_v30  ;;  %1318 = vmatprep.subr.bf16.mxu1 %v610_v31  ;;  %v319_v30 = vld [vmem:[%s2782_s8 + $0x170] sm:$0xff] }
  0x6b   : > { %1441 = vmatprep.subr.bf16.mxu0 %v754_v33  ;;  %v391_v31 = vld [vmem:[%s2782_s8 + $0x3b0] sm:$0xff]  ;;  %v633_v33 = vunpack.c.h.s8.bf16 %v315_v24  ;;  %v637_v35 = vunpack.c.l.s8.bf16 %v319_v30  ;;  %v640_v42 = vunpack.c.h.s8.bf16 %v319_v30 }
  0x6c   : > { %v399_v24 = vld [vmem:[%s2782_s8 + $0x3f0] sm:$0xff] }
  0x6d   : > { %1319 = vmatpush1.bf16.msra.mxu1 %v609_v36  ;;  %v781_v36 = vunpack.c.l.s8.bf16 %v391_v31  ;;  %v403_v30 = vld [vmem:[%s2782_s8 + $0x410] sm:$0xff] }
  0x6e   : > { %1442 = vmatpush1.bf16.msra.mxu0 %v753_v37  ;;  %1320 = vmatprep.subr.bf16.mxu1 %v613_v38  ;;  %v318_v37 = vld [vmem:[%s2782_s8 + $0x168] sm:$0xff] }
  0x6f   : > { %1443 = vmatprep.subr.bf16.mxu0 %v757_v39  ;;  %v390_v38 = vld [vmem:[%s2782_s8 + $0x3a8] sm:$0xff]  ;;  %v636_v39 = vunpack.c.l.s8.bf16 %v318_v37 }
  0x70   : > { %v780_v41 = vunpack.c.l.s8.bf16 %v390_v38  ;;  %v783_v48 = vunpack.c.h.s8.bf16 %v390_v38 }
  0x71   : > { %1321 = vmatpush1.bf16.msra.mxu1 %v612_v43  ;;  %v784_v43 = vunpack.c.h.s8.bf16 %v391_v31 }
  0x72   : > { %1444 = vmatpush1.bf16.msra.mxu0 %v756_v44  ;;  %1322 = vmatprep.subr.bf16.mxu1 %v616_v46  ;;  %v322_v44 = vld [vmem:[%s2782_s8 + $0x188] sm:$0xff] }
  0x73   : > { %1445 = vmatprep.subr.bf16.mxu0 %v760_v47  ;;  %v394_v46 = vld [vmem:[%s2782_s8 + $0x3c8] sm:$0xff]  ;;  %v639_v47 = vunpack.c.h.s8.bf16 %v318_v37  ;;  %v643_v49 = vunpack.c.l.s8.bf16 %v322_v44 }
  0x74   : > { %v402_v37 = vld [vmem:[%s2782_s8 + $0x408] sm:$0xff] }
  0x75   : > { %1323 = vmatpush1.bf16.msra.mxu1 %v615_v50  ;;  %v787_v50 = vunpack.c.l.s8.bf16 %v394_v46 }
  0x76   : > { %1446 = vmatpush1.bf16.msra.mxu0 %v759_v54  ;;  %1324 = vmatprep.subr.bf16.mxu1 %v619_v57  ;;  %v321_v54 = vld [vmem:[%s2782_s8 + $0x180] sm:$0xff] }
  0x77   : > { %1447 = vmatprep.subr.bf16.mxu0 %v763_v58  ;;  %v393_v57 = vld [vmem:[%s2782_s8 + $0x3c0] sm:$0xff]  ;;  %v2916_v58 = vcombine.high %v2865_v2, %v2865_v2  ;;  %v642_v60 = vunpack.c.l.s8.bf16 %v321_v54  ;;  %v645_v55 = vunpack.c.h.s8.bf16 %v321_v54 }
  0x78   : > { %v405_v54 = vld [vmem:[%s2782_s8 + $0x420] sm:$0xff] }
  0x79   : > { %1325 = vmatpush1.bf16.msra.mxu1 %v618_v61  ;;  %v786_v61 = vunpack.c.l.s8.bf16 %v393_v57 }
  0x7a   : > { %1448 = vmatpush1.bf16.msra.mxu0 %v762_v0  ;;  %1326 = vmatprep.subr.bf16.mxu1 %v622_v1  ;;  %v646_v0 = vunpack.c.h.s8.bf16 %v322_v44  ;;  %v790_v1 = vunpack.c.h.s8.bf16 %v394_v46  ;;  %v406_v44 = vld [vmem:[%s2782_s8 + $0x428] sm:$0xff] }
  0x7b   : > { %1449 = vmatprep.subr.bf16.mxu0 %v766_v3  ;;  %v325_v3 = vld [vmem:[%s2782_s8 + $0x1a0] sm:$0xff] }
  0x7d   : > { %1327 = vmatpush1.bf16.msra.mxu1 %v621_v7  ;;  %v789_v7 = vunpack.c.h.s8.bf16 %v393_v57 }
  0x7e   : > { %1450 = vmatpush1.bf16.msra.mxu0 %v765_v8  ;;  %1328 = vmatprep.subr.bf16.mxu1 %v625_v9  ;;  %v649_v8 = vunpack.c.l.s8.bf16 %v325_v3  ;;  %v793_v9 = vunpack.c.l.s8.bf16 %v397_v4 }
  0x7f   : > { %1451 = vmatprep.subr.bf16.mxu0 %v769_v11  ;;  %v324_v11 = vld [vmem:[%s2782_s8 + $0x198] sm:$0xff] }
  0x80   : > { %v648_v13 = vunpack.c.l.s8.bf16 %v324_v11  ;;  %v651_v19 = vunpack.c.h.s8.bf16 %v324_v11  ;;  %v408_v11 = vld [vmem:[%s2782_s8 + $0x438] sm:$0xff] }
  0x81   : > { %1329 = vmatpush1.bf16.msra.mxu1 %v624_v14  ;;  %v792_v14 = vunpack.c.l.s8.bf16 %v396_v12 }
  0x82   : > { %1452 = vmatpush1.bf16.msra.mxu0 %v768_v15  ;;  %1330 = vmatprep.subr.bf16.mxu1 %v628_v16  ;;  %v652_v15 = vunpack.c.h.s8.bf16 %v325_v3  ;;  %v796_v16 = vunpack.c.h.s8.bf16 %v397_v4  ;;  %v409_v3 = vld [vmem:[%s2782_s8 + $0x440] sm:$0xff] }
  0x83   : > { %1453 = vmatprep.subr.bf16.mxu0 %v772_v17  ;;  %v328_v17 = vld [vmem:[%s2782_s8 + $0x1b8] sm:$0xff] }
  0x85   : > { %1331 = vmatpush1.bf16.msra.mxu1 %v627_v20  ;;  %v795_v20 = vunpack.c.h.s8.bf16 %v396_v12 }
  0x86   : > { %1454 = vmatpush1.bf16.msra.mxu0 %v771_v21  ;;  %1332 = vmatprep.subr.bf16.mxu1 %v631_v22  ;;  %v655_v21 = vunpack.c.l.s8.bf16 %v328_v17  ;;  %v799_v22 = vunpack.c.l.s8.bf16 %v400_v18 }
  0x87   : > { %1455 = vmatprep.subr.bf16.mxu0 %v775_v23  ;;  %v327_v23 = vld [vmem:[%s2782_s8 + $0x1b0] sm:$0xff] }
  0x88   : > { %v654_v25 = vunpack.c.l.s8.bf16 %v327_v23  ;;  %v657_v31 = vunpack.c.h.s8.bf16 %v327_v23  ;;  %v411_v23 = vld [vmem:[%s2782_s8 + $0x450] sm:$0xff] }
  0x89   : > { %1333 = vmatpush1.bf16.msra.mxu1 %v630_v26  ;;  %v798_v26 = vunpack.c.l.s8.bf16 %v399_v24 }
  0x8a   : > { %1456 = vmatpush1.bf16.msra.mxu0 %v774_v27  ;;  %1334 = vmatprep.subr.bf16.mxu1 %v634_v28  ;;  %v658_v27 = vunpack.c.h.s8.bf16 %v328_v17  ;;  %v802_v28 = vunpack.c.h.s8.bf16 %v400_v18  ;;  %v412_v17 = vld [vmem:[%s2782_s8 + $0x458] sm:$0xff] }
  0x8b   : > { %1457 = vmatprep.subr.bf16.mxu0 %v778_v29  ;;  %v331_v29 = vld [vmem:[%s2782_s8 + $0x1d0] sm:$0xff] }
  0x8d   : > { %1335 = vmatpush1.bf16.msra.mxu1 %v633_v33  ;;  %v801_v33 = vunpack.c.h.s8.bf16 %v399_v24 }
  0x8e   : > { %1458 = vmatpush1.bf16.msra.mxu0 %v777_v34  ;;  %1336 = vmatprep.subr.bf16.mxu1 %v637_v35  ;;  %v661_v34 = vunpack.c.l.s8.bf16 %v331_v29  ;;  %v805_v35 = vunpack.c.l.s8.bf16 %v403_v30 }
  0x8f   : > { %1459 = vmatprep.subr.bf16.mxu0 %v781_v36  ;;  %v330_v36 = vld [vmem:[%s2782_s8 + $0x1c8] sm:$0xff] }
  0x90   : > { %v660_v38 = vunpack.c.l.s8.bf16 %v330_v36  ;;  %v663_v46 = vunpack.c.h.s8.bf16 %v330_v36  ;;  %v414_v36 = vld [vmem:[%s2782_s8 + $0x468] sm:$0xff] }
  0x91   : > { %1337 = vmatpush1.bf16.msra.mxu1 %v636_v39  ;;  %v804_v39 = vunpack.c.l.s8.bf16 %v402_v37 }
  0x92   : > { %1460 = vmatpush1.bf16.msra.mxu0 %v780_v41  ;;  %1338 = vmatprep.subr.bf16.mxu1 %v640_v42  ;;  %v664_v41 = vunpack.c.h.s8.bf16 %v331_v29  ;;  %v808_v42 = vunpack.c.h.s8.bf16 %v403_v30  ;;  %v415_v29 = vld [vmem:[%s2782_s8 + $0x470] sm:$0xff] }
  0x93   : > { %1461 = vmatprep.subr.bf16.mxu0 %v784_v43  ;;  %v334_v43 = vld [vmem:[%s2782_s8 + $0x1e8] sm:$0xff] }
  0x95   : > { %1339 = vmatpush1.bf16.msra.mxu1 %v639_v47  ;;  %v807_v47 = vunpack.c.h.s8.bf16 %v402_v37  ;;  %v1144_v37 = vcombine.high %v2847_v45, %v2847_v45 }
  0x96   : > { %1462 = vmatpush1.bf16.msra.mxu0 %v783_v48  ;;  %1349 = vmatprep.subr.bf16.mxu1 %v643_v49  ;;  %v667_v48 = vunpack.c.l.s8.bf16 %v334_v43  ;;  %v811_v49 = vunpack.c.l.s8.bf16 %v406_v44 }
  0x97   : > { %1472 = vmatprep.subr.bf16.mxu0 %v787_v50  ;;  %v333_v50 = vld [vmem:[%s2782_s8 + $0x1e0] sm:$0xff] }
  0x98   : > { %1341 = vmatmul.mubr.bf16.vlgmr.msra.gmra.mrb[0].mxu1 %v2916_v58  ;;  %v666_v57 = vunpack.c.l.s8.bf16 %v333_v50  ;;  %v669_v4 = vunpack.c.h.s8.bf16 %v333_v50  ;;  %v417_v50 = vld [vmem:[%s2782_s8 + $0x480] sm:$0xff] }
  0x99   : > { %1464 = vmatmul.mubr.bf16.vlgmr.msra.gmra.mrb[0].mxu0 %v2920_v59  ;;  %1350 = vmatpush1.bf16.msra.mxu1 %v642_v60  ;;  %v810_v60 = vunpack.c.l.s8.bf16 %v405_v54 }
  0x9a   : > { %1473 = vmatpush1.bf16.msra.mxu0 %v786_v61  ;;  %1351 = vmatprep.subr.bf16.mxu1 %v646_v0  ;;  %v670_v61 = vunpack.c.h.s8.bf16 %v334_v43  ;;  %v814_v0 = vunpack.c.h.s8.bf16 %v406_v44  ;;  %v418_v43 = vld [vmem:[%s2782_s8 + $0x488] sm:$0xff]  ;;  %v287_v44 = vld [vmem:[%s2782_s8 + $0x70] sm:$0xff] }
  0x9b   : > { %1474 = vmatprep.subr.bf16.mxu0 %v790_v1  ;;  %1381 = vmatprep.mubr.bf16.mxu1 %v2824_v63  ;;  %v337_v1 = vld [vmem:[%s2782_s8 + $0x200] sm:$0xff]  ;;  %v835_v45 = vunpack.c.l.s8.bf16 %v418_v43 }
  0x9c   : > { %1504 = vmatprep.mubr.bf16.mxu0 %v2926_v5 }
  0x9d   : > { %1352 = vmatpush1.bf16.msra.mxu1 %v645_v55  ;;  %v813_v55 = vunpack.c.h.s8.bf16 %v405_v54  ;;  %v275_v54 = vld [vmem:[%s2782_s8 + $0x10] sm:$0xff] }
  0x9e   : > { %1475 = vmatpush1.bf16.msra.mxu0 %v789_v7  ;;  %1353 = vmatprep.subr.bf16.mxu1 %v649_v8  ;;  %v673_v7 = vunpack.c.l.s8.bf16 %v337_v1  ;;  %v817_v8 = vunpack.c.l.s8.bf16 %v409_v3 }
  0x9f   : > { %1476 = vmatprep.subr.bf16.mxu0 %v793_v9  ;;  %v336_v9 = vld [vmem:[%s2782_s8 + $0x1f8] sm:$0xff] }
  0xa0   : > { %v672_v12 = vunpack.c.l.s8.bf16 %v336_v9  ;;  %v675_v18 = vunpack.c.h.s8.bf16 %v336_v9  ;;  %v551_v9 = vunpack.c.h.s8.bf16 %v275_v54 }
  0xa1   : > { %1354 = vmatpush1.bf16.msra.mxu1 %v648_v13  ;;  %v816_v13 = vunpack.c.l.s8.bf16 %v408_v11 }
  0xa2   : > { %1477 = vmatpush1.bf16.msra.mxu0 %v792_v14  ;;  %1355 = vmatprep.subr.bf16.mxu1 %v652_v15  ;;  %v676_v14 = vunpack.c.h.s8.bf16 %v337_v1  ;;  %v820_v15 = vunpack.c.h.s8.bf16 %v409_v3  ;;  %v838_v1 = vunpack.c.h.s8.bf16 %v418_v43  ;;  %v575_v3 = vunpack.c.h.s8.bf16 %v287_v44 }
  0xa3   : > { %1478 = vmatprep.subr.bf16.mxu0 %v796_v16  ;;  %v340_v16 = vld [vmem:[%s2782_s8 + $0x218] sm:$0xff] }
  0xa5   : > { %1356 = vmatpush1.bf16.msra.mxu1 %v651_v19  ;;  %v819_v19 = vunpack.c.h.s8.bf16 %v408_v11 }
  0xa6   : > { %1479 = vmatpush1.bf16.msra.mxu0 %v795_v20  ;;  %1357 = vmatprep.subr.bf16.mxu1 %v655_v21  ;;  %v679_v20 = vunpack.c.l.s8.bf16 %v340_v16  ;;  %v823_v21 = vunpack.c.l.s8.bf16 %v412_v17 }
  0xa7   : > { %1480 = vmatprep.subr.bf16.mxu0 %v799_v22  ;;  %v339_v22 = vld [vmem:[%s2782_s8 + $0x210] sm:$0xff] }
  0xa8   : > { %v678_v24 = vunpack.c.l.s8.bf16 %v339_v22  ;;  %v681_v30 = vunpack.c.h.s8.bf16 %v339_v22 }
  0xa9   : > { %1358 = vmatpush1.bf16.msra.mxu1 %v654_v25  ;;  %v822_v25 = vunpack.c.l.s8.bf16 %v411_v23 }
  0xaa   : > { %1481 = vmatpush1.bf16.msra.mxu0 %v798_v26  ;;  %1359 = vmatprep.subr.bf16.mxu1 %v658_v27  ;;  %v682_v26 = vunpack.c.h.s8.bf16 %v340_v16  ;;  %v826_v27 = vunpack.c.h.s8.bf16 %v412_v17 }
  0xab   : > { %1482 = vmatprep.subr.bf16.mxu0 %v802_v28  ;;  %v343_v28 = vld [vmem:[%s2782_s8 + $0x230] sm:$0xff] }
  0xad   : > { %1360 = vmatpush1.bf16.msra.mxu1 %v657_v31  ;;  %v825_v31 = vunpack.c.h.s8.bf16 %v411_v23 }
  0xae   : > { %1483 = vmatpush1.bf16.msra.mxu0 %v801_v33  ;;  %1361 = vmatprep.subr.bf16.mxu1 %v661_v34  ;;  %v685_v33 = vunpack.c.l.s8.bf16 %v343_v28  ;;  %v829_v34 = vunpack.c.l.s8.bf16 %v415_v29 }
  0xaf   : > { %1484 = vmatprep.subr.bf16.mxu0 %v805_v35  ;;  %v342_v35 = vld [vmem:[%s2782_s8 + $0x228] sm:$0xff] }
  0xb1   : > { %1362 = vmatpush1.bf16.msra.mxu1 %v660_v38  ;;  %v684_v38 = vunpack.c.l.s8.bf16 %v342_v35 }
  0xb2   : > { %1485 = vmatpush1.bf16.msra.mxu0 %v804_v39  ;;  %1363 = vmatprep.subr.bf16.mxu1 %v664_v41  ;;  %v828_v39 = vunpack.c.l.s8.bf16 %v414_v36  ;;  %v688_v41 = vunpack.c.h.s8.bf16 %v343_v28 }
  0xb3   : > { %1486 = vmatprep.subr.bf16.mxu0 %v808_v42  ;;  %v832_v42 = vunpack.c.h.s8.bf16 %v415_v29 }
  0xb5   : > { %1364 = vmatpush1.bf16.msra.mxu1 %v663_v46  ;;  %v2963_v46 = vrot.slane %v1144_v37, %v2806_v51  ;;  %v426_v37 = vld [vmem:[%s2782_s8 + $0x4c8] sm:$0xff] }
  0xb6   : > { %1487 = vmatpush1.bf16.msra.mxu0 %v807_v47  ;;  %1365 = vmatprep.subr.bf16.mxu1 %v667_v48  ;;  %v687_v47 = vunpack.c.h.s8.bf16 %v342_v35  ;;  %v831_v48 = vunpack.c.h.s8.bf16 %v414_v36 }
  0xb7   : > { %1488 = vmatprep.subr.bf16.mxu0 %v811_v49  ;;  %v572_v49 = vunpack.c.l.s8.bf16 %v287_v44  ;;  %v430_v44 = vld [vmem:[%s2782_s8 + $0x4e8] sm:$0xff] }
  0xb9   : > { %1366 = vmatpush1.bf16.msra.mxu1 %v666_v57  ;;  %v1160_v57 = vcombine.high %v2963_v46, %v2963_v46 }
  0xba   : > { %1489 = vmatpush1.bf16.msra.mxu0 %v810_v60  ;;  %1367 = vmatprep.subr.bf16.mxu1 %v670_v61  ;;  %v2971_v60 = vcombine.high %v2920_v59, %v2920_v59  ;;  %v834_v61 = vunpack.c.l.s8.bf16 %v417_v50 }
  0xbb   : > { %1490 = vmatprep.subr.bf16.mxu0 %v814_v0  ;;  %v548_v0 = vunpack.c.l.s8.bf16 %v275_v54  ;;  %v429_v54 = vld [vmem:[%s2782_s8 + $0x4e0] sm:$0xff] }
  0xbd   : > { %1368 = vmatpush1.bf16.msra.mxu1 %v669_v4  ;;  %v421_v4 = vld [vmem:[%s2782_s8 + $0x4a0] sm:$0xff] }
  0xbe   : > { %1491 = vmatpush1.bf16.msra.mxu0 %v813_v55  ;;  %1369 = vmatprep.subr.bf16.mxu1 %v673_v7  ;;  %v290_v55 = vld [vmem:[%s2782_s8 + $0x88] sm:$0xff]  ;;  %v2976_v7 = vrot.slane %v1160_v57, %v2806_v51  ;;  %v841_v11 = vunpack.c.l.s8.bf16 %v421_v4  ;;  %v844_v17 = vunpack.c.h.s8.bf16 %v421_v4  ;;  %v299_v57 = vld [vmem:[%s2782_s8 + $0xd0] sm:$0xff]  ;;  %v433_v4 = vld [vmem:[%s2782_s8 + $0x500] sm:$0xff] }
  0xbf   : > { %1492 = vmatprep.subr.bf16.mxu0 %v817_v8  ;;  %v837_v8 = vunpack.c.h.s8.bf16 %v417_v50 }
  0xc1   : > { %1370 = vmatpush1.bf16.msra.mxu1 %v672_v12  ;;  %v578_v12 = vunpack.c.l.s8.bf16 %v290_v55 }
  0xc2   : > { %1493 = vmatpush1.bf16.msra.mxu0 %v816_v13  ;;  %1371 = vmatprep.subr.bf16.mxu1 %v676_v14  ;;  %v420_v13 = vld [vmem:[%s2782_s8 + $0x498] sm:$0xff]  ;;  %v278_v14 = vld [vmem:[%s2782_s8 + $0x28] sm:$0xff] }
  0xc3   : > { %1494 = vmatprep.subr.bf16.mxu0 %v820_v15  ;;  %v840_v15 = vunpack.c.l.s8.bf16 %v420_v13  ;;  %v554_v16 = vunpack.c.l.s8.bf16 %v278_v14  ;;  %v557_v22 = vunpack.c.h.s8.bf16 %v278_v14  ;;  %v302_v14 = vld [vmem:[%s2782_s8 + $0xe8] sm:$0xff] }
  0xc5   : > { %1372 = vmatpush1.bf16.msra.mxu1 %v675_v18  ;;  %v581_v18 = vunpack.c.h.s8.bf16 %v290_v55  ;;  %v314_v55 = vld [vmem:[%s2782_s8 + $0x148] sm:$0xff] }
  0xc6   : > { %1495 = vmatpush1.bf16.msra.mxu0 %v819_v19  ;;  %1373 = vmatprep.subr.bf16.mxu1 %v679_v20  ;;  %v424_v19 = vld [vmem:[%s2782_s8 + $0x4b8] sm:$0xff]  ;;  %v293_v20 = vld [vmem:[%s2782_s8 + $0xa0] sm:$0xff] }
  0xc7   : > { %1496 = vmatprep.subr.bf16.mxu0 %v823_v21  ;;  %v843_v21 = vunpack.c.h.s8.bf16 %v420_v13  ;;  %v584_v23 = vunpack.c.l.s8.bf16 %v293_v20  ;;  %v850_v28 = vunpack.c.h.s8.bf16 %v424_v19  ;;  %v587_v29 = vunpack.c.h.s8.bf16 %v293_v20  ;;  %v432_v13 = vld [vmem:[%s2782_s8 + $0x4f8] sm:$0xff] }
  0xc8   : > { %v867_v20 = vunpack.c.h.s8.bf16 %v432_v13 }
  0xc9   : > { %1374 = vmatpush1.bf16.msra.mxu1 %v678_v24  ;;  %v423_v24 = vld [vmem:[%s2782_s8 + $0x4b0] sm:$0xff] }
  0xca   : > { %1497 = vmatpush1.bf16.msra.mxu0 %v822_v25  ;;  %1375 = vmatprep.subr.bf16.mxu1 %v682_v26  ;;  %v281_v25 = vld [vmem:[%s2782_s8 + $0x40] sm:$0xff]  ;;  %v846_v26 = vunpack.c.l.s8.bf16 %v423_v24 }
  0xcb   : > { %1498 = vmatprep.subr.bf16.mxu0 %v826_v27  ;;  %v560_v27 = vunpack.c.l.s8.bf16 %v281_v25 }
  0xcd   : > { %1376 = vmatpush1.bf16.msra.mxu1 %v681_v30  ;;  %v427_v30 = vld [vmem:[%s2782_s8 + $0x4d0] sm:$0xff] }
  0xce   : > { %1499 = vmatpush1.bf16.msra.mxu0 %v825_v31  ;;  %1377 = vmatprep.subr.bf16.mxu1 %v685_v33  ;;  %v296_v31 = vld [vmem:[%s2782_s8 + $0xb8] sm:$0xff]  ;;  %v849_v33 = vunpack.c.h.s8.bf16 %v423_v24  ;;  %v853_v35 = vunpack.c.l.s8.bf16 %v427_v30 }
  0xcf   : > { %1500 = vmatprep.subr.bf16.mxu0 %v829_v34  ;;  %v563_v34 = vunpack.c.h.s8.bf16 %v281_v25  ;;  %v590_v36 = vunpack.c.l.s8.bf16 %v296_v31  ;;  %v593_v43 = vunpack.c.h.s8.bf16 %v296_v31 }
  0xd1   : > { %1378 = vmatpush1.bf16.msra.mxu1 %v684_v38  ;;  %v284_v38 = vld [vmem:[%s2782_s8 + $0x58] sm:$0xff] }
  0xd2   : > { %1501 = vmatpush1.bf16.msra.mxu0 %v828_v39  ;;  %1379 = vmatprep.subr.bf16.mxu1 %v688_v41  ;;  %v852_v39 = vunpack.c.l.s8.bf16 %v426_v37  ;;  %v566_v41 = vunpack.c.l.s8.bf16 %v284_v38 }
  0xd3   : > { %1502 = vmatprep.subr.bf16.mxu0 %v832_v42  ;;  %v856_v42 = vunpack.c.h.s8.bf16 %v427_v30 }
  0xd5   : > { %1380 = vmatpush1.bf16.msra.mxu1 %v687_v47  ;;  %v311_v47 = vld [vmem:[%s2782_s8 + $0x130] sm:$0xff] }
  0xd6   : > { %1503 = vmatpush1.bf16.msra.mxu0 %v831_v48  ;;  %2385 = vmatprep.subr.bf16.mxu1 %v572_v49  ;;  %v855_v48 = vunpack.c.h.s8.bf16 %v426_v37  ;;  %v859_v49 = vunpack.c.l.s8.bf16 %v430_v44  ;;  %v620_v50 = vunpack.c.l.s8.bf16 %v311_v47 }
  0xd7   : > { %1513 = vmatprep.subr.bf16.mxu0 %v835_v45  ;;  %v569_v45 = vunpack.c.h.s8.bf16 %v284_v38 }
  0xd8   : > { %1382 = vmatmul.mubr.bf16.vlgmr.msra.gmra.mrb[0].mxu1 %v2857_v56 }
  0xd9   : > { %1505 = vmatmul.mubr.bf16.vlgmr.msra.gmra.mrb[0].mxu0 %v2971_v60  ;;  %2386 = vmatpush3.bf16.msra.mxu1 %v548_v0  ;;  %v596_v0 = vunpack.c.l.s8.bf16 %v299_v57 }
  0xda   : > { %1514 = vmatpush1.bf16.msra.mxu0 %v834_v61  ;;  %2387 = vmatprep.subr.bf16.mxu1 %v575_v3  ;;  %v858_v61 = vunpack.c.l.s8.bf16 %v429_v54  ;;  %v623_v3 = vunpack.c.h.s8.bf16 %v311_v47 }
  0xdb   : > { %1515 = vmatprep.subr.bf16.mxu0 %v838_v1  ;;  %1791 = vmatprep.mubr.bf16.mxu1 %v2821_v62  ;;  %v847_v62 = vunpack.c.l.s8.bf16 %v424_v19  ;;  %v862_v1 = vunpack.c.h.s8.bf16 %v430_v44  ;;  %v317_v19 = vld [vmem:[%s2782_s8 + $0x160] sm:$0xff] }
  0xdc   : > { %1545 = vmatprep.mubr.bf16.mxu0 %v2976_v7 }
  0xdd   : > { %2388 = vmatpush3.bf16.msra.mxu1 %v551_v9  ;;  %v599_v9 = vunpack.c.h.s8.bf16 %v299_v57 }
  0xde   : > { %1516 = vmatpush1.bf16.msra.mxu0 %v837_v8  ;;  %2389 = vmatprep.subr.bf16.mxu1 %v578_v12  ;;  %v861_v8 = vunpack.c.h.s8.bf16 %v429_v54  ;;  %v626_v12 = vunpack.c.l.s8.bf16 %v314_v55  ;;  %v3016_v54 = vrot.slane %v2963_v46, %v2806_v51 }
  0xdf   : > { %1517 = vmatprep.subr.bf16.mxu0 %v841_v11  ;;  %v865_v11 = vunpack.c.l.s8.bf16 %v433_v4 }
  0xe1   : > { %2390 = vmatpush3.bf16.msra.mxu1 %v554_v16  ;;  %v602_v16 = vunpack.c.l.s8.bf16 %v302_v14 }
  0xe2   : > { %1518 = vmatpush1.bf16.msra.mxu0 %v840_v15  ;;  %2391 = vmatprep.subr.bf16.mxu1 %v581_v18  ;;  %v864_v15 = vunpack.c.l.s8.bf16 %v432_v13  ;;  %v436_v18 = vld [vmem:[%s2782_s8 + $0x518] sm:$0xff]  ;;  %v326_v13 = vld [vmem:[%s2782_s8 + $0x1a8] sm:$0xff] }
  0xe3   : > { %1519 = vmatprep.subr.bf16.mxu0 %v844_v17  ;;  %v629_v17 = vunpack.c.h.s8.bf16 %v314_v55  ;;  %v3022_v55 = vcombine.high %v2976_v7, %v2976_v7 }
  0xe5   : > { %2392 = vmatpush3.bf16.msra.mxu1 %v557_v22  ;;  %v632_v22 = vunpack.c.l.s8.bf16 %v317_v19 }
  0xe6   : > { %1520 = vmatpush1.bf16.msra.mxu0 %v843_v21  ;;  %2393 = vmatprep.subr.bf16.mxu1 %v584_v23  ;;  %v605_v21 = vunpack.c.h.s8.bf16 %v302_v14  ;;  %v305_v23 = vld [vmem:[%s2782_s8 + $0x100] sm:$0xff]  ;;  %v650_v14 = vunpack.c.l.s8.bf16 %v326_v13 }
  0xe7   : > { %1521 = vmatprep.subr.bf16.mxu0 %v847_v62  ;;  %v435_v62 = vld [vmem:[%s2782_s8 + $0x510] sm:$0xff]  ;;  %v608_v25 = vunpack.c.l.s8.bf16 %v305_v23  ;;  %v611_v31 = vunpack.c.h.s8.bf16 %v305_v23 }
  0xe8   : > { %v870_v24 = vunpack.c.l.s8.bf16 %v435_v62  ;;  %v873_v30 = vunpack.c.h.s8.bf16 %v435_v62 }
  0xe9   : > { %2394 = vmatpush3.bf16.msra.mxu1 %v560_v27  ;;  %v635_v27 = vunpack.c.h.s8.bf16 %v317_v19  ;;  %v653_v19 = vunpack.c.h.s8.bf16 %v326_v13 }
  0xea   : > { %1522 = vmatpush1.bf16.msra.mxu0 %v846_v26  ;;  %2395 = vmatprep.subr.bf16.mxu1 %v587_v29  ;;  %v874_v26 = vunpack.c.h.s8.bf16 %v436_v18  ;;  %v320_v29 = vld [vmem:[%s2782_s8 + $0x178] sm:$0xff] }
  0xeb   : > { %1523 = vmatprep.subr.bf16.mxu0 %v850_v28  ;;  %v439_v28 = vld [vmem:[%s2782_s8 + $0x530] sm:$0xff] }
  0xed   : > { %2396 = vmatpush3.bf16.msra.mxu1 %v563_v34  ;;  %v638_v34 = vunpack.c.l.s8.bf16 %v320_v29 }
  0xee   : > { %1524 = vmatpush1.bf16.msra.mxu0 %v849_v33  ;;  %2397 = vmatprep.subr.bf16.mxu1 %v590_v36  ;;  %v877_v33 = vunpack.c.l.s8.bf16 %v439_v28  ;;  %v308_v36 = vld [vmem:[%s2782_s8 + $0x118] sm:$0xff] }
  0xef   : > { %1525 = vmatprep.subr.bf16.mxu0 %v853_v35  ;;  %v438_v35 = vld [vmem:[%s2782_s8 + $0x528] sm:$0xff]  ;;  %v614_v38 = vunpack.c.l.s8.bf16 %v308_v36  ;;  %v617_v47 = vunpack.c.h.s8.bf16 %v308_v36 }
  0xf0   : > { %v876_v37 = vunpack.c.l.s8.bf16 %v438_v35  ;;  %v879_v44 = vunpack.c.h.s8.bf16 %v438_v35 }
  0xf1   : > { %2398 = vmatpush3.bf16.msra.mxu1 %v566_v41  ;;  %v641_v41 = vunpack.c.h.s8.bf16 %v320_v29 }
  0xf2   : > { %1526 = vmatpush1.bf16.msra.mxu0 %v852_v39  ;;  %2399 = vmatprep.subr.bf16.mxu1 %v593_v43  ;;  %v880_v39 = vunpack.c.h.s8.bf16 %v439_v28  ;;  %v335_v43 = vld [vmem:[%s2782_s8 + $0x1f0] sm:$0xff] }
  0xf3   : > { %1527 = vmatprep.subr.bf16.mxu0 %v856_v42  ;;  %v442_v42 = vld [vmem:[%s2782_s8 + $0x548] sm:$0xff] }
  0xf5   : > { %2400 = vmatpush3.bf16.msra.mxu1 %v569_v45  ;;  %v668_v45 = vunpack.c.l.s8.bf16 %v335_v43 }
  0xf6   : > { %1528 = vmatpush1.bf16.msra.mxu0 %v855_v48  ;;  %2407 = vmatprep.subr.bf16.mxu1 %v620_v50  ;;  %v883_v48 = vunpack.c.l.s8.bf16 %v442_v42  ;;  %v323_v50 = vld [vmem:[%s2782_s8 + $0x190] sm:$0xff] }
  0xf7   : > { %1529 = vmatprep.subr.bf16.mxu0 %v859_v49  ;;  %v441_v49 = vld [vmem:[%s2782_s8 + $0x540] sm:$0xff] }
  0xf8   : > { %1792 = vmatmul.mubr.bf16.vlgmr.msra.gmra.mrb[4].mxu1 %v2865_v2  ;;  %v868_v2 = vunpack.c.h.s8.bf16 %v433_v4  ;;  %v882_v57 = vunpack.c.l.s8.bf16 %v441_v49  ;;  %v338_v4 = vld [vmem:[%s2782_s8 + $0x208] sm:$0xff]  ;;  %v885_v46 = vunpack.c.h.s8.bf16 %v441_v49 }
  0xf9   : > { %2408 = vmatpush3.bf16.msra.mxu1 %v596_v0  ;;  %1831 = vmatprep.mubr.bf16.mxu1 %v2875_v52  ;;  %v871_v52 = vunpack.c.l.s8.bf16 %v436_v18  ;;  %v886_v0 = vunpack.c.h.s8.bf16 %v442_v42 }
  0xfa   : > { %1530 = vmatpush1.bf16.msra.mxu0 %v858_v61  ;;  %2409 = vmatprep.subr.bf16.mxu1 %v623_v3  ;;  %v644_v61 = vunpack.c.l.s8.bf16 %v323_v50  ;;  %v445_v3 = vld [vmem:[%s2782_s8 + $0x560] sm:$0xff] }
  0xfb   : > { %1531 = vmatprep.subr.bf16.mxu0 %v862_v1  ;;  %v671_v1 = vunpack.c.h.s8.bf16 %v335_v43 }
  0xfd   : > { %2410 = vmatpush3.bf16.msra.mxu1 %v599_v9  ;;  %v889_v9 = vunpack.c.l.s8.bf16 %v445_v3 }
  0xfe   : > { %1532 = vmatpush1.bf16.msra.mxu0 %v861_v8  ;;  %2411 = vmatprep.subr.bf16.mxu1 %v626_v12  ;;  %v647_v8 = vunpack.c.h.s8.bf16 %v323_v50  ;;  %v444_v12 = vld [vmem:[%s2782_s8 + $0x558] sm:$0xff] }
  0xff   : > { %1533 = vmatprep.subr.bf16.mxu0 %v865_v11  ;;  %v674_v11 = vunpack.c.l.s8.bf16 %v338_v4  ;;  %v891_v18 = vunpack.c.h.s8.bf16 %v444_v12 }
 0x101   : > { %2412 = vmatpush3.bf16.msra.mxu1 %v602_v16  ;;  %v677_v16 = vunpack.c.h.s8.bf16 %v338_v4 }
 0x102   : > { %1534 = vmatpush1.bf16.msra.mxu0 %v864_v15  ;;  %2413 = vmatprep.subr.bf16.mxu1 %v629_v17  ;;  %v892_v15 = vunpack.c.h.s8.bf16 %v445_v3  ;;  %v341_v17 = vld [vmem:[%s2782_s8 + $0x220] sm:$0xff] }
 0x103   : > { %1535 = vmatprep.subr.bf16.mxu0 %v868_v2  ;;  %v448_v2 = vld [vmem:[%s2782_s8 + $0x578] sm:$0xff] }
 0x104   : > { %v898_v23 = vunpack.c.h.s8.bf16 %v448_v2 }
 0x105   : > { %2414 = vmatpush3.bf16.msra.mxu1 %v605_v21  ;;  %v447_v21 = vld [vmem:[%s2782_s8 + $0x570] sm:$0xff] }
 0x106   : > { %1536 = vmatpush1.bf16.msra.mxu0 %v867_v20  ;;  %2415 = vmatprep.subr.bf16.mxu1 %v632_v22  ;;  %v680_v20 = vunpack.c.l.s8.bf16 %v341_v17  ;;  %v894_v22 = vunpack.c.l.s8.bf16 %v447_v21 }
 0x107   : > { %1537 = vmatprep.subr.bf16.mxu0 %v871_v52  ;;  %v329_v52 = vld [vmem:[%s2782_s8 + $0x1c0] sm:$0xff] }
 0x108   : > { %v656_v62 = vunpack.c.l.s8.bf16 %v329_v52  ;;  %v659_v28 = vunpack.c.h.s8.bf16 %v329_v52  ;;  %v463_v52 = vld [vmem:[%s2782_s8 + $0x5f0] sm:$0xff] }
 0x109   : > { %2416 = vmatpush3.bf16.msra.mxu1 %v608_v25  ;;  %v451_v25 = vld [vmem:[%s2782_s8 + $0x590] sm:$0xff] }
 0x10a   : > { %1538 = vmatpush1.bf16.msra.mxu0 %v870_v24  ;;  %2417 = vmatprep.subr.bf16.mxu1 %v635_v27  ;;  %v683_v24 = vunpack.c.h.s8.bf16 %v341_v17  ;;  %v897_v27 = vunpack.c.h.s8.bf16 %v447_v21  ;;  %v901_v29 = vunpack.c.l.s8.bf16 %v451_v25  ;;  %v904_v36 = vunpack.c.h.s8.bf16 %v451_v25  ;;  %v459_v17 = vld [vmem:[%s2782_s8 + $0x5d0] sm:$0xff] }
 0x10b   : > { %1539 = vmatprep.subr.bf16.mxu0 %v874_v26  ;;  %v344_v26 = vld [vmem:[%s2782_s8 + $0x238] sm:$0xff] }
 0x10d   : > { %2418 = vmatpush3.bf16.msra.mxu1 %v611_v31  ;;  %v450_v31 = vld [vmem:[%s2782_s8 + $0x588] sm:$0xff] }
 0x10e   : > { %1540 = vmatpush1.bf16.msra.mxu0 %v873_v30  ;;  %2419 = vmatprep.subr.bf16.mxu1 %v638_v34  ;;  %v686_v30 = vunpack.c.l.s8.bf16 %v344_v26  ;;  %v900_v34 = vunpack.c.l.s8.bf16 %v450_v31 }
 0x10f   : > { %1541 = vmatprep.subr.bf16.mxu0 %v877_v33  ;;  %v332_v33 = vld [vmem:[%s2782_s8 + $0x1d8] sm:$0xff] }
 0x110   : > { %v662_v35 = vunpack.c.l.s8.bf16 %v332_v33  ;;  %v665_v42 = vunpack.c.h.s8.bf16 %v332_v33 }
 0x111   : > { %2420 = vmatpush3.bf16.msra.mxu1 %v614_v38  ;;  %v454_v38 = vld [vmem:[%s2782_s8 + $0x5a8] sm:$0xff] }
 0x112   : > { %1542 = vmatpush1.bf16.msra.mxu0 %v876_v37  ;;  %2421 = vmatprep.subr.bf16.mxu1 %v641_v41  ;;  %v689_v37 = vunpack.c.h.s8.bf16 %v344_v26  ;;  %v903_v41 = vunpack.c.h.s8.bf16 %v450_v31  ;;  %v907_v43 = vunpack.c.l.s8.bf16 %v454_v38  ;;  %v910_v50 = vunpack.c.h.s8.bf16 %v454_v38  ;;  %v462_v26 = vld [vmem:[%s2782_s8 + $0x5e8] sm:$0xff] }
 0x113   : > { %1543 = vmatprep.subr.bf16.mxu0 %v880_v39  ;;  %v359_v39 = vld [vmem:[%s2782_s8 + $0x2b0] sm:$0xff]  ;;  %v928_v31 = vunpack.c.h.s8.bf16 %v463_v52 }
 0x115   : > { %2422 = vmatpush3.bf16.msra.mxu1 %v617_v47  ;;  %v453_v47 = vld [vmem:[%s2782_s8 + $0x5a0] sm:$0xff] }
 0x116   : > { %1544 = vmatpush1.bf16.msra.mxu0 %v879_v44  ;;  %2429 = vmatprep.subr.bf16.mxu1 %v668_v45  ;;  %v716_v44 = vunpack.c.l.s8.bf16 %v359_v39  ;;  %v906_v45 = vunpack.c.l.s8.bf16 %v453_v47 }
 0x117   : > { %1554 = vmatprep.subr.bf16.mxu0 %v883_v48  ;;  %v347_v48 = vld [vmem:[%s2782_s8 + $0x250] sm:$0xff] }
 0x118   : > { %1832 = vmatmul.mubr.bf16.vlgmr.msra.gmra.mrb[8].mxu1 %v2916_v58  ;;  %v888_v58 = vunpack.c.l.s8.bf16 %v444_v12  ;;  %v692_v49 = vunpack.c.l.s8.bf16 %v347_v48  ;;  %v695_v3 = vunpack.c.h.s8.bf16 %v347_v48 }
 0x119   : > { %1546 = vmatmul.mubr.bf16.vlgmr.msra.gmra.mrb[0].mxu0 %v3016_v54  ;;  %2430 = vmatpush3.bf16.msra.mxu1 %v644_v61  ;;  %v457_v61 = vld [vmem:[%s2782_s8 + $0x5c0] sm:$0xff] }
 0x11a   : > { %1555 = vmatpush1.bf16.msra.mxu0 %v882_v57  ;;  %2431 = vmatprep.subr.bf16.mxu1 %v671_v1  ;;  %v719_v57 = vunpack.c.h.s8.bf16 %v359_v39  ;;  %v909_v1 = vunpack.c.h.s8.bf16 %v453_v47  ;;  %v913_v4 = vunpack.c.l.s8.bf16 %v457_v61  ;;  %v3071_v47 = vcombine.high %v3016_v54, %v3016_v54 }
 0x11b   : > { %1556 = vmatprep.subr.bf16.mxu0 %v886_v0  ;;  %1871 = vmatprep.mubr.bf16.mxu1 %v2824_v63  ;;  %v895_v63 = vunpack.c.l.s8.bf16 %v448_v2  ;;  %v362_v0 = vld [vmem:[%s2782_s8 + $0x2c8] sm:$0xff] }
 0x11c   : > { %1586 = vmatprep.mubr.bf16.mxu0 %v3022_v55  ;;  %v725_v13 = vunpack.c.h.s8.bf16 %v362_v0 }
 0x11d   : > { %2432 = vmatpush3.bf16.msra.mxu1 %v647_v8  ;;  %v456_v8 = vld [vmem:[%s2782_s8 + $0x5b8] sm:$0xff] }
 0x11e   : > { %1557 = vmatpush1.bf16.msra.mxu0 %v885_v46  ;;  %2433 = vmatprep.subr.bf16.mxu1 %v674_v11  ;;  %v722_v46 = vunpack.c.l.s8.bf16 %v362_v0  ;;  %v912_v11 = vunpack.c.l.s8.bf16 %v456_v8 }
 0x11f   : > { %1558 = vmatprep.subr.bf16.mxu0 %v889_v9  ;;  %v350_v9 = vld [vmem:[%s2782_s8 + $0x268] sm:$0xff] }
 0x120   : > { %v698_v12 = vunpack.c.l.s8.bf16 %v350_v9 }
 0x121   : > { %2434 = vmatpush3.bf16.msra.mxu1 %v650_v14  ;;  %v365_v14 = vld [vmem:[%s2782_s8 + $0x2e0] sm:$0xff] }
 0x122   : > { %1559 = vmatpush1.bf16.msra.mxu0 %v888_v58  ;;  %2435 = vmatprep.subr.bf16.mxu1 %v677_v16  ;;  %v460_v58 = vld [vmem:[%s2782_s8 + $0x5d8] sm:$0xff]  ;;  %v701_v16 = vunpack.c.h.s8.bf16 %v350_v9  ;;  %v728_v2 = vunpack.c.l.s8.bf16 %v365_v14  ;;  %v731_v21 = vunpack.c.h.s8.bf16 %v365_v14  ;;  %v374_v9 = vld [vmem:[%s2782_s8 + $0x328] sm:$0xff] }
 0x123   : > { %1560 = vmatprep.subr.bf16.mxu0 %v892_v15  ;;  %v915_v15 = vunpack.c.h.s8.bf16 %v456_v8  ;;  %v468_v8 = vld [vmem:[%s2782_s8 + $0x618] sm:$0xff] }
 0x124   : > { %v939_v14 = vunpack.c.h.s8.bf16 %v468_v8 }
 0x125   : > { %2436 = vmatpush3.bf16.msra.mxu1 %v653_v19  ;;  %v918_v19 = vunpack.c.l.s8.bf16 %v459_v17 }
 0x126   : > { %1561 = vmatpush1.bf16.msra.mxu0 %v891_v18  ;;  %2437 = vmatprep.subr.bf16.mxu1 %v680_v20  ;;  %v353_v18 = vld [vmem:[%s2782_s8 + $0x280] sm:$0xff]  ;;  %v922_v20 = vunpack.c.h.s8.bf16 %v460_v58 }
 0x127   : > { %1562 = vmatprep.subr.bf16.mxu0 %v895_v63  ;;  %v704_v63 = vunpack.c.l.s8.bf16 %v353_v18 }
 0x129   : > { %2438 = vmatpush3.bf16.msra.mxu1 %v656_v62  ;;  %v921_v62 = vunpack.c.h.s8.bf16 %v459_v17 }
 0x12a   : > { %1563 = vmatpush1.bf16.msra.mxu0 %v894_v22  ;;  %2439 = vmatprep.subr.bf16.mxu1 %v683_v24  ;;  %v368_v22 = vld [vmem:[%s2782_s8 + $0x2f8] sm:$0xff]  ;;  %v925_v24 = vunpack.c.l.s8.bf16 %v463_v52 }
 0x12b   : > { %1564 = vmatprep.subr.bf16.mxu0 %v898_v23  ;;  %v707_v23 = vunpack.c.h.s8.bf16 %v353_v18  ;;  %v734_v25 = vunpack.c.l.s8.bf16 %v368_v22  ;;  %v737_v33 = vunpack.c.h.s8.bf16 %v368_v22 }
 0x12d   : > { %2440 = vmatpush3.bf16.msra.mxu1 %v659_v28  ;;  %v3057_v28 = vld [vmem:[%s2777_s28 + $0x10] sm:$0x7f] }
 0x12e   : > { %1565 = vmatpush1.bf16.msra.mxu0 %v897_v27  ;;  %2441 = vmatprep.subr.bf16.mxu1 %v686_v30  ;;  %v356_v27 = vld [vmem:[%s2782_s8 + $0x298] sm:$0xff] }
 0x12f   : > { %1566 = vmatprep.subr.bf16.mxu0 %v901_v29  ;;  %v924_v29 = vunpack.c.l.s8.bf16 %v462_v26  ;;  %v710_v30 = vunpack.c.l.s8.bf16 %v356_v27  ;;  %v713_v38 = vunpack.c.h.s8.bf16 %v356_v27 }
 0x131   : > { %2442 = vmatpush3.bf16.msra.mxu1 %v662_v35  ;;  %v383_v35 = vld [vmem:[%s2782_s8 + $0x370] sm:$0xff] }
 0x132   : > { %1567 = vmatpush1.bf16.msra.mxu0 %v900_v34  ;;  %2443 = vmatprep.subr.bf16.mxu1 %v689_v37  ;;  %v466_v34 = vld [vmem:[%s2782_s8 + $0x608] sm:$0xff]  ;;  %v927_v37 = vunpack.c.h.s8.bf16 %v462_v26 }
 0x133   : > { %1568 = vmatprep.subr.bf16.mxu0 %v904_v36  ;;  %v3063_v36 = vrot.slane %v3057_v28, %v2806_v51  ;;  %v931_v39 = vunpack.c.l.s8.bf16 %v466_v34 }
 0x135   : > { %2444 = vmatpush3.bf16.msra.mxu1 %v665_v42  ;;  %v465_v42 = vld [vmem:[%s2782_s8 + $0x600] sm:$0xff] }
 0x136   : > { %1569 = vmatpush1.bf16.msra.mxu0 %v903_v41  ;;  %2451 = vmatprep.subr.bf16.mxu1 %v716_v44  ;;  %v764_v41 = vunpack.c.l.s8.bf16 %v383_v35  ;;  %v1208_v44 = vcombine.high %v3063_v36, %v3063_v36  ;;  %v930_v48 = vunpack.c.l.s8.bf16 %v465_v42 }
 0x137   : > { %1570 = vmatprep.subr.bf16.mxu0 %v907_v43  ;;  %v371_v43 = vld [vmem:[%s2782_s8 + $0x310] sm:$0xff] }
 0x138   : > { %1872 = vmatmul.mubr.bf16.vlgmr.msra.gmra.mrb[12].mxu1 %v2857_v56  ;;  %v916_v56 = vunpack.c.h.s8.bf16 %v457_v61  ;;  %v386_v61 = vld [vmem:[%s2782_s8 + $0x388] sm:$0xff]  ;;  %v3076_v0 = vrot.slane %v1208_v44, %v2806_v51 }
 0x139   : > { %2452 = vmatpush3.bf16.msra.mxu1 %v692_v49  ;;  %1911 = vmatprep.mubr.bf16.mxu1 %v2830_v6  ;;  %v919_v6 = vunpack.c.l.s8.bf16 %v460_v58  ;;  %v934_v49 = vunpack.c.h.s8.bf16 %v466_v34  ;;  %v389_v58 = vld [vmem:[%s2782_s8 + $0x3a0] sm:$0xff] }
 0x13a   : > { %1571 = vmatpush1.bf16.msra.mxu0 %v906_v45  ;;  %2453 = vmatprep.subr.bf16.mxu1 %v719_v57  ;;  %v740_v45 = vunpack.c.l.s8.bf16 %v371_v43  ;;  %v469_v57 = vld [vmem:[%s2782_s8 + $0x620] sm:$0xff] }
 0x13b   : > { %1572 = vmatprep.subr.bf16.mxu0 %v910_v50  ;;  %v767_v50 = vunpack.c.h.s8.bf16 %v383_v35 }
 0x13d   : > { %2454 = vmatpush3.bf16.msra.mxu1 %v695_v3  ;;  %v743_v3 = vunpack.c.h.s8.bf16 %v371_v43 }
 0x13e   : > { %1573 = vmatpush1.bf16.msra.mxu0 %v909_v1  ;;  %2455 = vmatprep.subr.bf16.mxu1 %v722_v46  ;;  %v933_v1 = vunpack.c.h.s8.bf16 %v465_v42  ;;  %v770_v46 = vunpack.c.l.s8.bf16 %v386_v61 }
 0x13f   : > { %1574 = vmatprep.subr.bf16.mxu0 %v913_v4  ;;  %v937_v4 = vunpack.c.l.s8.bf16 %v469_v57 }
 0x141   : > { %2456 = vmatpush3.bf16.msra.mxu1 %v698_v12  ;;  %v940_v12 = vunpack.c.h.s8.bf16 %v469_v57 }
 0x142   : > { %1575 = vmatpush1.bf16.msra.mxu0 %v912_v11  ;;  %2457 = vmatprep.subr.bf16.mxu1 %v725_v13  ;;  %v746_v11 = vunpack.c.l.s8.bf16 %v374_v9  ;;  %v472_v13 = vld [vmem:[%s2782_s8 + $0x638] sm:$0xff] }
 0x143   : > { %1576 = vmatprep.subr.bf16.mxu0 %v916_v56  ;;  %v773_v56 = vunpack.c.h.s8.bf16 %v386_v61 }
 0x145   : > { %2458 = vmatpush3.bf16.msra.mxu1 %v701_v16  ;;  %v776_v16 = vunpack.c.l.s8.bf16 %v389_v58 }
 0x146   : > { %1577 = vmatpush1.bf16.msra.mxu0 %v915_v15  ;;  %2459 = vmatprep.subr.bf16.mxu1 %v728_v2  ;;  %v749_v15 = vunpack.c.h.s8.bf16 %v374_v9  ;;  %v377_v2 = vld [vmem:[%s2782_s8 + $0x340] sm:$0xff] }
 0x147   : > { %1578 = vmatprep.subr.bf16.mxu0 %v919_v6  ;;  %v471_v6 = vld [vmem:[%s2782_s8 + $0x630] sm:$0xff]  ;;  %v752_v18 = vunpack.c.l.s8.bf16 %v377_v2  ;;  %v755_v22 = vunpack.c.h.s8.bf16 %v377_v2 }
 0x148   : > { %v942_v17 = vunpack.c.l.s8.bf16 %v471_v6  ;;  %v945_v52 = vunpack.c.h.s8.bf16 %v471_v6  ;;  %v487_v2 = vld [vmem:[%s2782_s8 + $0x6b0] sm:$0xff] }
 0x149   : > { %2460 = vmatpush3.bf16.msra.mxu1 %v704_v63  ;;  %v779_v63 = vunpack.c.h.s8.bf16 %v389_v58  ;;  %v483_v58 = vld [vmem:[%s2782_s8 + $0x690] sm:$0xff] }
 0x14a   : > { %1579 = vmatpush1.bf16.msra.mxu0 %v918_v19  ;;  %2461 = vmatprep.subr.bf16.mxu1 %v731_v21  ;;  %v946_v19 = vunpack.c.h.s8.bf16 %v472_v13  ;;  %v392_v21 = vld [vmem:[%s2782_s8 + $0x3b8] sm:$0xff] }
 0x14b   : > { %1580 = vmatprep.subr.bf16.mxu0 %v922_v20  ;;  %v475_v20 = vld [vmem:[%s2782_s8 + $0x650] sm:$0xff] }
 0x14d   : > { %2462 = vmatpush3.bf16.msra.mxu1 %v707_v23  ;;  %v782_v23 = vunpack.c.l.s8.bf16 %v392_v21 }
 0x14e   : > { %1581 = vmatpush1.bf16.msra.mxu0 %v921_v62  ;;  %2463 = vmatprep.subr.bf16.mxu1 %v734_v25  ;;  %v949_v62 = vunpack.c.l.s8.bf16 %v475_v20  ;;  %v380_v25 = vld [vmem:[%s2782_s8 + $0x358] sm:$0xff] }
 0x14f   : > { %1582 = vmatprep.subr.bf16.mxu0 %v925_v24  ;;  %v474_v24 = vld [vmem:[%s2782_s8 + $0x648] sm:$0xff]  ;;  %v758_v27 = vunpack.c.l.s8.bf16 %v380_v25  ;;  %v761_v35 = vunpack.c.h.s8.bf16 %v380_v25 }
 0x150   : > { %v948_v26 = vunpack.c.l.s8.bf16 %v474_v24  ;;  %v951_v34 = vunpack.c.h.s8.bf16 %v474_v24  ;;  %v490_v25 = vld [vmem:[%s2782_s8 + $0x6c8] sm:$0xff] }
 0x151   : > { %2464 = vmatpush3.bf16.msra.mxu1 %v710_v30  ;;  %v785_v30 = vunpack.c.h.s8.bf16 %v392_v21  ;;  %v486_v21 = vld [vmem:[%s2782_s8 + $0x6a8] sm:$0xff] }
 0x152   : > { %1583 = vmatpush1.bf16.msra.mxu0 %v924_v29  ;;  %2465 = vmatprep.subr.bf16.mxu1 %v737_v33  ;;  %v952_v29 = vunpack.c.h.s8.bf16 %v475_v20  ;;  %v407_v33 = vld [vmem:[%s2782_s8 + $0x430] sm:$0xff] }
 0x153   : > { %1584 = vmatprep.subr.bf16.mxu0 %v928_v31  ;;  %v478_v31 = vld [vmem:[%s2782_s8 + $0x668] sm:$0xff] }
 0x154   : > { %v958_v44 = vunpack.c.h.s8.bf16 %v478_v31 }
 0x155   : > { %2466 = vmatpush3.bf16.msra.mxu1 %v713_v38  ;;  %v812_v38 = vunpack.c.l.s8.bf16 %v407_v33 }
 0x156   : > { %1585 = vmatpush1.bf16.msra.mxu0 %v927_v37  ;;  %2473 = vmatprep.subr.bf16.mxu1 %v764_v41  ;;  %v955_v37 = vunpack.c.l.s8.bf16 %v478_v31  ;;  %v395_v41 = vld [vmem:[%s2782_s8 + $0x3d0] sm:$0xff] }
 0x157   : > { %1595 = vmatprep.subr.bf16.mxu0 %v931_v39  ;;  %v477_v39 = vld [vmem:[%s2782_s8 + $0x660] sm:$0xff]  ;;  %v788_v43 = vunpack.c.l.s8.bf16 %v395_v41  ;;  %v791_v57 = vunpack.c.h.s8.bf16 %v395_v41 }
 0x158   : > { %1912 = vmatmul.mubr.bf16.vlgmr.msra.gmra.mrb[16].mxu1 %v2869_v53  ;;  %v936_v53 = vunpack.c.l.s8.bf16 %v468_v8  ;;  %v954_v42 = vunpack.c.l.s8.bf16 %v477_v39 }
 0x159   : > { %1587 = vmatmul.mubr.bf16.vlgmr.msra.gmra.mrb[0].mxu0 %v3071_v47  ;;  %2474 = vmatpush3.bf16.msra.mxu1 %v740_v45  ;;  %v481_v45 = vld [vmem:[%s2782_s8 + $0x680] sm:$0xff] }
 0x15a   : > { %1596 = vmatpush1.bf16.msra.mxu0 %v930_v48  ;;  %2475 = vmatprep.subr.bf16.mxu1 %v767_v50  ;;  %v815_v48 = vunpack.c.h.s8.bf16 %v407_v33  ;;  %v957_v50 = vunpack.c.h.s8.bf16 %v477_v39  ;;  %v961_v61 = vunpack.c.l.s8.bf16 %v481_v45  ;;  %v489_v33 = vld [vmem:[%s2782_s8 + $0x6c0] sm:$0xff]  ;;  %v982_v39 = vunpack.c.h.s8.bf16 %v490_v25 }
 0x15b   : > { %1597 = vmatprep.subr.bf16.mxu0 %v934_v49  ;;  %1951 = vmatprep.mubr.bf16.mxu1 %v2878_v10  ;;  %v943_v10 = vunpack.c.l.s8.bf16 %v472_v13  ;;  %v410_v49 = vld [vmem:[%s2782_s8 + $0x448] sm:$0xff] }
 0x15c   : > { %1627 = vmatprep.mubr.bf16.mxu0 %v3076_v0  ;;  %v821_v9 = vunpack.c.h.s8.bf16 %v410_v49 }
 0x15d   : > { %2476 = vmatpush3.bf16.msra.mxu1 %v743_v3  ;;  %v480_v3 = vld [vmem:[%s2782_s8 + $0x678] sm:$0xff] }
 0x15e   : > { %1598 = vmatpush1.bf16.msra.mxu0 %v933_v1  ;;  %2477 = vmatprep.subr.bf16.mxu1 %v770_v46  ;;  %v818_v1 = vunpack.c.l.s8.bf16 %v410_v49  ;;  %v960_v46 = vunpack.c.l.s8.bf16 %v480_v3 }
 0x15f   : > { %1599 = vmatprep.subr.bf16.mxu0 %v937_v4  ;;  %v398_v4 = vld [vmem:[%s2782_s8 + $0x3e8] sm:$0xff] }
 0x160   : > { %v794_v8 = vunpack.c.l.s8.bf16 %v398_v4 }
 0x161   : > { %2478 = vmatpush3.bf16.msra.mxu1 %v746_v11  ;;  %v413_v11 = vld [vmem:[%s2782_s8 + $0x460] sm:$0xff] }
 0x162   : > { %1600 = vmatpush1.bf16.msra.mxu0 %v936_v53  ;;  %2479 = vmatprep.subr.bf16.mxu1 %v773_v56  ;;  %v484_v53 = vld [vmem:[%s2782_s8 + $0x698] sm:$0xff]  ;;  %v797_v56 = vunpack.c.h.s8.bf16 %v398_v4  ;;  %v824_v13 = vunpack.c.l.s8.bf16 %v413_v11  ;;  %v827_v6 = vunpack.c.h.s8.bf16 %v413_v11  ;;  %v425_v11 = vld [vmem:[%s2782_s8 + $0x4c0] sm:$0xff] }
 0x163   : > { %1601 = vmatprep.subr.bf16.mxu0 %v940_v12  ;;  %v963_v12 = vunpack.c.h.s8.bf16 %v480_v3  ;;  %v496_v4 = vld [vmem:[%s2782_s8 + $0x6f8] sm:$0xff] }
 0x165   : > { %2480 = vmatpush3.bf16.msra.mxu1 %v749_v15  ;;  %v966_v15 = vunpack.c.l.s8.bf16 %v483_v58 }
 0x166   : > { %1602 = vmatpush1.bf16.msra.mxu0 %v939_v14  ;;  %2481 = vmatprep.subr.bf16.mxu1 %v776_v16  ;;  %v401_v14 = vld [vmem:[%s2782_s8 + $0x400] sm:$0xff]  ;;  %v970_v16 = vunpack.c.h.s8.bf16 %v484_v53 }
 0x167   : > { %1603 = vmatprep.subr.bf16.mxu0 %v943_v10  ;;  %v800_v10 = vunpack.c.l.s8.bf16 %v401_v14 }
 0x169   : > { %2482 = vmatpush3.bf16.msra.mxu1 %v752_v18  ;;  %v969_v18 = vunpack.c.h.s8.bf16 %v483_v58  ;;  %v499_v58 = vld [vmem:[%s2782_s8 + $0x710] sm:$0xff] }
 0x16a   : > { %1604 = vmatpush1.bf16.msra.mxu0 %v942_v17  ;;  %2483 = vmatprep.subr.bf16.mxu1 %v779_v63  ;;  %v416_v17 = vld [vmem:[%s2782_s8 + $0x478] sm:$0xff]  ;;  %v973_v63 = vunpack.c.l.s8.bf16 %v487_v2 }
 0x16b   : > { %1605 = vmatprep.subr.bf16.mxu0 %v946_v19  ;;  %v803_v19 = vunpack.c.h.s8.bf16 %v401_v14  ;;  %v830_v20 = vunpack.c.l.s8.bf16 %v416_v17  ;;  %v833_v24 = vunpack.c.h.s8.bf16 %v416_v17  ;;  %v440_v14 = vld [vmem:[%s2782_s8 + $0x538] sm:$0xff] }
 0x16c   : > { %v428_v17 = vld [vmem:[%s2782_s8 + $0x4d8] sm:$0xff] }
 0x16d   : > { %2484 = vmatpush3.bf16.msra.mxu1 %v755_v22  ;;  %v972_v22 = vunpack.c.l.s8.bf16 %v486_v21 }
 0x16e   : > { %1606 = vmatpush1.bf16.msra.mxu0 %v945_v52  ;;  %2485 = vmatprep.subr.bf16.mxu1 %v782_v23  ;;  %v404_v52 = vld [vmem:[%s2782_s8 + $0x418] sm:$0xff]  ;;  %v976_v23 = vunpack.c.h.s8.bf16 %v487_v2  ;;  %v498_v2 = vld [vmem:[%s2782_s8 + $0x708] sm:$0xff] }
 0x16f   : > { %1607 = vmatprep.subr.bf16.mxu0 %v949_v62  ;;  %v806_v62 = vunpack.c.l.s8.bf16 %v404_v52 }
 0x171   : > { %2486 = vmatpush3.bf16.msra.mxu1 %v758_v27  ;;  %v975_v27 = vunpack.c.h.s8.bf16 %v486_v21  ;;  %v854_v21 = vunpack.c.l.s8.bf16 %v428_v17 }
 0x172   : > { %1608 = vmatpush1.bf16.msra.mxu0 %v948_v26  ;;  %2487 = vmatprep.subr.bf16.mxu1 %v785_v30  ;;  %v431_v26 = vld [vmem:[%s2782_s8 + $0x4f0] sm:$0xff]  ;;  %v979_v30 = vunpack.c.l.s8.bf16 %v490_v25  ;;  %v999_v25 = vunpack.c.h.s8.bf16 %v498_v2 }
 0x173   : > { %1609 = vmatprep.subr.bf16.mxu0 %v952_v29  ;;  %v809_v29 = vunpack.c.h.s8.bf16 %v404_v52  ;;  %v860_v31 = vunpack.c.l.s8.bf16 %v431_v26  ;;  %v863_v41 = vunpack.c.h.s8.bf16 %v431_v26  ;;  %v857_v26 = vunpack.c.h.s8.bf16 %v428_v17 }
 0x175   : > { %2488 = vmatpush3.bf16.msra.mxu1 %v761_v35  ;;  %v3116_v35 = vrot.slane %v3063_v36, %v2806_v51  ;;  %v981_v36 = vunpack.c.h.s8.bf16 %v489_v33 }
 0x176   : > { %1610 = vmatpush1.bf16.msra.mxu0 %v951_v34  ;;  %2495 = vmatprep.subr.bf16.mxu1 %v812_v38  ;;  %v419_v34 = vld [vmem:[%s2782_s8 + $0x490] sm:$0xff] }
 0x177   : > { %1611 = vmatprep.subr.bf16.mxu0 %v955_v37  ;;  %v978_v37 = vunpack.c.l.s8.bf16 %v489_v33  ;;  %v836_v38 = vunpack.c.l.s8.bf16 %v419_v34 }
 0x178   : > { %1952 = vmatmul.mubr.bf16.vlgmr.msra.gmra.mrb[20].mxu1 %v2920_v59  ;;  %v964_v59 = vunpack.c.h.s8.bf16 %v481_v45 }
 0x179   : > { %2496 = vmatpush3.bf16.msra.mxu1 %v788_v43  ;;  %1991 = vmatprep.mubr.bf16.mxu1 %v2926_v5  ;;  %v967_v5 = vunpack.c.l.s8.bf16 %v484_v53  ;;  %v434_v43 = vld [vmem:[%s2782_s8 + $0x508] sm:$0xff]  ;;  %v495_v53 = vld [vmem:[%s2782_s8 + $0x6f0] sm:$0xff] }
 0x17a   : > { %1612 = vmatpush1.bf16.msra.mxu0 %v954_v42  ;;  %2497 = vmatprep.subr.bf16.mxu1 %v815_v48  ;;  %v493_v42 = vld [vmem:[%s2782_s8 + $0x6e0] sm:$0xff]  ;;  %v839_v48 = vunpack.c.h.s8.bf16 %v419_v34  ;;  %v866_v49 = vunpack.c.l.s8.bf16 %v434_v43  ;;  %v869_v3 = vunpack.c.h.s8.bf16 %v434_v43 }
 0x17b   : > { %1613 = vmatprep.subr.bf16.mxu0 %v958_v44  ;;  %v3122_v44 = vcombine.high %v3076_v0, %v3076_v0  ;;  %v985_v45 = vunpack.c.l.s8.bf16 %v493_v42 }
 0x17d   : > { %2498 = vmatpush3.bf16.msra.mxu1 %v791_v57  ;;  %v422_v57 = vld [vmem:[%s2782_s8 + $0x4a8] sm:$0xff] }
 0x17e   : > { %1614 = vmatpush1.bf16.msra.mxu0 %v957_v50  ;;  %2499 = vmatprep.subr.bf16.mxu1 %v818_v1  ;;  %v492_v50 = vld [vmem:[%s2782_s8 + $0x6d8] sm:$0xff]  ;;  %v988_v1 = vunpack.c.h.s8.bf16 %v493_v42 }
 0x17f   : > { %1615 = vmatprep.subr.bf16.mxu0 %v961_v61  ;;  %v842_v61 = vunpack.c.l.s8.bf16 %v422_v57 }
 0x181   : > { %2500 = vmatpush3.bf16.msra.mxu1 %v794_v8  ;;  %v987_v8 = vunpack.c.h.s8.bf16 %v492_v50 }
 0x182   : > { %1616 = vmatpush1.bf16.msra.mxu0 %v960_v46  ;;  %2501 = vmatprep.subr.bf16.mxu1 %v821_v9  ;;  %v437_v46 = vld [vmem:[%s2782_s8 + $0x520] sm:$0xff] }
 0x183   : > { %1617 = vmatprep.subr.bf16.mxu0 %v964_v59  ;;  %v845_v59 = vunpack.c.h.s8.bf16 %v422_v57  ;;  %v872_v9 = vunpack.c.l.s8.bf16 %v437_v46 }
 0x185   : > { %2502 = vmatpush3.bf16.msra.mxu1 %v797_v56  ;;  %v848_v56 = vunpack.c.l.s8.bf16 %v425_v11 }
 0x186   : > { %1618 = vmatpush1.bf16.msra.mxu0 %v963_v12  ;;  %2503 = vmatprep.subr.bf16.mxu1 %v824_v13  ;;  %v990_v12 = vunpack.c.l.s8.bf16 %v495_v53  ;;  %v875_v13 = vunpack.c.h.s8.bf16 %v437_v46 }
 0x187   : > { %1619 = vmatprep.subr.bf16.mxu0 %v967_v5  ;;  %v994_v5 = vunpack.c.h.s8.bf16 %v496_v4 }
 0x189   : > { %2504 = vmatpush3.bf16.msra.mxu1 %v800_v10  ;;  %v851_v10 = vunpack.c.h.s8.bf16 %v425_v11 }
 0x18a   : > { %1620 = vmatpush1.bf16.msra.mxu0 %v966_v15  ;;  %2505 = vmatprep.subr.bf16.mxu1 %v827_v6  ;;  %v993_v15 = vunpack.c.h.s8.bf16 %v495_v53  ;;  %v878_v6 = vunpack.c.l.s8.bf16 %v440_v14 }
 0x18b   : > { %1621 = vmatprep.subr.bf16.mxu0 %v970_v16  ;;  %v997_v16 = vunpack.c.l.s8.bf16 %v499_v58 }
 0x18d   : > { %2506 = vmatpush3.bf16.msra.mxu1 %v803_v19 }
 0x18e   : > { %1622 = vmatpush1.bf16.msra.mxu0 %v969_v18  ;;  %2507 = vmatprep.subr.bf16.mxu1 %v830_v20  ;;  %v996_v20 = vunpack.c.l.s8.bf16 %v498_v2 }
 0x18f   : > { %1623 = vmatprep.subr.bf16.mxu0 %v973_v63 }
 0x191   : > { %2508 = vmatpush3.bf16.msra.mxu1 %v806_v62  ;;  %v881_v62 = vunpack.c.h.s8.bf16 %v440_v14 }
 0x192   : > { %1624 = vmatpush1.bf16.msra.mxu0 %v972_v22  ;;  %2509 = vmatprep.subr.bf16.mxu1 %v833_v24  ;;  %v1000_v22 = vunpack.c.h.s8.bf16 %v499_v58  ;;  %v455_v24 = vld [vmem:[%s2782_s8 + $0x5b0] sm:$0xff] }
 0x193   : > { %1625 = vmatprep.subr.bf16.mxu0 %v976_v23  ;;  %v502_v23 = vld [vmem:[%s2782_s8 + $0x728] sm:$0xff] }
 0x195   : > { %2510 = vmatpush3.bf16.msra.mxu1 %v809_v29  ;;  %v908_v29 = vunpack.c.l.s8.bf16 %v455_v24 }
 0x196   : > { %1626 = vmatpush1.bf16.msra.mxu0 %v975_v27  ;;  %2517 = vmatprep.subr.bf16.mxu1 %v860_v31  ;;  %v1003_v27 = vunpack.c.l.s8.bf16 %v502_v23  ;;  %v443_v31 = vld [vmem:[%s2782_s8 + $0x550] sm:$0xff] }
 0x197   : > { %1636 = vmatprep.subr.bf16.mxu0 %v979_v30  ;;  %v501_v30 = vld [vmem:[%s2782_s8 + $0x720] sm:$0xff]  ;;  %v884_v34 = vunpack.c.l.s8.bf16 %v443_v31  ;;  %v887_v43 = vunpack.c.h.s8.bf16 %v443_v31  ;;  %v467_v31 = vld [vmem:[%s2782_s8 + $0x610] sm:$0xff] }
 0x198   : > { %1992 = vmatmul.mubr.bf16.vlgmr.msra.gmra.mrb[24].mxu1 %v2971_v60  ;;  %v984_v60 = vunpack.c.l.s8.bf16 %v492_v50  ;;  %v1002_v33 = vunpack.c.l.s8.bf16 %v501_v30  ;;  %v1005_v42 = vunpack.c.h.s8.bf16 %v501_v30  ;;  %v513_v30 = vld [vmem:[%s2782_s8 + $0x780] sm:$0xff] }
 0x199   : > { %1628 = vmatmul.mubr.bf16.vlgmr.msra.gmra.mrb[0].mxu0 %v3116_v35  ;;  %2518 = vmatpush3.bf16.msra.mxu1 %v836_v38  ;;  %v911_v38 = vunpack.c.h.s8.bf16 %v455_v24  ;;  %v479_v24 = vld [vmem:[%s2782_s8 + $0x670] sm:$0xff] }
 0x19a   : > { %1637 = vmatpush1.bf16.msra.mxu0 %v978_v37  ;;  %2519 = vmatprep.subr.bf16.mxu1 %v863_v41  ;;  %v1006_v37 = vunpack.c.h.s8.bf16 %v502_v23  ;;  %v458_v41 = vld [vmem:[%s2782_s8 + $0x5c8] sm:$0xff] }
 0x19b   : > { %1638 = vmatprep.subr.bf16.mxu0 %v982_v39  ;;  %2031 = vmatprep.mubr.bf16.mxu1 %v2976_v7  ;;  %v991_v7 = vunpack.c.l.s8.bf16 %v496_v4  ;;  %v505_v39 = vld [vmem:[%s2782_s8 + $0x740] sm:$0xff]  ;;  %v514_v23 = vld [vmem:[%s2782_s8 + $0x788] sm:$0xff] }
 0x19c   : > { %1668 = vmatprep.mubr.bf16.mxu0 %v3122_v44 }
 0x19d   : > { %2520 = vmatpush3.bf16.msra.mxu1 %v839_v48  ;;  %v914_v48 = vunpack.c.l.s8.bf16 %v458_v41 }
 0x19e   : > { %1639 = vmatpush1.bf16.msra.mxu0 %v981_v36  ;;  %2521 = vmatprep.subr.bf16.mxu1 %v866_v49  ;;  %v1009_v36 = vunpack.c.l.s8.bf16 %v505_v39  ;;  %v446_v49 = vld [vmem:[%s2782_s8 + $0x568] sm:$0xff] }
 0x19f   : > { %1640 = vmatprep.subr.bf16.mxu0 %v985_v45  ;;  %v504_v45 = vld [vmem:[%s2782_s8 + $0x738] sm:$0xff]  ;;  %v890_v57 = vunpack.c.l.s8.bf16 %v446_v49  ;;  %v893_v4 = vunpack.c.h.s8.bf16 %v446_v49 }
 0x1a0   : > { %v1008_v50 = vunpack.c.l.s8.bf16 %v504_v45 }
 0x1a1   : > { %2522 = vmatpush3.bf16.msra.mxu1 %v842_v61  ;;  %v508_v61 = vld [vmem:[%s2782_s8 + $0x758] sm:$0xff] }
 0x1a2   : > { %1641 = vmatpush1.bf16.msra.mxu0 %v984_v60  ;;  %2523 = vmatprep.subr.bf16.mxu1 %v869_v3  ;;  %v917_v60 = vunpack.c.h.s8.bf16 %v458_v41  ;;  %v1011_v3 = vunpack.c.h.s8.bf16 %v504_v45  ;;  %v1018_v53 = vunpack.c.h.s8.bf16 %v508_v61  ;;  %v959_v41 = vunpack.c.h.s8.bf16 %v479_v24 }
 0x1a3   : > { %1642 = vmatprep.subr.bf16.mxu0 %v988_v1  ;;  %v461_v1 = vld [vmem:[%s2782_s8 + $0x5e0] sm:$0xff]  ;;  %v935_v45 = vunpack.c.h.s8.bf16 %v467_v31 }
 0x1a4   : > { %v920_v46 = vunpack.c.l.s8.bf16 %v461_v1  ;;  %v923_v11 = vunpack.c.h.s8.bf16 %v461_v1 }
 0x1a5   : > { %2524 = vmatpush3.bf16.msra.mxu1 %v845_v59  ;;  %v449_v59 = vld [vmem:[%s2782_s8 + $0x580] sm:$0xff] }
 0x1a6   : > { %1643 = vmatpush1.bf16.msra.mxu0 %v987_v8  ;;  %2525 = vmatprep.subr.bf16.mxu1 %v872_v9  ;;  %v507_v8 = vld [vmem:[%s2782_s8 + $0x750] sm:$0xff]  ;;  %v896_v9 = vunpack.c.l.s8.bf16 %v449_v59 }
 0x1a7   : > { %1644 = vmatprep.subr.bf16.mxu0 %v991_v7  ;;  %v1014_v7 = vunpack.c.l.s8.bf16 %v507_v8 }
 0x1a9   : > { %2526 = vmatpush3.bf16.msra.mxu1 %v848_v56  ;;  %v464_v56 = vld [vmem:[%s2782_s8 + $0x5f8] sm:$0xff] }
 0x1aa   : > { %1645 = vmatpush1.bf16.msra.mxu0 %v990_v12  ;;  %2527 = vmatprep.subr.bf16.mxu1 %v875_v13  ;;  %v511_v12 = vld [vmem:[%s2782_s8 + $0x770] sm:$0xff]  ;;  %v899_v13 = vunpack.c.h.s8.bf16 %v449_v59  ;;  %v926_v14 = vunpack.c.l.s8.bf16 %v464_v56 }
 0x1ab   : > { %1646 = vmatprep.subr.bf16.mxu0 %v994_v5  ;;  %v3138_v18 = vpop.f32.mrb[0].mxu1  ;;  %v1017_v5 = vunpack.c.h.s8.bf16 %v507_v8  ;;  %v1021_v58 = vunpack.c.l.s8.bf16 %v511_v12  ;;  %v519_v59 = vld [vmem:[%s2782_s8 + $0x7b0] sm:$0xff] }
 0x1ac   : > { %v3140_v19 = vpop.f32.mrb[1].mxu1 }
 0x1ad   : > { %v1387_v63 = vpop.f32.mrb[2].mxu1  ;;  %2528 = vmatpush3.bf16.msra.mxu1 %v851_v10  ;;  %v452_v10 = vld [vmem:[%s2782_s8 + $0x598] sm:$0xff] }
 0x1ae   : > { %1647 = vmatpush1.bf16.msra.mxu0 %v993_v15  ;;  %v1388_v52 = vpop.f32.mrb[3].mxu1  ;;  %2529 = vmatprep.subr.bf16.mxu1 %v878_v6  ;;  %v510_v15 = vld [vmem:[%s2782_s8 + $0x768] sm:$0xff]  ;;  %v1193_v6 = vcombine.high %v3057_v28, %v3057_v28  ;;  %v902_v63 = vunpack.c.l.s8.bf16 %v452_v10 }
 0x1af   : > { %1648 = vmatprep.subr.bf16.mxu0 %v997_v16  ;;  %v1020_v17 = vunpack.c.l.s8.bf16 %v510_v15  ;;  %v1024_v52 = vunpack.c.h.s8.bf16 %v511_v12  ;;  %v1023_v28 = vunpack.c.h.s8.bf16 %v510_v15 }
 0x1b1   : > { %2530 = vmatpush3.bf16.msra.mxu1 %v854_v21 }
 0x1b2   : > { %1649 = vmatpush1.bf16.msra.mxu0 %v996_v20  ;;  %2531 = vmatprep.subr.bf16.mxu1 %v881_v62 }
 0x1b3   : > { %1650 = vmatprep.subr.bf16.mxu0 %v1000_v22  ;;  %v929_v22 = vunpack.c.h.s8.bf16 %v464_v56  ;;  %v523_v56 = vld [vmem:[%s2782_s8 + $0x7d0] sm:$0xff] }
 0x1b5   : > { %2532 = vmatpush3.bf16.msra.mxu1 %v857_v26  ;;  %v905_v26 = vunpack.c.h.s8.bf16 %v452_v10  ;;  %v522_v10 = vld [vmem:[%s2782_s8 + $0x7c8] sm:$0xff] }
 0x1b6   : > { %1651 = vmatpush1.bf16.msra.mxu0 %v999_v25  ;;  %2539 = vmatprep.subr.bf16.mxu1 %v908_v29  ;;  %v3167_v25 = vrot.slane %v1193_v6, %v2806_v51  ;;  %v956_v29 = vunpack.c.l.s8.bf16 %v479_v24 }
 0x1b7   : > { %1652 = vmatprep.subr.bf16.mxu0 %v1003_v27  ;;  %v1027_v27 = vunpack.c.l.s8.bf16 %v514_v23 }
 0x1b8   : > { %2032 = vmatmul.mubr.bf16.vlgmr.msra.gmra.mrb[28].mxu1 %v3016_v54  ;;  %v1012_v54 = vunpack.c.h.s8.bf16 %v505_v39  ;;  %v1030_v39 = vunpack.c.h.s8.bf16 %v514_v23 }
 0x1b9   : > { %2540 = vmatpush3.bf16.msra.mxu1 %v884_v34  ;;  %2071 = vmatprep.mubr.bf16.mxu1 %v3022_v55  ;;  %v1015_v55 = vunpack.c.l.s8.bf16 %v508_v61  ;;  %v3175_v34 = vcombine.high %v3116_v35, %v3116_v35 }
 0x1ba   : > { %1653 = vmatpush1.bf16.msra.mxu0 %v1002_v33  ;;  %2541 = vmatprep.subr.bf16.mxu1 %v911_v38  ;;  %v1209_v33 = vcombine.high %v3167_v25, %v3167_v25  ;;  %v932_v38 = vunpack.c.l.s8.bf16 %v467_v31 }
 0x1bb   : > { %1654 = vmatprep.subr.bf16.mxu0 %v1006_v37  ;;  %v1026_v37 = vunpack.c.l.s8.bf16 %v513_v30 }
 0x1bd   : > { %2542 = vmatpush3.bf16.msra.mxu1 %v887_v43  ;;  %v482_v43 = vld [vmem:[%s2782_s8 + $0x688] sm:$0xff] }
 0x1be   : > { %1655 = vmatpush1.bf16.msra.mxu0 %v1005_v42  ;;  %2543 = vmatprep.subr.bf16.mxu1 %v914_v48  ;;  %v517_v42 = vld [vmem:[%s2782_s8 + $0x7a0] sm:$0xff]  ;;  %v1029_v48 = vunpack.c.h.s8.bf16 %v513_v30  ;;  %v965_v1 = vunpack.c.h.s8.bf16 %v482_v43 }
 0x1bf   : > { %1656 = vmatprep.subr.bf16.mxu0 %v1009_v36  ;;  %v3180_v36 = vrot.slane %v1209_v33, %v2806_v51  ;;  %v1033_v49 = vunpack.c.l.s8.bf16 %v517_v42  ;;  %v1036_v61 = vunpack.c.h.s8.bf16 %v517_v42  ;;  %v525_v33 = vld [vmem:[%s2782_s8 + $0x7e0] sm:$0xff] }
 0x1c0   : > { %v529_v42 = vld [vmem:[%s2782_s8 + $0x800] sm:$0xff] }
 0x1c1   : > { %2544 = vmatpush3.bf16.msra.mxu1 %v890_v57  ;;  %v516_v57 = vld [vmem:[%s2782_s8 + $0x798] sm:$0xff] }
 0x1c2   : > { %1657 = vmatpush1.bf16.msra.mxu0 %v1008_v50  ;;  %2545 = vmatprep.subr.bf16.mxu1 %v917_v60  ;;  %v962_v50 = vunpack.c.l.s8.bf16 %v482_v43  ;;  %v506_v43 = vld [vmem:[%s2782_s8 + $0x748] sm:$0xff] }
 0x1c3   : > { %1658 = vmatprep.subr.bf16.mxu0 %v1012_v54  ;;  %v470_v54 = vld [vmem:[%s2782_s8 + $0x628] sm:$0xff] }
 0x1c4   : > { %v938_v60 = vunpack.c.l.s8.bf16 %v470_v54 }
 0x1c5   : > { %2546 = vmatpush3.bf16.msra.mxu1 %v893_v4  ;;  %v485_v4 = vld [vmem:[%s2782_s8 + $0x6a0] sm:$0xff] }
 0x1c6   : > { %1659 = vmatpush1.bf16.msra.mxu0 %v1011_v3  ;;  %2547 = vmatprep.subr.bf16.mxu1 %v920_v46  ;;  %v520_v3 = vld [vmem:[%s2782_s8 + $0x7b8] sm:$0xff]  ;;  %v941_v46 = vunpack.c.h.s8.bf16 %v470_v54  ;;  %v968_v8 = vunpack.c.l.s8.bf16 %v485_v4  ;;  %v971_v12 = vunpack.c.h.s8.bf16 %v485_v4  ;;  %v494_v54 = vld [vmem:[%s2782_s8 + $0x6e8] sm:$0xff] }
 0x1c7   : > { %1660 = vmatprep.subr.bf16.mxu0 %v1015_v55  ;;  %v1035_v55 = vunpack.c.h.s8.bf16 %v516_v57 }
 0x1c9   : > { %2548 = vmatpush3.bf16.msra.mxu1 %v896_v9  ;;  %v1038_v9 = vunpack.c.l.s8.bf16 %v519_v59 }
 0x1ca   : > { %1661 = vmatpush1.bf16.msra.mxu0 %v1014_v7  ;;  %2549 = vmatprep.subr.bf16.mxu1 %v923_v11  ;;  %v473_v7 = vld [vmem:[%s2782_s8 + $0x640] sm:$0xff]  ;;  %v1042_v11 = vunpack.c.h.s8.bf16 %v520_v3 }
 0x1cb   : > { %1662 = vmatprep.subr.bf16.mxu0 %v1018_v53  ;;  %v2401_v16 = vpop.f32.mrb[4].mxu1  ;;  %v944_v53 = vunpack.c.l.s8.bf16 %v473_v7 }
 0x1cc   : > { %v2402_v2 = vpop.f32.mrb[5].mxu1 }
 0x1cd   : > { %2550 = vmatpush3.bf16.msra.mxu1 %v899_v13  ;;  %v3162_v20 = vadd.f32 %v2402_v2, %v2401_v16  ;;  %v2404_v21 = vpop.f32.mrb[6].mxu1  ;;  %v1041_v13 = vunpack.c.h.s8.bf16 %v519_v59  ;;  %v476_v16 = vld [vmem:[%s2782_s8 + $0x658] sm:$0xff] }
 0x1ce   : > { %1663 = vmatpush1.bf16.msra.mxu0 %v1017_v5  ;;  %2551 = vmatprep.subr.bf16.mxu1 %v926_v14  ;;  %v2405_v62 = vpop.f32.mrb[7].mxu1  ;;  %v488_v5 = vld [vmem:[%s2782_s8 + $0x6b8] sm:$0xff]  ;;  %v1045_v14 = vunpack.c.l.s8.bf16 %v523_v56  ;;  %v950_v21 = vunpack.c.l.s8.bf16 %v476_v16 }
 0x1cf   : > { %1664 = vmatprep.subr.bf16.mxu0 %v1021_v58  ;;  %v947_v58 = vunpack.c.h.s8.bf16 %v473_v7  ;;  %v974_v15 = vunpack.c.l.s8.bf16 %v488_v5  ;;  %v977_v62 = vunpack.c.h.s8.bf16 %v488_v5 }
 0x1d1   : > { %2552 = vmatpush3.bf16.msra.mxu1 %v902_v63  ;;  %v1044_v63 = vunpack.c.l.s8.bf16 %v522_v10 }
 0x1d2   : > { %1665 = vmatpush1.bf16.msra.mxu0 %v1020_v17  ;;  %2553 = vmatprep.subr.bf16.mxu1 %v929_v22  ;;  %v1048_v22 = vunpack.c.h.s8.bf16 %v523_v56 }
 0x1d3   : > { %1666 = vmatprep.subr.bf16.mxu0 %v1024_v52 }
 0x1d5   : > { %2554 = vmatpush3.bf16.msra.mxu1 %v905_v26  ;;  %v503_v26 = vld [vmem:[%s2782_s8 + $0x730] sm:$0xff] }
 0x1d6   : > { %1667 = vmatpush1.bf16.msra.mxu0 %v1023_v28  ;;  %2561 = vmatprep.subr.bf16.mxu1 %v956_v29  ;;  %v526_v28 = vld [vmem:[%s2782_s8 + $0x7e8] sm:$0xff]  ;;  %v953_v29 = vunpack.c.h.s8.bf16 %v476_v16  ;;  %v1004_v31 = vunpack.c.l.s8.bf16 %v503_v26 }
 0x1d7   : > { %1677 = vmatprep.subr.bf16.mxu0 %v1027_v27  ;;  %v1047_v27 = vunpack.c.h.s8.bf16 %v522_v10  ;;  %v1051_v30 = vunpack.c.l.s8.bf16 %v526_v28 }
 0x1d8   : > { %2072 = vmatmul.mubr.bf16.vlgmr.msra.gmra.mrb[32].mxu1 %v3071_v47  ;;  %v1032_v47 = vunpack.c.l.s8.bf16 %v516_v57  ;;  %v528_v57 = vld [vmem:[%s2782_s8 + $0x7f8] sm:$0xff] }
 0x1d9   : > { %1669 = vmatmul.mubr.bf16.vlgmr.msra.gmra.mrb[0].mxu0 %v3175_v34  ;;  %2562 = vmatpush3.bf16.msra.mxu1 %v932_v38  ;;  %v1050_v38 = vunpack.c.l.s8.bf16 %v525_v33  ;;  %v1059_v4 = vunpack.c.h.s8.bf16 %v528_v57 }
 0x1da   : > { %1678 = vmatpush1.bf16.msra.mxu0 %v1026_v37  ;;  %2563 = vmatprep.subr.bf16.mxu1 %v959_v41  ;;  %v491_v37 = vld [vmem:[%s2782_s8 + $0x6d0] sm:$0xff]  ;;  %v1007_v41 = vunpack.c.h.s8.bf16 %v503_v26 }
 0x1db   : > { %1679 = vmatprep.subr.bf16.mxu0 %v1030_v39  ;;  %2111 = vmatprep.mubr.bf16.mxu1 %v3076_v0  ;;  %v1039_v0 = vunpack.c.l.s8.bf16 %v520_v3  ;;  %v980_v39 = vunpack.c.l.s8.bf16 %v491_v37  ;;  %v509_v3 = vld [vmem:[%s2782_s8 + $0x760] sm:$0xff] }
 0x1dc   : > { %1709 = vmatprep.mubr.bf16.mxu0 %v3180_v36 }
 0x1dd   : > { %2564 = vmatpush3.bf16.msra.mxu1 %v935_v45  ;;  %v983_v45 = vunpack.c.h.s8.bf16 %v491_v37  ;;  %v3226_v37 = vrot.slane %v3167_v25, %v2806_v51 }
 0x1de   : > { %1680 = vmatpush1.bf16.msra.mxu0 %v1029_v48  ;;  %2565 = vmatprep.subr.bf16.mxu1 %v962_v50  ;;  %v1053_v48 = vunpack.c.h.s8.bf16 %v525_v33  ;;  %v1010_v50 = vunpack.c.l.s8.bf16 %v506_v43  ;;  %v515_v33 = vld [vmem:[%s2782_s8 + $0x790] sm:$0xff] }
 0x1df   : > { %1681 = vmatprep.subr.bf16.mxu0 %v1033_v49  ;;  %v1057_v49 = vunpack.c.l.s8.bf16 %v529_v42 }
 0x1e1   : > { %2566 = vmatpush3.bf16.msra.mxu1 %v938_v60  ;;  %v986_v60 = vunpack.c.l.s8.bf16 %v494_v54 }
 0x1e2   : > { %1682 = vmatpush1.bf16.msra.mxu0 %v1032_v47  ;;  %2567 = vmatprep.subr.bf16.mxu1 %v965_v1  ;;  %v1056_v47 = vunpack.c.l.s8.bf16 %v528_v57  ;;  %v532_v1 = vld [vmem:[%s2782_s8 + $0x818] sm:$0xff]  ;;  %v2722_v57 = vmov 0  }
 0x1e3   : > { %1683 = vmatprep.subr.bf16.mxu0 %v1036_v61  ;;  %v1013_v61 = vunpack.c.h.s8.bf16 %v506_v43  ;;  %v1031_v43 = vunpack.c.h.s8.bf16 %v515_v33 }
 0x1e5   : > { %2568 = vmatpush3.bf16.msra.mxu1 %v941_v46  ;;  %v1016_v46 = vunpack.c.l.s8.bf16 %v509_v3 }
 0x1e6   : > { %1684 = vmatpush1.bf16.msra.mxu0 %v1035_v55  ;;  %2569 = vmatprep.subr.bf16.mxu1 %v968_v8  ;;  %v989_v55 = vunpack.c.h.s8.bf16 %v494_v54  ;;  %v497_v8 = vld [vmem:[%s2782_s8 + $0x700] sm:$0xff] }
 0x1e7   : > { %1685 = vmatprep.subr.bf16.mxu0 %v1039_v0  ;;  %v531_v0 = vld [vmem:[%s2782_s8 + $0x810] sm:$0xff]  ;;  %v992_v7 = vunpack.c.l.s8.bf16 %v497_v8  ;;  %v995_v5 = vunpack.c.h.s8.bf16 %v497_v8 }
 0x1e8   : > { %v1062_v59 = vunpack.c.l.s8.bf16 %v531_v0  ;;  %v1065_v56 = vunpack.c.h.s8.bf16 %v531_v0 }
 0x1e9   : > { %2570 = vmatpush3.bf16.msra.mxu1 %v944_v53  ;;  %v1019_v53 = vunpack.c.h.s8.bf16 %v509_v3 }
 0x1ea   : > { %1686 = vmatpush1.bf16.msra.mxu0 %v1038_v9  ;;  %2571 = vmatprep.subr.bf16.mxu1 %v971_v12  ;;  %v1066_v9 = vunpack.c.h.s8.bf16 %v532_v1  ;;  %v512_v12 = vld [vmem:[%s2782_s8 + $0x778] sm:$0xff] }
 0x1eb   : > { %1687 = vmatprep.subr.bf16.mxu0 %v1042_v11  ;;  %v2423_v6 = vpop.f32.mrb[8].mxu1  ;;  %v535_v11 = vld [vmem:[%s2782_s8 + $0x830] sm:$0xff] }
 0x1ec   : > { %v2424_v2 = vpop.f32.mrb[9].mxu1 }
 0x1ed   : > { %v2425_v17 = vadd.f32 %v2424_v2, %v2423_v6  ;;  %2572 = vmatpush3.bf16.msra.mxu1 %v947_v58  ;;  %v2426_v52 = vpop.f32.mrb[10].mxu1  ;;  %v1022_v58 = vunpack.c.l.s8.bf16 %v512_v12 }
 0x1ee   : > { %1688 = vmatpush1.bf16.msra.mxu0 %v1041_v13  ;;  %2573 = vmatprep.subr.bf16.mxu1 %v974_v15  ;;  %v2427_v23 = vpop.f32.mrb[11].mxu1  ;;  %v1069_v13 = vunpack.c.l.s8.bf16 %v535_v11  ;;  %v500_v15 = vld [vmem:[%s2782_s8 + $0x718] sm:$0xff]  ;;  %v1025_v52 = vunpack.c.h.s8.bf16 %v512_v12 }
 0x1ef   : > { %1689 = vmatprep.subr.bf16.mxu0 %v1045_v14  ;;  %v3197_v24 = vadd.f32 %v2425_v17, %v3162_v20  ;;  %v1054_v20 = vunpack.c.h.s8.bf16 %v526_v28  ;;  %v534_v14 = vld [vmem:[%s2782_s8 + $0x828] sm:$0xff]  ;;  %v998_v17 = vunpack.c.l.s8.bf16 %v500_v15  ;;  %v527_v28 = vld [vmem:[%s2782_s8 + $0x7f0] sm:$0xff]  ;;  %v524_v12 = vld [vmem:[%s2782_s8 + $0x7d8] sm:$0xff] }
 0x1f0   : > { %v1068_v2 = vunpack.c.l.s8.bf16 %v534_v14  ;;  %v538_v23 = vld [vmem:[%s2782_s8 + $0x848] sm:$0xff]  ;;  %v1071_v26 = vunpack.c.h.s8.bf16 %v534_v14 }
 0x1f1   : > { %2574 = vmatpush3.bf16.msra.mxu1 %v950_v21  ;;  %v1072_v21 = vunpack.c.h.s8.bf16 %v535_v11 }
 0x1f2   : > { %1690 = vmatpush1.bf16.msra.mxu0 %v1044_v63  ;;  %2575 = vmatprep.subr.bf16.mxu1 %v977_v62 }
 0x1f3   : > { %1691 = vmatprep.subr.bf16.mxu0 %v1048_v22 }
 0x1f5   : > { %2576 = vmatpush3.bf16.msra.mxu1 %v953_v29  ;;  %v1075_v29 = vunpack.c.l.s8.bf16 %v538_v23 }
 0x1f6   : > { %1692 = vmatpush1.bf16.msra.mxu0 %v1047_v27  ;;  %2583 = vmatprep.subr.bf16.mxu1 %v1004_v31  ;;  %v1001_v27 = vunpack.c.h.s8.bf16 %v500_v15  ;;  %v537_v31 = vld [vmem:[%s2782_s8 + $0x840] sm:$0xff]  ;;  %v1046_v15 = vunpack.c.l.s8.bf16 %v524_v12 }
 0x1f7   : > { %1693 = vmatprep.subr.bf16.mxu0 %v1051_v30  ;;  %v1052_v30 = vunpack.c.l.s8.bf16 %v527_v28  ;;  %v1077_v25 = vunpack.c.h.s8.bf16 %v537_v31 }
 0x1f8   : > { %2112 = vmatmul.mubr.bf16.vlgmr.msra.gmra.mrb[36].mxu1 %v3116_v35  ;;  %v1060_v35 = vunpack.c.h.s8.bf16 %v529_v42  ;;  %v530_v42 = vld [vmem:[%s2782_s8 + $0x808] sm:$0xff] }
 0x1f9   : > { %2584 = vmatpush3.bf16.msra.mxu1 %v980_v39  ;;  %2151 = vmatprep.mubr.bf16.mxu1 %v3122_v44  ;;  %v1063_v44 = vunpack.c.l.s8.bf16 %v532_v1  ;;  %v1078_v39 = vunpack.c.h.s8.bf16 %v538_v23 }
 0x1fa   : > { %1694 = vmatpush1.bf16.msra.mxu0 %v1050_v38  ;;  %2585 = vmatprep.subr.bf16.mxu1 %v1007_v41  ;;  %v1028_v38 = vunpack.c.l.s8.bf16 %v515_v33  ;;  %v541_v41 = vld [vmem:[%s2782_s8 + $0x860] sm:$0xff] }
 0x1fb   : > { %1695 = vmatprep.subr.bf16.mxu0 %v1054_v20  ;;  %v1055_v20 = vunpack.c.h.s8.bf16 %v527_v28  ;;  %v545_v28 = vld [vmem:[%s2782_s8 + $0x880] sm:$0xff] }
 0x1fd   : > { %2586 = vmatpush3.bf16.msra.mxu1 %v983_v45  ;;  %v1058_v45 = vunpack.c.l.s8.bf16 %v530_v42 }
 0x1fe   : > { %1696 = vmatpush1.bf16.msra.mxu0 %v1053_v48  ;;  %2587 = vmatprep.subr.bf16.mxu1 %v1010_v50  ;;  %v1081_v48 = vunpack.c.l.s8.bf16 %v541_v41  ;;  %v518_v50 = vld [vmem:[%s2782_s8 + $0x7a8] sm:$0xff] }
 0x1ff   : > { %1697 = vmatprep.subr.bf16.mxu0 %v1057_v49  ;;  %v540_v49 = vld [vmem:[%s2782_s8 + $0x858] sm:$0xff]  ;;  %v1034_v54 = vunpack.c.l.s8.bf16 %v518_v50  ;;  %v1037_v3 = vunpack.c.h.s8.bf16 %v518_v50 }
 0x200   : > { %v1083_v1 = vunpack.c.h.s8.bf16 %v540_v49 }
 0x201   : > { %2588 = vmatpush3.bf16.msra.mxu1 %v986_v60  ;;  %v1061_v60 = vunpack.c.h.s8.bf16 %v530_v42 }
 0x202   : > { %1698 = vmatpush1.bf16.msra.mxu0 %v1056_v47  ;;  %2589 = vmatprep.subr.bf16.mxu1 %v1013_v61  ;;  %v1084_v47 = vunpack.c.h.s8.bf16 %v541_v41  ;;  %v533_v61 = vld [vmem:[%s2782_s8 + $0x820] sm:$0xff] }
 0x203   : > { %1699 = vmatprep.subr.bf16.mxu0 %v1060_v35  ;;  %v544_v35 = vld [vmem:[%s2782_s8 + $0x878] sm:$0xff] }
 0x204   : > { %v1090_v8 = vunpack.c.h.s8.bf16 %v544_v35 }
 0x205   : > { %2590 = vmatpush3.bf16.msra.mxu1 %v989_v55  ;;  %v543_v55 = vld [vmem:[%s2782_s8 + $0x870] sm:$0xff] }
 0x206   : > { %1700 = vmatpush1.bf16.msra.mxu0 %v1059_v4  ;;  %2591 = vmatprep.subr.bf16.mxu1 %v1016_v46  ;;  %v1064_v4 = vunpack.c.l.s8.bf16 %v533_v61  ;;  %v1086_v46 = vunpack.c.l.s8.bf16 %v543_v55 }
 0x207   : > { %1701 = vmatprep.subr.bf16.mxu0 %v1063_v44  ;;  %v521_v44 = vld [vmem:[%s2782_s8 + $0x7c0] sm:$0xff] }
 0x208   : > { %v1040_v0 = vunpack.c.l.s8.bf16 %v521_v44 }
 0x209   : > { %2592 = vmatpush3.bf16.msra.mxu1 %v992_v7  ;;  %v536_v7 = vld [vmem:[%s2782_s8 + $0x838] sm:$0xff] }
 0x20a   : > { %1702 = vmatpush1.bf16.msra.mxu0 %v1062_v59  ;;  %2593 = vmatprep.subr.bf16.mxu1 %v1019_v53  ;;  %v1067_v59 = vunpack.c.h.s8.bf16 %v533_v61  ;;  %v1043_v53 = vunpack.c.h.s8.bf16 %v521_v44  ;;  %v1070_v11 = vunpack.c.l.s8.bf16 %v536_v7 }
 0x20b   : > { %1703 = vmatprep.subr.bf16.mxu0 %v1066_v9  ;;  %v2445_v10 = vpop.f32.mrb[12].mxu1  ;;  %v1089_v9 = vunpack.c.h.s8.bf16 %v543_v55 }
 0x20c   : > { %v2446_v16 = vpop.f32.mrb[13].mxu1 }
 0x20d   : > { %v2447_v6 = vadd.f32 %v2446_v16, %v2445_v10  ;;  %2594 = vmatpush3.bf16.msra.mxu1 %v995_v5  ;;  %v2448_v63 = vpop.f32.mrb[14].mxu1 }
 0x20e   : > { %1704 = vmatpush1.bf16.msra.mxu0 %v1065_v56  ;;  %2595 = vmatprep.subr.bf16.mxu1 %v1022_v58  ;;  %v2449_v22 = vpop.f32.mrb[15].mxu1  ;;  %v539_v56 = vld [vmem:[%s2782_s8 + $0x850] sm:$0xff]  ;;  %v1239_v58 = vcombine.high %v3226_v37, %v3226_v37 }
 0x20f   : > { %1705 = vmatprep.subr.bf16.mxu0 %v1069_v13  ;;  %v3218_v62 = vadd.f32 %v2447_v6, %v3197_v24  ;;  %v1074_v24 = vunpack.c.l.s8.bf16 %v537_v31  ;;  %v1076_v10 = vunpack.c.l.s8.bf16 %v539_v56  ;;  %v2723_v6 = vmov 0.0   ;;  %v542_v22 = vld [vmem:[%s2782_s8 + $0x868] sm:$0xff] }
 0x210   : > { %v1082_v23 = vunpack.c.l.s8.bf16 %v542_v22 }
 0x211   : > { %2596 = vmatpush3.bf16.msra.mxu1 %v998_v17 }
 0x212   : > { %1706 = vmatpush1.bf16.msra.mxu0 %v1068_v2  ;;  %2597 = vmatprep.subr.bf16.mxu1 %v1025_v52  ;;  %v1073_v2 = vunpack.c.h.s8.bf16 %v536_v7  ;;  %v1079_v52 = vunpack.c.h.s8.bf16 %v539_v56 }
 0x213   : > { %1707 = vmatprep.subr.bf16.mxu0 %v1072_v21  ;;  %v1049_v21 = vunpack.c.h.s8.bf16 %v524_v12 }
 0x215   : > { %2598 = vmatpush3.bf16.msra.mxu1 %v1001_v27  ;;  %v1091_v27 = vunpack.c.h.s8.bf16 %v545_v28 }
 0x216   : > { %1708 = vmatpush1.bf16.msra.mxu0 %v1071_v26  ;;  %2605 = vmatprep.subr.bf16.mxu1 %v1052_v30  ;;  %v1088_v26 = vunpack.c.l.s8.bf16 %v545_v28 }
 0x217   : > { %1718 = vmatprep.subr.bf16.mxu0 %v1075_v29 }
 0x218   : > { %2152 = vmatmul.mubr.bf16.vlgmr.msra.gmra.mrb[40].mxu1 %v3175_v34  ;;  %v1080_v34 = vunpack.c.l.s8.bf16 %v540_v49 }
 0x219   : > { %1710 = vmatmul.mubr.bf16.vlgmr.msra.gmra.mrb[0].mxu0 %v3226_v37  ;;  %2606 = vmatpush3.bf16.msra.mxu1 %v1028_v38 }
 0x21a   : > { %1719 = vmatpush1.bf16.msra.mxu0 %v1074_v24  ;;  %2607 = vmatprep.subr.bf16.mxu1 %v1055_v20 }
 0x21b   : > { %1720 = vmatprep.subr.bf16.mxu0 %v1078_v39  ;;  %1750 = vmatprep.mubr.bf16.mxu0 %v2722_v57 }
 0x21c   : > { %2191 = vmatprep.mubr.bf16.mxu1 %v3180_v36  ;;  %v1087_v36 = vunpack.c.l.s8.bf16 %v544_v35 }
 0x21d   : > { %2608 = vmatpush3.bf16.msra.mxu1 %v1031_v43 }
 0x21e   : > { %1721 = vmatpush1.bf16.msra.mxu0 %v1077_v25  ;;  %2609 = vmatprep.subr.bf16.mxu1 %v1058_v45 }
 0x21f   : > { %1722 = vmatprep.subr.bf16.mxu0 %v1081_v48 }
 0x221   : > { %2610 = vmatpush3.bf16.msra.mxu1 %v1034_v54 }
 0x222   : > { %1723 = vmatpush1.bf16.msra.mxu0 %v1080_v34  ;;  %2611 = vmatprep.subr.bf16.mxu1 %v1061_v60 }
 0x223   : > { %1724 = vmatprep.subr.bf16.mxu0 %v1084_v47 }
 0x225   : > { %2612 = vmatpush3.bf16.msra.mxu1 %v1037_v3 }
 0x226   : > { %1725 = vmatpush1.bf16.msra.mxu0 %v1083_v1  ;;  %2613 = vmatprep.subr.bf16.mxu1 %v1064_v4 }
 0x227   : > { %1726 = vmatprep.subr.bf16.mxu0 %v1087_v36 }
 0x229   : > { %2614 = vmatpush3.bf16.msra.mxu1 %v1040_v0 }
 0x22a   : > { %1727 = vmatpush1.bf16.msra.mxu0 %v1086_v46  ;;  %2615 = vmatprep.subr.bf16.mxu1 %v1067_v59 }
 0x22b   : > { %1728 = vmatprep.subr.bf16.mxu0 %v1090_v8  ;;  %v2467_v5 = vpop.f32.mrb[16].mxu1 }
 0x22c   : > { %v2468_v13 = vpop.f32.mrb[17].mxu1 }
 0x22d   : > { %v2469_v14 = vadd.f32 %v2468_v13, %v2467_v5  ;;  %2616 = vmatpush3.bf16.msra.mxu1 %v1043_v53  ;;  %v2470_v16 = vpop.f32.mrb[18].mxu1 }
 0x22e   : > { %1729 = vmatpush1.bf16.msra.mxu0 %v1089_v9  ;;  %2617 = vmatprep.subr.bf16.mxu1 %v1070_v11  ;;  %v2471_v17 = vpop.f32.mrb[19].mxu1 }
 0x22f   : > { %2634 = vmatprep.subr.bf16.mxu0 %v2723_v6  ;;  %v1914_v63 = vadd.f32 %v2469_v14, %v3218_v62  ;;  %v1085_v62 = vunpack.c.h.s8.bf16 %v542_v22 }
 0x231   : > { %2380 = vmatmul.mubr.msk.bf16.vlgmr.msra.gmra.mrb[0].mxu0 %vm1263_vm1, %v1239_v58  ;;  %2618 = vmatpush3.bf16.msra.mxu1 %v1046_v15 }
 0x232   : > { %2635 = vmatpush3.bf16.msra.mxu0 %v1076_v10  ;;  %2619 = vmatprep.subr.bf16.mxu1 %v1073_v2 }
 0x233   : > { %2636 = vmatprep.subr.bf16.mxu0 %v2723_v6  ;;  %2646 = vmatprep.mubr.msk.bf16.mxu0 %vm2724_vm2, %v2723_v6 }
 0x235   : > { %2620 = vmatpush3.bf16.msra.mxu1 %v1049_v21 }
 0x236   : > { %2637 = vmatpush3.bf16.msra.mxu0 %v1079_v52 }
 0x237   : > { %2638 = vmatprep.subr.bf16.mxu0 %v2723_v6 }
 0x238   : > { %2192 = vmatmul.mubr.bf16.vlgmr.msra.gmra.mrb[44].mxu1 %v3226_v37 }
 0x23a   : > { %2639 = vmatpush3.bf16.msra.mxu0 %v1082_v23 }
 0x23b   : > { %2640 = vmatprep.subr.bf16.mxu0 %v2723_v6 }
 0x23e   : > { %2641 = vmatpush3.bf16.msra.mxu0 %v1085_v62 }
 0x23f   : > { %2642 = vmatprep.subr.bf16.mxu0 %v2723_v6 }
 0x242   : > { %2643 = vmatpush3.bf16.msra.mxu0 %v1088_v26 }
 0x243   : > { %2644 = vmatprep.subr.bf16.mxu0 %v2723_v6 }
 0x246   : > { %2645 = vmatpush3.bf16.msra.mxu0 %v1091_v27 }
 0x249   : > { %2647 = vmatmul.mubr.msk.bf16.vlgmr.msra.gmra.mrb[4].mxu0 %vm1263_vm1, %v1239_v58 }
 0x24b   : > { %v2489_v29 = vpop.f32.mrb[20].mxu1 }
 0x24c   : > { %v2490_v30 = vpop.f32.mrb[21].mxu1 }
 0x24d   : > { %v2491_v31 = vadd.f32 %v2490_v30, %v2489_v29  ;;  %v2492_v33 = vpop.f32.mrb[22].mxu1  ;;  %v2277_v29 = vld [vmem:[%s3281_s2] sm:$0x7] (!%p2382_p6) }
 0x24e   : > { %v2493_v24 = vpop.f32.mrb[23].mxu1  ;;  %v2279_v30 = vld [vmem:[%s3282_s3] sm:$0x7] (!%p2382_p6) }
 0x24f   : > { %v1954_v38 = vadd.f32 %v2491_v31, %v1914_v63  ;;  %v2725_v24 = vmov (!%p2382_p6), 1983009808  }
 0x26b   : > { %v2511_v37 = vpop.f32.mrb[24].mxu1 }
 0x26c   : > { %v2512_v39 = vpop.f32.mrb[25].mxu1 }
 0x26d   : > { %v2513_v20 = vadd.f32 %v2512_v39, %v2511_v37  ;;  %v2514_v41 = vpop.f32.mrb[26].mxu1  ;;  %v2282_v37 = vld [vmem:[%s3283_s4] sm:$0x3f] (!%p2382_p6) }
 0x26e   : > { %v2515_v42 = vpop.f32.mrb[27].mxu1  ;;  %v2300_v41 = vcombine.high (!%p2382_p6), %v2282_v37, %v2282_v37 }
 0x26f   : > { %v1994_v25 = vadd.f32 %v2513_v20, %v1954_v38  ;;  %v2302_v38 = vunpack.c.l.s4 (!%p2382_p6), %v2725_v24  ;;  %v2290_v20 = vsub.s32 (!%p2382_p6), 1, %v2799_v40 }
 0x271   : > { %v2303_v42 = vunpack.c.0.s8 (!%p2382_p6), %v2302_v38 }
 0x28b   : > { %v2533_v43 = vpop.f32.mrb[28].mxu1 }
 0x28c   : > { %v2534_v48 = vpop.f32.mrb[29].mxu1 }
 0x28d   : > { %v2535_v45 = vadd.f32 %v2534_v48, %v2533_v43  ;;  %v2536_v49 = vpop.f32.mrb[30].mxu1  ;;  %v2306_v48 = vsub.s32 (!%p2382_p6), %v2303_v42, %v2799_v40 }
 0x28e   : > { %v2537_v50 = vpop.f32.mrb[31].mxu1 }
 0x28f   : > { %v2034_v57 = vadd.f32 %v2535_v45, %v1994_v25  ;;  %v2307_v49 = vrot.slane (!%p2382_p6), %v2282_v37, %v2306_v48  ;;  %v2314_v50 = vrot.slane (!%p2382_p6), %v2300_v41, %v2306_v48 }
 0x2ab   : > { %v2555_v34 = vpop.f32.mrb[32].mxu1 }
 0x2ac   : > { %v2556_v54 = vpop.f32.mrb[33].mxu1 }
 0x2ad   : > { %v2557_v47 = vadd.f32 %v2556_v54, %v2555_v34  ;;  %v2558_v60 = vpop.f32.mrb[34].mxu1 }
 0x2ae   : > { %v2559_v35 = vpop.f32.mrb[35].mxu1 }
 0x2af   : > { %v2074_v61 = vadd.f32 %v2557_v47, %v2034_v57  ;;  %v2315_v57 = vcombine.high (!%p2382_p6), %v2307_v49, %v2307_v49 }
 0x2cb   : > { %v2577_v1 = vpop.f32.mrb[36].mxu1 }
 0x2cc   : > { %v2578_v3 = vpop.f32.mrb[37].mxu1 }
 0x2cd   : > { %v2579_v36 = vadd.f32 %v2578_v3, %v2577_v1  ;;  %v2580_v4 = vpop.f32.mrb[38].mxu1 }
 0x2ce   : > { %v2581_v55 = vpop.f32.mrb[39].mxu1 }
 0x2cf   : > { %v2114_v44 = vadd.f32 %v2579_v36, %v2074_v61  ;;  %v2330_v36 = vld [vmem:[%s3284_s5] sm:$0x3] (!%p2382_p6) }
 0x2eb   : > { %v2599_v46 = vpop.f32.mrb[40].mxu1 }
 0x2ec   : > { %v2600_v0 = vpop.f32.mrb[41].mxu1 }
 0x2ed   : > { %v2601_v8 = vadd.f32 %v2600_v0, %v2599_v46  ;;  %v2602_v59 = vpop.f32.mrb[42].mxu1 }
 0x2ee   : > { %v2603_v7 = vpop.f32.mrb[43].mxu1 }
 0x2ef   : > { %v2154_v9 = vadd.f32 %v2601_v8, %v2114_v44 }
 0x304   : > { %v1752_v53 = vpop.f32.mrb[0].mxu0 }
 0x305   : > { %v2650_v11 = vadd.f32 %v1752_v53, %v3138_v18  ;;  %v1754_v12 = vpop.f32.mrb[1].mxu0 }
 0x306   : > { %v2651_v56 = vadd.f32 %v1754_v12, %v3140_v19  ;;  %v1756_v5 = vpop.f32.mrb[2].mxu0  ;;  %v269_v19 = vld [vmem:[#allocation2] sm:$0x7] }
 0x307   : > { %v1757_v13 = vpop.f32.mrb[3].mxu0 }
 0x308   : > { %v2242_v58 = vcombine.low %v2650_v11, %v2651_v56 }
 0x30a   : > { %v2249_v22 = vrot.slane %v2242_v58, %v2806_v51 }
 0x30b   : > { %v2621_v14 = vpop.f32.mrb[44].mxu1 }
 0x30c   : > { %v2622_v15 = vpop.f32.mrb[45].mxu1 }
 0x30d   : > { %v2623_v10 = vadd.f32 %v2622_v15, %v2621_v14  ;;  %v2624_v16 = vpop.f32.mrb[46].mxu1 }
 0x30e   : > { %v2625_v6 = vpop.f32.mrb[47].mxu1 }
 0x30f   : > { %v2194_v2 = vadd.f32 %v2623_v10, %v2154_v9 }
 0x31c   : > { %v2233_v17 = vpop.f32.mrb[4].mxu0 }
 0x31d   : > { %v2234_v63 = vadd.f32 %v2233_v17, %v2194_v2  ;;  %v2648_v21 = vpop.f32.mrb[5].mxu0 }
 0x31e   : > { %v2236_v52 = vpop.f32.mrb[6].mxu0 }
 0x31f   : > { %v2256_v18 = vrot.slane %v2234_v63, %v2806_v51  ;;  %v2649_v23 = vpop.f32.mrb[7].mxu0 }
 0x321   : > { %v2257_v62 = vcombine.low %v2249_v22, %v2256_v18  ;;  %2275 = sbr.rel (%p2382_p6) target bundleno = 975 (0x3cf), region = 52 }
 0x323   : > { %v2264_v28 = vrot.slane %v2257_v62, %v2806_v51  ;;  %v2286_v51 = vsub.s32 (!%p2382_p6), 0, %v2799_v40 }
 0x325   : > { %v2266_v26 = vadd.f32 %v2264_v28, %v269_v19 }
 0x327   : > { %2271 = vst.msk [vmem:[#allocation2] sm:$0x7] %vm2269_vm3, %v2266_v26 }
 0x32e   : > { %v2276_v27 = vld [vmem:[#allocation2] sm:$0x7] }
 0x32f   : > { %v2278_v31 = vmul.f32 %v2277_v29, %v2276_v27 }
 0x331   : > { %v2280_v33 = vadd.f32 %v2279_v30, %v2278_v31 }
 0x333   : > { %v2281_v39 = vmax.f32 %v2280_v33, 0.0 }
 0x335   : > { %v2287_v25 = vrot.slane %v2281_v39, %v2286_v51  ;;  %v2295_v43 = vrot.slane %v2281_v39, %v2294_v32  ;;  %v2291_v45 = vrot.slane %v2281_v39, %v2290_v20 }
 0x337   : > { %v2319_v34 = vmul.f32 %v2307_v49, %v2287_v25  ;;  %v2321_v54 = vmul.f32 %v2314_v50, %v2295_v43  ;;  %v2320_v47 = vmul.f32 %v2315_v57, %v2291_v45 }
 0x339   : > { %v2323_v60 = vsel %vm2322_vm4, %v2319_v34, 0.0  ;;  %v2324_v35 = vsel %vm2322_vm4, %v2320_v47, 0.0  ;;  %v2326_v61 = vsel %vm2322_vm4, %v2321_v54, 0.0 }
 0x33a   : > { %v2325_v1 = vadd.f32 %v2324_v35, %v2323_v60 }
 0x33c   : > { %v2327_v3 = vadd.f32 %v2326_v61, %v2325_v1 }
 0x33e   : > { %2328 = vadd.xlane.f32.xlu0 %v2327_v3 }
 0x3cb   : > { %v2329_v4 = vpop.xlane.xlu0 %2328 }
 0x3cc   : > { %v2331_v40 = vadd.f32 %v2330_v36, %v2329_v4 }
 0x3ce   : > { %2333 = vst.msk [vmem:[%s3285_s6] sm:$0x3] %vm2332_vm5, %v2331_v40 }
 0x3cf PF: > { %s16_s21 = sadd.s32 1, %s2718_s21  }
 0x3d0   : > { %p13_p7 = scmp.ge.s32.totalorder %s16_s21, 4  }
 0x3d2   :  { %15 = sbr.rel (!%p13_p7) target bundleno = 1 (0x1), region = 81 }

</bundles_post_ra>
